<compile_context>
chip_gen: v6e
topology: v6e:2x2x1
jax: 0.10.0
libtpu: 0.0.40
codegen_flags: <defaults>
</compile_context>

<pallas_src>
import functools

import jax
import jax.numpy as jnp
import numpy as np
from jax import lax
from jax.experimental import pallas as pl
from jax.experimental.pallas import tpu as pltpu

H_IMG = 28
W_IMG = 28
_SUB = 8            # sub-batch (sublane) chunk processed per inner-loop step
_NEG_BIG = -1e30    # additive mask for non-pixel lanes before the max


def _round_up(x, m):
    return -(-x // m) * m


def _detect_roll_sign():
    """Determine pltpu.roll's shift convention with a tiny probe kernel.

    Returns s such that pltpu.roll(x, (s*off) % N, axis)[..., p] == x[..., (p+off) % N].
    Falls back to the jnp.roll convention (-1) if the probe cannot run.
    """
    def _probe(x_ref, o_ref):
        o_ref[...] = pltpu.roll(x_ref[...], 1, 1)

    try:
        x = jnp.broadcast_to(jnp.arange(128, dtype=jnp.int32), (8, 128))
        r = pl.pallas_call(
            _probe, out_shape=jax.ShapeDtypeStruct((8, 128), jnp.int32))(x)
        v = int(np.asarray(jax.device_get(r))[0, 0])
        if v == 127:      # jnp.roll semantics: out[i] = x[i - shift]
            return -1
        if v == 1:        # opposite convention: out[i] = x[i + shift]
            return 1
    except Exception:
        pass
    return -1


_ROLL_SIGN = _detect_roll_sign()


def geneo_mlp_kernel(x_ref, mask_ref, pat_ref, w2_ref, b2_ref, wf_ref, bf_ref,
                     out_ref, t_ref, *, K, shifts, sub):
    """One batch tile.

    x_ref   : (B_TILE, N) f32  flattened, zero-gapped padded images (VMEM)
    mask_ref: (1, N)      f32  0 on pixel lanes, -1e30 on gap/pad lanes (VMEM)
    pat_ref : (K, Hp*Wp)  f32  GENEO patterns (SMEM scalars)
    w2_ref  : (K,)        f32  GENEO2 weight (SMEM)
    b2_ref  : (1,)        f32  GENEO2 bias   (SMEM)
    wf_ref  : (N, C_pad)  f32  Finael weight scattered to the lane layout (VMEM)
    bf_ref  : (1, C_pad)  f32  Finael bias (VMEM)
    out_ref : (B_TILE, C_pad) f32
    t_ref   : (B_TILE, N) f32  VMEM scratch for sigmoid(GENEO2) activations
    """
    bt, n_lane = x_ref.shape
    n_shift = len(shifts)
    inv_n = 1.0 / float(n_shift)

    # Inner loop over 8-row sub-batches bounds live ranges: the K accumulators,
    # the source rows and one rolled window stay vreg-resident per iteration.
    @pl.loop(0, bt // sub)
    def _(ib):
        r0 = pl.multiple_of(ib * sub, sub)
        x = x_ref[pl.ds(r0, sub), :]                         # (sub, N)
        lane_mask = mask_ref[...]                            # (1, N), additive
        lin = lax.broadcasted_iota(jnp.int32, (sub, n_lane), 1)

        # GENEO_1: sum |window - pattern| over the Hp*Wp shifts.  Shift loop is
        # outer (window generated once, via a lane roll on the XLU slot) and
        # the K pattern accumulators are updated inside (loop swap).
        accs = [jnp.zeros((sub, n_lane), jnp.float32) for _ in range(K)]
        for j, s in enumerate(shifts):
            shifted = pltpu.roll(x, s, 1) if s else x
            for k in range(K):
                accs[k] = accs[k] + jnp.abs(shifted - pat_ref[k, j])

        # Channel_wise_max + GENEO2 (Linear(K, 1)), accumulated over patterns.
        t_acc = jnp.zeros((sub, n_lane), jnp.float32)
        for k in range(K):
            fk = 1.0 - accs[k] * inv_n                       # (sub, N)
            fkm = fk + lane_mask                             # gap/pad lanes -> -1e30
            m = jnp.max(fkm, axis=-1, keepdims=True)
            cand = jnp.where(fkm == m, lin, n_lane)
            first = jnp.min(cand, axis=-1, keepdims=True)    # first (row-major) argmax
            t_acc = t_acc + jnp.where(lin == first, fk, 0.0) * w2_ref[k]

        t_ref[pl.ds(r0, sub), :] = jax.nn.sigmoid(t_acc + b2_ref[0])

    # Finael = Linear(784, C) as one MXU matmul over the whole tile.  Weight
    # rows at gap/pad lanes are zero, so the padded lane layout is exact.
    logits = jnp.dot(t_ref[...], wf_ref[...], preferred_element_type=jnp.float32)
    out_ref[...] = jax.nn.sigmoid(logits + bf_ref[...])


def _choose_b_tile(batch, b_tile_max):
    bt = _round_up(max(batch, 1), _SUB)
    if bt <= b_tile_max:
        if bt > 2 * _SUB:
            # Keep at least 2 grid steps so the "parallel" batch axis can be
            # split across v7x's two TensorCores; negligible cost elsewhere.
            return _round_up(-(-bt // 2), _SUB)
        return bt
    return b_tile_max


def geneo_mlp_forward(x, patterns, w2, b2, wf, bf, *, b_tile_max=256):
    """x: (B, 1, 28, 28); patterns: (K, 1, Hp, Wp) (odd Hp, Wp); w2: (1, K);
    b2: (1,); wf: (num_classes, 784); bf: (num_classes,).
    Returns (B, num_classes)."""
    B = x.shape[0]
    K, _, Hp, Wp = patterns.shape
    C = wf.shape[0]
    H, W = H_IMG, W_IMG
    ph, pw = Hp // 2, Wp // 2

    # Lane layout: pixel (h, w) at lane (h + ph) * S + w; 2*pw zero lanes of gap
    # after each row, ph zero row-slots above/below, zero tail up to N.  Every
    # in-kernel roll by (dh - ph) * S + (dw - pw) then reads either the correct
    # neighbouring pixel or a zero lane (== the zero padding of F.pad).
    S = W + 2 * pw
    n_slots = H + 2 * ph
    raw = n_slots * S
    N = _round_up(raw, 128)

    # b_tile_max=256 fits comfortably in VMEM on v5e/v6e (128 MiB) and v7x
    # (64 MiB): x block ~1 MB double-buffered + 1 MB t scratch per 256 rows.
    B_TILE = _choose_b_tile(B, b_tile_max)
    B_pad = _round_up(B, B_TILE)
    C_pad = _round_up(C, 128)

    # Flattened, gapped, padded images: the only per-image HBM stream.
    xs = x[:, 0, :, :].astype(jnp.float32)
    xs = jnp.pad(xs, ((0, B_pad - B), (0, 0), (0, 0)))
    buf = jnp.zeros((B_pad, n_slots, S), jnp.float32)
    buf = buf.at[:, ph:ph + H, :W].set(xs)
    xflat = jnp.pad(buf.reshape(B_pad, raw), ((0, 0), (0, N - raw)))

    # Additive lane mask: 0 on real-pixel lanes, -1e30 elsewhere.
    valid = jnp.zeros((n_slots, S), jnp.float32).at[ph:ph + H, :W].set(1.0)
    valid = jnp.pad(valid.reshape(raw), (0, N - raw))
    lane_mask = jnp.where(valid > 0.5, 0.0, _NEG_BIG).astype(jnp.float32)
    lane_mask = lane_mask.reshape(1, N)

    # Roll shifts, row-major over (dh, dw) to match the flattened patterns.
    offsets = [(dh - ph) * S + (dw - pw) for dh in range(Hp) for dw in range(Wp)]
    shifts = tuple((int(_ROLL_SIGN) * off) % N for off in offsets)

    pat_flat = patterns.reshape(K, Hp * Wp).astype(jnp.float32)
    w2_flat = w2.reshape(K).astype(jnp.float32)
    b2_flat = b2.reshape(1).astype(jnp.float32)

    # Finael weight scattered onto the gapped lane layout (zero rows elsewhere).
    wf_sp = jnp.zeros((n_slots, S, C_pad), jnp.float32)
    wf_sp = wf_sp.at[ph:ph + H, :W, :C].set(
        wf.astype(jnp.float32).T.reshape(H, W, C))
    wf_t = jnp.pad(wf_sp.reshape(raw, C_pad), ((0, N - raw), (0, 0)))
    bf_p = jnp.zeros((1, C_pad), jnp.float32).at[0, :C].set(bf.astype(jnp.float32))

    kernel = functools.partial(geneo_mlp_kernel, K=K, shifts=shifts, sub=_SUB)
    out = pl.pallas_call(
        kernel,
        out_shape=jax.ShapeDtypeStruct((B_pad, C_pad), jnp.float32),
        grid_spec=pltpu.PrefetchScalarGridSpec(
            num_scalar_prefetch=0,
            grid=(B_pad // B_TILE,),
            in_specs=[
                pl.BlockSpec((B_TILE, N), lambda i: (i, 0)),          # images
                pl.BlockSpec((1, N), lambda i: (0, 0)),               # lane mask
                pl.BlockSpec(memory_space=pltpu.MemorySpace.SMEM),    # patterns
                pl.BlockSpec(memory_space=pltpu.MemorySpace.SMEM),    # GENEO2 weight
                pl.BlockSpec(memory_space=pltpu.MemorySpace.SMEM),    # GENEO2 bias
                pl.BlockSpec((N, C_pad), lambda i: (0, 0)),           # Finael weight^T
                pl.BlockSpec((1, C_pad), lambda i: (0, 0)),           # Finael bias
            ],
            out_specs=pl.BlockSpec((B_TILE, C_pad), lambda i: (i, 0)),
            scratch_shapes=[pltpu.VMEM((B_TILE, N), jnp.float32)],
        ),
        compiler_params=pltpu.CompilerParams(
            dimension_semantics=("parallel",)),
    )(xflat, lane_mask, pat_flat, w2_flat, b2_flat, wf_t, bf_p)
    return out[:B, :C]


def reference_forward(x, patterns, w2, b2, wf, bf):
    """Pure-JAX reference mirroring the PyTorch forward semantics."""
    B = x.shape[0]
    K, _, Hp, Wp = patterns.shape
    H, W = H_IMG, W_IMG
    xs = x[:, 0, :, :].astype(jnp.float32)
    xpad = jnp.pad(xs, ((0, 0), (Hp // 2, Hp // 2), (Wp // 2, Wp // 2)))
    patches = jnp.stack(
        [xpad[:, dh:dh + H, dw:dw + W] for dh in range(Hp) for dw in range(Wp)],
        axis=-1)                                              # (B, H, W, Hp*Wp)
    pat = patterns.reshape(K, Hp * Wp)
    diff = jnp.abs(patches[:, None] - pat[None, :, None, None, :])
    fk = 1.0 - jnp.mean(diff, axis=-1)                        # (B, K, H, W)
    flat = fk.reshape(B, K, H * W)
    idx = jnp.argmax(flat, axis=-1)
    mask = jax.nn.one_hot(idx, H * W, dtype=fk.dtype)
    cwm = (flat * mask).reshape(B, K, H, W)
    t = jax.nn.sigmoid(jnp.einsum("bkhw,k->bhw", cwm, w2.reshape(K)) + b2[0])
    out = jax.nn.sigmoid(
        jnp.matmul(t.reshape(B, H * W), wf.T,
                   precision=lax.Precision.HIGHEST) + bf)
    return out


if __name__ == "__main__":
    key = jax.random.PRNGKey(0)
    kp, kx, kw2, kb2, kwf, kbf, kx2 = jax.random.split(key, 7)

    B, K, Hp, Wp, num_classes = 2, 4, 3, 3, 10

    # Deterministic synthetic parameters (shapes implied by the module).
    patterns = jax.random.uniform(kp, (K, 1, Hp, Wp), jnp.float32)
    x = jax.random.uniform(kx, (B, 1, H_IMG, W_IMG), jnp.float32)
    lim2 = 1.0 / np.sqrt(K)
    w2 = jax.random.uniform(kw2, (1, K), jnp.float32, -lim2, lim2)
    b2 = jax.random.uniform(kb2, (1,), jnp.float32, -lim2, lim2)
    limf = 1.0 / np.sqrt(H_IMG * W_IMG)
    wf = jax.random.uniform(kwf, (num_classes, H_IMG * W_IMG), jnp.float32, -limf, limf)
    bf = jax.random.uniform(kbf, (num_classes,), jnp.float32, -limf, limf)
    # TODO(synk): Rotational_parameters are unused in the PyTorch forward, so omitted.

    fwd = jax.jit(geneo_mlp_forward)

    # Small batch (single padded tile).
    out = jax.block_until_ready(fwd(x, patterns, w2, b2, wf, bf))
    ref = reference_forward(x, patterns, w2, b2, wf, bf)
    np.testing.assert_allclose(np.asarray(out), np.asarray(ref),
                               rtol=2e-5, atol=2e-5)

    # Larger batch: exercises batch padding and a multi-step parallel grid.
    B2 = 200
    x2 = jax.random.uniform(kx2, (B2, 1, H_IMG, W_IMG), jnp.float32)
    out2 = jax.block_until_ready(fwd(x2, patterns, w2, b2, wf, bf))
    ref2 = reference_forward(x2, patterns, w2, b2, wf, bf)
    np.testing.assert_allclose(np.asarray(out2), np.asarray(ref2),
                               rtol=2e-5, atol=2e-5)

    print("KERNEL_OK")
</pallas_src>

<mosaic_0001>
module attributes {stable_mosaic.version = 11 : i64} {
  func.func @_probe(%arg0: memref<8x128xi32, #tpu.memory_space<vmem>>, %arg1: memref<8x128xi32, #tpu.memory_space<vmem>>) attributes {dimension_semantics = [], scalar_prefetch = 0 : i64, scratch_operands = 0 : i64, tpu.core_type = #tpu.core_type<tc>} {
    %c0 = arith.constant 0 : index
    %c0_0 = arith.constant 0 : index
    %0 = vector.load %arg0[%c0, %c0_0] : memref<8x128xi32, #tpu.memory_space<vmem>>, vector<8x128xi32>
    %c1_i32 = arith.constant 1 : i32
    %1 = tpu.dynamic_rotate %0 by %c1_i32 dim 1 : vector<8x128xi32>, i32 -> vector<8x128xi32>
    %c0_1 = arith.constant 0 : index
    %c0_2 = arith.constant 0 : index
    %2 = vector.load %arg1[%c0_1, %c0_2] : memref<8x128xi32, #tpu.memory_space<vmem>>, vector<8x128xi32>
    tpu.vector_store %arg1[%c0_1, %c0_2], %1 {strides = array<i32>} : memref<8x128xi32, #tpu.memory_space<vmem>>, vector<8x128xi32>,
    return
  }
}

module attributes {stable_mosaic.version = 11 : i64} {
  func.func @geneo_mlp_kernel(%arg0: i32, %arg1: memref<8x1024xf32, #tpu.memory_space<vmem>>, %arg2: memref<1x1024xf32, #tpu.memory_space<vmem>>, %arg3: memref<4x9xf32, #tpu.memory_space<smem>>, %arg4: memref<4xf32, #tpu.memory_space<smem>>, %arg5: memref<1xf32, #tpu.memory_space<smem>>, %arg6: memref<1024x128xf32, #tpu.memory_space<vmem>>, %arg7: memref<1x128xf32, #tpu.memory_space<vmem>>, %arg8: memref<8x128xf32, #tpu.memory_space<vmem>>, %arg9: memref<8x1024xf32, #tpu.memory_space<vmem>>) attributes {dimension_semantics = [#tpu.dimension_semantics<parallel>], iteration_bounds = array<i64: 1>, scalar_prefetch = 0 : i64, scratch_operands = 1 : i64, tpu.core_type = #tpu.core_type<tc>, window_params = [{transform_indices = @transform_0, window_bounds = array<i64: 8, 1024>}, {pipeline_mode = #tpu.pipeline_mode<synchronous>, transform_indices = @transform_1, window_bounds = array<i64: 1, 1024>}, {transform_indices = @transform_2, window_bounds = array<i64: 4, 9>}, {transform_indices = @transform_3, window_bounds = array<i64: 4>}, {transform_indices = @transform_4, window_bounds = array<i64: 1>}, {pipeline_mode = #tpu.pipeline_mode<synchronous>, transform_indices = @transform_5, window_bounds = array<i64: 1024, 128>}, {pipeline_mode = #tpu.pipeline_mode<synchronous>, transform_indices = @transform_6, window_bounds = array<i64: 1, 128>}, {transform_indices = @transform_7, window_bounds = array<i64: 8, 128>}]} {
    %c0_i32 = arith.constant 0 : i32
    %c1_i32 = arith.constant 1 : i32
    %0 = arith.muli %c0_i32, %c1_i32 : i32
    %c0_i32_0 = arith.constant 0 : i32
    %1 = arith.addi %c0_i32_0, %0 : i32
    %c8_i32 = arith.constant 8 : i32
    %2 = arith.muli %1, %c8_i32 : i32
    %3 = tpu.assume_multiple %2, 8 : i32
    %4 = arith.index_cast %3 : i32 to index
    %c0 = arith.constant 0 : index
    %5 = vector.load %arg1[%4, %c0] : memref<8x1024xf32, #tpu.memory_space<vmem>>, vector<8x1024xf32>
    %c0_1 = arith.constant 0 : index
    %c0_2 = arith.constant 0 : index
    %6 = vector.load %arg2[%c0_1, %c0_2] : memref<1x1024xf32, #tpu.memory_space<vmem>>, vector<1x1024xf32>
    %7 = tpu.iota {dimensions = array<i32: 1>} : vector<8x1024xi32>
    %cst = arith.constant 0.000000e+00 : f32
    %8 = vector.broadcast %cst : f32 to vector<8x1024xf32>
    %cst_3 = arith.constant 0.000000e+00 : f32
    %9 = vector.broadcast %cst_3 : f32 to vector<8x1024xf32>
    %cst_4 = arith.constant 0.000000e+00 : f32
    %10 = vector.broadcast %cst_4 : f32 to vector<8x1024xf32>
    %cst_5 = arith.constant 0.000000e+00 : f32
    %11 = vector.broadcast %cst_5 : f32 to vector<8x1024xf32>
    %c31_i32 = arith.constant 31 : i32
    %12 = tpu.dynamic_rotate %5 by %c31_i32 dim 1 : vector<8x1024xf32>, i32 -> vector<8x1024xf32>
    %c0_6 = arith.constant 0 : index
    %c0_7 = arith.constant 0 : index
    %13 = memref.load %arg3[%c0_6, %c0_7] : memref<4x9xf32, #tpu.memory_space<smem>>
    %14 = vector.broadcast %13 : f32 to vector<8x1024xf32>
    %15 = arith.subf %12, %14 : vector<8x1024xf32>
    %16 = math.absf %15 : vector<8x1024xf32>
    %17 = arith.addf %8, %16 : vector<8x1024xf32>
    %c1 = arith.constant 1 : index
    %c0_8 = arith.constant 0 : index
    %18 = memref.load %arg3[%c1, %c0_8] : memref<4x9xf32, #tpu.memory_space<smem>>
    %19 = vector.broadcast %18 : f32 to vector<8x1024xf32>
    %20 = arith.subf %12, %19 : vector<8x1024xf32>
    %21 = math.absf %20 : vector<8x1024xf32>
    %22 = arith.addf %9, %21 : vector<8x1024xf32>
    %c2 = arith.constant 2 : index
    %c0_9 = arith.constant 0 : index
    %23 = memref.load %arg3[%c2, %c0_9] : memref<4x9xf32, #tpu.memory_space<smem>>
    %24 = vector.broadcast %23 : f32 to vector<8x1024xf32>
    %25 = arith.subf %12, %24 : vector<8x1024xf32>
    %26 = math.absf %25 : vector<8x1024xf32>
    %27 = arith.addf %10, %26 : vector<8x1024xf32>
    %c3 = arith.constant 3 : index
    %c0_10 = arith.constant 0 : index
    %28 = memref.load %arg3[%c3, %c0_10] : memref<4x9xf32, #tpu.memory_space<smem>>
    %29 = vector.broadcast %28 : f32 to vector<8x1024xf32>
    %30 = arith.subf %12, %29 : vector<8x1024xf32>
    %31 = math.absf %30 : vector<8x1024xf32>
    %32 = arith.addf %11, %31 : vector<8x1024xf32>
    %c30_i32 = arith.constant 30 : i32
    %33 = tpu.dynamic_rotate %5 by %c30_i32 dim 1 : vector<8x1024xf32>, i32 -> vector<8x1024xf32>
    %c0_11 = arith.constant 0 : index
    %c1_12 = arith.constant 1 : index
    %34 = memref.load %arg3[%c0_11, %c1_12] : memref<4x9xf32, #tpu.memory_space<smem>>
    %35 = vector.broadcast %34 : f32 to vector<8x1024xf32>
    %36 = arith.subf %33, %35 : vector<8x1024xf32>
    %37 = math.absf %36 : vector<8x1024xf32>
    %38 = arith.addf %17, %37 : vector<8x1024xf32>
    %c1_13 = arith.constant 1 : index
    %c1_14 = arith.constant 1 : index
    %39 = memref.load %arg3[%c1_13, %c1_14] : memref<4x9xf32, #tpu.memory_space<smem>>
    %40 = vector.broadcast %39 : f32 to vector<8x1024xf32>
    %41 = arith.subf %33, %40 : vector<8x1024xf32>
    %42 = math.absf %41 : vector<8x1024xf32>
    %43 = arith.addf %22, %42 : vector<8x1024xf32>
    %c2_15 = arith.constant 2 : index
    %c1_16 = arith.constant 1 : index
    %44 = memref.load %arg3[%c2_15, %c1_16] : memref<4x9xf32, #tpu.memory_space<smem>>
    %45 = vector.broadcast %44 : f32 to vector<8x1024xf32>
    %46 = arith.subf %33, %45 : vector<8x1024xf32>
    %47 = math.absf %46 : vector<8x1024xf32>
    %48 = arith.addf %27, %47 : vector<8x1024xf32>
    %c3_17 = arith.constant 3 : index
    %c1_18 = arith.constant 1 : index
    %49 = memref.load %arg3[%c3_17, %c1_18] : memref<4x9xf32, #tpu.memory_space<smem>>
    %50 = vector.broadcast %49 : f32 to vector<8x1024xf32>
    %51 = arith.subf %33, %50 : vector<8x1024xf32>
    %52 = math.absf %51 : vector<8x1024xf32>
    %53 = arith.addf %32, %52 : vector<8x1024xf32>
    %c29_i32 = arith.constant 29 : i32
    %54 = tpu.dynamic_rotate %5 by %c29_i32 dim 1 : vector<8x1024xf32>, i32 -> vector<8x1024xf32>
    %c0_19 = arith.constant 0 : index
    %c2_20 = arith.constant 2 : index
    %55 = memref.load %arg3[%c0_19, %c2_20] : memref<4x9xf32, #tpu.memory_space<smem>>
    %56 = vector.broadcast %55 : f32 to vector<8x1024xf32>
    %57 = arith.subf %54, %56 : vector<8x1024xf32>
    %58 = math.absf %57 : vector<8x1024xf32>
    %59 = arith.addf %38, %58 : vector<8x1024xf32>
    %c1_21 = arith.constant 1 : index
    %c2_22 = arith.constant 2 : index
    %60 = memref.load %arg3[%c1_21, %c2_22] : memref<4x9xf32, #tpu.memory_space<smem>>
    %61 = vector.broadcast %60 : f32 to vector<8x1024xf32>
    %62 = arith.subf %54, %61 : vector<8x1024xf32>
    %63 = math.absf %62 : vector<8x1024xf32>
    %64 = arith.addf %43, %63 : vector<8x1024xf32>
    %c2_23 = arith.constant 2 : index
    %c2_24 = arith.constant 2 : index
    %65 = memref.load %arg3[%c2_23, %c2_24] : memref<4x9xf32, #tpu.memory_space<smem>>
    %66 = vector.broadcast %65 : f32 to vector<8x1024xf32>
    %67 = arith.subf %54, %66 : vector<8x1024xf32>
    %68 = math.absf %67 : vector<8x1024xf32>
    %69 = arith.addf %48, %68 : vector<8x1024xf32>
    %c3_25 = arith.constant 3 : index
    %c2_26 = arith.constant 2 : index
    %70 = memref.load %arg3[%c3_25, %c2_26] : memref<4x9xf32, #tpu.memory_space<smem>>
    %71 = vector.broadcast %70 : f32 to vector<8x1024xf32>
    %72 = arith.subf %54, %71 : vector<8x1024xf32>
    %73 = math.absf %72 : vector<8x1024xf32>
    %74 = arith.addf %53, %73 : vector<8x1024xf32>
    %c1_i32_27 = arith.constant 1 : i32
    %75 = tpu.dynamic_rotate %5 by %c1_i32_27 dim 1 : vector<8x1024xf32>, i32 -> vector<8x1024xf32>
    %c0_28 = arith.constant 0 : index
    %c3_29 = arith.constant 3 : index
    %76 = memref.load %arg3[%c0_28, %c3_29] : memref<4x9xf32, #tpu.memory_space<smem>>
    %77 = vector.broadcast %76 : f32 to vector<8x1024xf32>
    %78 = arith.subf %75, %77 : vector<8x1024xf32>
    %79 = math.absf %78 : vector<8x1024xf32>
    %80 = arith.addf %59, %79 : vector<8x1024xf32>
    %c1_30 = arith.constant 1 : index
    %c3_31 = arith.constant 3 : index
    %81 = memref.load %arg3[%c1_30, %c3_31] : memref<4x9xf32, #tpu.memory_space<smem>>
    %82 = vector.broadcast %81 : f32 to vector<8x1024xf32>
    %83 = arith.subf %75, %82 : vector<8x1024xf32>
    %84 = math.absf %83 : vector<8x1024xf32>
    %85 = arith.addf %64, %84 : vector<8x1024xf32>
    %c2_32 = arith.constant 2 : index
    %c3_33 = arith.constant 3 : index
    %86 = memref.load %arg3[%c2_32, %c3_33] : memref<4x9xf32, #tpu.memory_space<smem>>
    %87 = vector.broadcast %86 : f32 to vector<8x1024xf32>
    %88 = arith.subf %75, %87 : vector<8x1024xf32>
    %89 = math.absf %88 : vector<8x1024xf32>
    %90 = arith.addf %69, %89 : vector<8x1024xf32>
    %c3_34 = arith.constant 3 : index
    %c3_35 = arith.constant 3 : index
    %91 = memref.load %arg3[%c3_34, %c3_35] : memref<4x9xf32, #tpu.memory_space<smem>>
    %92 = vector.broadcast %91 : f32 to vector<8x1024xf32>
    %93 = arith.subf %75, %92 : vector<8x1024xf32>
    %94 = math.absf %93 : vector<8x1024xf32>
    %95 = arith.addf %74, %94 : vector<8x1024xf32>
    %c0_36 = arith.constant 0 : index
    %c4 = arith.constant 4 : index
    %96 = memref.load %arg3[%c0_36, %c4] : memref<4x9xf32, #tpu.memory_space<smem>>
    %97 = vector.broadcast %96 : f32 to vector<8x1024xf32>
    %98 = arith.subf %5, %97 : vector<8x1024xf32>
    %99 = math.absf %98 : vector<8x1024xf32>
    %100 = arith.addf %80, %99 : vector<8x1024xf32>
    %c1_37 = arith.constant 1 : index
    %c4_38 = arith.constant 4 : index
    %101 = memref.load %arg3[%c1_37, %c4_38] : memref<4x9xf32, #tpu.memory_space<smem>>
    %102 = vector.broadcast %101 : f32 to vector<8x1024xf32>
    %103 = arith.subf %5, %102 : vector<8x1024xf32>
    %104 = math.absf %103 : vector<8x1024xf32>
    %105 = arith.addf %85, %104 : vector<8x1024xf32>
    %c2_39 = arith.constant 2 : index
    %c4_40 = arith.constant 4 : index
    %106 = memref.load %arg3[%c2_39, %c4_40] : memref<4x9xf32, #tpu.memory_space<smem>>
    %107 = vector.broadcast %106 : f32 to vector<8x1024xf32>
    %108 = arith.subf %5, %107 : vector<8x1024xf32>
    %109 = math.absf %108 : vector<8x1024xf32>
    %110 = arith.addf %90, %109 : vector<8x1024xf32>
    %c3_41 = arith.constant 3 : index
    %c4_42 = arith.constant 4 : index
    %111 = memref.load %arg3[%c3_41, %c4_42] : memref<4x9xf32, #tpu.memory_space<smem>>
    %112 = vector.broadcast %111 : f32 to vector<8x1024xf32>
    %113 = arith.subf %5, %112 : vector<8x1024xf32>
    %114 = math.absf %113 : vector<8x1024xf32>
    %115 = arith.addf %95, %114 : vector<8x1024xf32>
    %c1023_i32 = arith.constant 1023 : i32
    %116 = tpu.dynamic_rotate %5 by %c1023_i32 dim 1 : vector<8x1024xf32>, i32 -> vector<8x1024xf32>
    %c0_43 = arith.constant 0 : index
    %c5 = arith.constant 5 : index
    %117 = memref.load %arg3[%c0_43, %c5] : memref<4x9xf32, #tpu.memory_space<smem>>
    %118 = vector.broadcast %117 : f32 to vector<8x1024xf32>
    %119 = arith.subf %116, %118 : vector<8x1024xf32>
    %120 = math.absf %119 : vector<8x1024xf32>
    %121 = arith.addf %100, %120 : vector<8x1024xf32>
    %c1_44 = arith.constant 1 : index
    %c5_45 = arith.constant 5 : index
    %122 = memref.load %arg3[%c1_44, %c5_45] : memref<4x9xf32, #tpu.memory_space<smem>>
    %123 = vector.broadcast %122 : f32 to vector<8x1024xf32>
    %124 = arith.subf %116, %123 : vector<8x1024xf32>
    %125 = math.absf %124 : vector<8x1024xf32>
    %126 = arith.addf %105, %125 : vector<8x1024xf32>
    %c2_46 = arith.constant 2 : index
    %c5_47 = arith.constant 5 : index
    %127 = memref.load %arg3[%c2_46, %c5_47] : memref<4x9xf32, #tpu.memory_space<smem>>
    %128 = vector.broadcast %127 : f32 to vector<8x1024xf32>
    %129 = arith.subf %116, %128 : vector<8x1024xf32>
    %130 = math.absf %129 : vector<8x1024xf32>
    %131 = arith.addf %110, %130 : vector<8x1024xf32>
    %c3_48 = arith.constant 3 : index
    %c5_49 = arith.constant 5 : index
    %132 = memref.load %arg3[%c3_48, %c5_49] : memref<4x9xf32, #tpu.memory_space<smem>>
    %133 = vector.broadcast %132 : f32 to vector<8x1024xf32>
    %134 = arith.subf %116, %133 : vector<8x1024xf32>
    %135 = math.absf %134 : vector<8x1024xf32>
    %136 = arith.addf %115, %135 : vector<8x1024xf32>
    %c995_i32 = arith.constant 995 : i32
    %137 = tpu.dynamic_rotate %5 by %c995_i32 dim 1 : vector<8x1024xf32>, i32 -> vector<8x1024xf32>
    %c0_50 = arith.constant 0 : index
    %c6 = arith.constant 6 : index
    %138 = memref.load %arg3[%c0_50, %c6] : memref<4x9xf32, #tpu.memory_space<smem>>
    %139 = vector.broadcast %138 : f32 to vector<8x1024xf32>
    %140 = arith.subf %137, %139 : vector<8x1024xf32>
    %141 = math.absf %140 : vector<8x1024xf32>
    %142 = arith.addf %121, %141 : vector<8x1024xf32>
    %c1_51 = arith.constant 1 : index
    %c6_52 = arith.constant 6 : index
    %143 = memref.load %arg3[%c1_51, %c6_52] : memref<4x9xf32, #tpu.memory_space<smem>>
    %144 = vector.broadcast %143 : f32 to vector<8x1024xf32>
    %145 = arith.subf %137, %144 : vector<8x1024xf32>
    %146 = math.absf %145 : vector<8x1024xf32>
    %147 = arith.addf %126, %146 : vector<8x1024xf32>
    %c2_53 = arith.constant 2 : index
    %c6_54 = arith.constant 6 : index
    %148 = memref.load %arg3[%c2_53, %c6_54] : memref<4x9xf32, #tpu.memory_space<smem>>
    %149 = vector.broadcast %148 : f32 to vector<8x1024xf32>
    %150 = arith.subf %137, %149 : vector<8x1024xf32>
    %151 = math.absf %150 : vector<8x1024xf32>
    %152 = arith.addf %131, %151 : vector<8x1024xf32>
    %c3_55 = arith.constant 3 : index
    %c6_56 = arith.constant 6 : index
    %153 = memref.load %arg3[%c3_55, %c6_56] : memref<4x9xf32, #tpu.memory_space<smem>>
    %154 = vector.broadcast %153 : f32 to vector<8x1024xf32>
    %155 = arith.subf %137, %154 : vector<8x1024xf32>
    %156 = math.absf %155 : vector<8x1024xf32>
    %157 = arith.addf %136, %156 : vector<8x1024xf32>
    %c994_i32 = arith.constant 994 : i32
    %158 = tpu.dynamic_rotate %5 by %c994_i32 dim 1 : vector<8x1024xf32>, i32 -> vector<8x1024xf32>
    %c0_57 = arith.constant 0 : index
    %c7 = arith.constant 7 : index
    %159 = memref.load %arg3[%c0_57, %c7] : memref<4x9xf32, #tpu.memory_space<smem>>
    %160 = vector.broadcast %159 : f32 to vector<8x1024xf32>
    %161 = arith.subf %158, %160 : vector<8x1024xf32>
    %162 = math.absf %161 : vector<8x1024xf32>
    %163 = arith.addf %142, %162 : vector<8x1024xf32>
    %c1_58 = arith.constant 1 : index
    %c7_59 = arith.constant 7 : index
    %164 = memref.load %arg3[%c1_58, %c7_59] : memref<4x9xf32, #tpu.memory_space<smem>>
    %165 = vector.broadcast %164 : f32 to vector<8x1024xf32>
    %166 = arith.subf %158, %165 : vector<8x1024xf32>
    %167 = math.absf %166 : vector<8x1024xf32>
    %168 = arith.addf %147, %167 : vector<8x1024xf32>
    %c2_60 = arith.constant 2 : index
    %c7_61 = arith.constant 7 : index
    %169 = memref.load %arg3[%c2_60, %c7_61] : memref<4x9xf32, #tpu.memory_space<smem>>
    %170 = vector.broadcast %169 : f32 to vector<8x1024xf32>
    %171 = arith.subf %158, %170 : vector<8x1024xf32>
    %172 = math.absf %171 : vector<8x1024xf32>
    %173 = arith.addf %152, %172 : vector<8x1024xf32>
    %c3_62 = arith.constant 3 : index
    %c7_63 = arith.constant 7 : index
    %174 = memref.load %arg3[%c3_62, %c7_63] : memref<4x9xf32, #tpu.memory_space<smem>>
    %175 = vector.broadcast %174 : f32 to vector<8x1024xf32>
    %176 = arith.subf %158, %175 : vector<8x1024xf32>
    %177 = math.absf %176 : vector<8x1024xf32>
    %178 = arith.addf %157, %177 : vector<8x1024xf32>
    %c993_i32 = arith.constant 993 : i32
    %179 = tpu.dynamic_rotate %5 by %c993_i32 dim 1 : vector<8x1024xf32>, i32 -> vector<8x1024xf32>
    %c0_64 = arith.constant 0 : index
    %c8 = arith.constant 8 : index
    %180 = memref.load %arg3[%c0_64, %c8] : memref<4x9xf32, #tpu.memory_space<smem>>
    %181 = vector.broadcast %180 : f32 to vector<8x1024xf32>
    %182 = arith.subf %179, %181 : vector<8x1024xf32>
    %183 = math.absf %182 : vector<8x1024xf32>
    %184 = arith.addf %163, %183 : vector<8x1024xf32>
    %c1_65 = arith.constant 1 : index
    %c8_66 = arith.constant 8 : index
    %185 = memref.load %arg3[%c1_65, %c8_66] : memref<4x9xf32, #tpu.memory_space<smem>>
    %186 = vector.broadcast %185 : f32 to vector<8x1024xf32>
    %187 = arith.subf %179, %186 : vector<8x1024xf32>
    %188 = math.absf %187 : vector<8x1024xf32>
    %189 = arith.addf %168, %188 : vector<8x1024xf32>
    %c2_67 = arith.constant 2 : index
    %c8_68 = arith.constant 8 : index
    %190 = memref.load %arg3[%c2_67, %c8_68] : memref<4x9xf32, #tpu.memory_space<smem>>
    %191 = vector.broadcast %190 : f32 to vector<8x1024xf32>
    %192 = arith.subf %179, %191 : vector<8x1024xf32>
    %193 = math.absf %192 : vector<8x1024xf32>
    %194 = arith.addf %173, %193 : vector<8x1024xf32>
    %c3_69 = arith.constant 3 : index
    %c8_70 = arith.constant 8 : index
    %195 = memref.load %arg3[%c3_69, %c8_70] : memref<4x9xf32, #tpu.memory_space<smem>>
    %196 = vector.broadcast %195 : f32 to vector<8x1024xf32>
    %197 = arith.subf %179, %196 : vector<8x1024xf32>
    %198 = math.absf %197 : vector<8x1024xf32>
    %199 = arith.addf %178, %198 : vector<8x1024xf32>
    %cst_71 = arith.constant 0.000000e+00 : f32
    %200 = vector.broadcast %cst_71 : f32 to vector<8x1024xf32>
    %cst_72 = arith.constant 0.111111112 : f32
    %201 = vector.broadcast %cst_72 : f32 to vector<8x1024xf32>
    %202 = arith.mulf %184, %201 : vector<8x1024xf32>
    %cst_73 = arith.constant 1.000000e+00 : f32
    %203 = vector.broadcast %cst_73 : f32 to vector<8x1024xf32>
    %204 = arith.subf %203, %202 : vector<8x1024xf32>
    %205 = vector.broadcast %6 : vector<1x1024xf32> to vector<8x1024xf32>
    %206 = arith.addf %204, %205 : vector<8x1024xf32>
    %cst_74 = arith.constant dense<0xFF800000> : vector<8xf32>
    %207 = vector.multi_reduction <maximumf>, %206, %cst_74 [1] : vector<8x1024xf32> to vector<8xf32>
    %208 = vector.shape_cast %207 : vector<8xf32> to vector<8x1xf32>
    %209 = vector.broadcast %208 : vector<8x1xf32> to vector<8x1024xf32>
    %210 = arith.cmpf oeq, %206, %209 : vector<8x1024xf32>
    %c1024_i32 = arith.constant 1024 : i32
    %211 = vector.broadcast %c1024_i32 : i32 to vector<8x1024xi32>
    %212 = arith.select %210, %7, %211 : vector<8x1024xi1>, vector<8x1024xi32>
    %cst_75 = arith.constant dense<2147483647> : vector<8xi32>
    %213 = vector.multi_reduction <minsi>, %212, %cst_75 [1] : vector<8x1024xi32> to vector<8xi32>
    %214 = vector.shape_cast %213 : vector<8xi32> to vector<8x1xi32>
    %215 = vector.broadcast %214 : vector<8x1xi32> to vector<8x1024xi32>
    %216 = arith.cmpi eq, %7, %215 : vector<8x1024xi32>
    %cst_76 = arith.constant 0.000000e+00 : f32
    %217 = vector.broadcast %cst_76 : f32 to vector<8x1024xf32>
    %218 = arith.select %216, %204, %217 : vector<8x1024xi1>, vector<8x1024xf32>
    %c0_77 = arith.constant 0 : index
    %219 = memref.load %arg4[%c0_77] : memref<4xf32, #tpu.memory_space<smem>>
    %220 = vector.broadcast %219 : f32 to vector<8x1024xf32>
    %221 = arith.mulf %218, %220 : vector<8x1024xf32>
    %222 = arith.addf %200, %221 : vector<8x1024xf32>
    %cst_78 = arith.constant 0.111111112 : f32
    %223 = vector.broadcast %cst_78 : f32 to vector<8x1024xf32>
    %224 = arith.mulf %189, %223 : vector<8x1024xf32>
    %cst_79 = arith.constant 1.000000e+00 : f32
    %225 = vector.broadcast %cst_79 : f32 to vector<8x1024xf32>
    %226 = arith.subf %225, %224 : vector<8x1024xf32>
    %227 = vector.broadcast %6 : vector<1x1024xf32> to vector<8x1024xf32>
    %228 = arith.addf %226, %227 : vector<8x1024xf32>
    %cst_80 = arith.constant dense<0xFF800000> : vector<8xf32>
    %229 = vector.multi_reduction <maximumf>, %228, %cst_80 [1] : vector<8x1024xf32> to vector<8xf32>
    %230 = vector.shape_cast %229 : vector<8xf32> to vector<8x1xf32>
    %231 = vector.broadcast %230 : vector<8x1xf32> to vector<8x1024xf32>
    %232 = arith.cmpf oeq, %228, %231 : vector<8x1024xf32>
    %c1024_i32_81 = arith.constant 1024 : i32
    %233 = vector.broadcast %c1024_i32_81 : i32 to vector<8x1024xi32>
    %234 = arith.select %232, %7, %233 : vector<8x1024xi1>, vector<8x1024xi32>
    %cst_82 = arith.constant dense<2147483647> : vector<8xi32>
    %235 = vector.multi_reduction <minsi>, %234, %cst_82 [1] : vector<8x1024xi32> to vector<8xi32>
    %236 = vector.shape_cast %235 : vector<8xi32> to vector<8x1xi32>
    %237 = vector.broadcast %236 : vector<8x1xi32> to vector<8x1024xi32>
    %238 = arith.cmpi eq, %7, %237 : vector<8x1024xi32>
    %cst_83 = arith.constant 0.000000e+00 : f32
    %239 = vector.broadcast %cst_83 : f32 to vector<8x1024xf32>
    %240 = arith.select %238, %226, %239 : vector<8x1024xi1>, vector<8x1024xf32>
    %c1_84 = arith.constant 1 : index
    %241 = memref.load %arg4[%c1_84] : memref<4xf32, #tpu.memory_space<smem>>
    %242 = vector.broadcast %241 : f32 to vector<8x1024xf32>
    %243 = arith.mulf %240, %242 : vector<8x1024xf32>
    %244 = arith.addf %222, %243 : vector<8x1024xf32>
    %cst_85 = arith.constant 0.111111112 : f32
    %245 = vector.broadcast %cst_85 : f32 to vector<8x1024xf32>
    %246 = arith.mulf %194, %245 : vector<8x1024xf32>
    %cst_86 = arith.constant 1.000000e+00 : f32
    %247 = vector.broadcast %cst_86 : f32 to vector<8x1024xf32>
    %248 = arith.subf %247, %246 : vector<8x1024xf32>
    %249 = vector.broadcast %6 : vector<1x1024xf32> to vector<8x1024xf32>
    %250 = arith.addf %248, %249 : vector<8x1024xf32>
    %cst_87 = arith.constant dense<0xFF800000> : vector<8xf32>
    %251 = vector.multi_reduction <maximumf>, %250, %cst_87 [1] : vector<8x1024xf32> to vector<8xf32>
    %252 = vector.shape_cast %251 : vector<8xf32> to vector<8x1xf32>
    %253 = vector.broadcast %252 : vector<8x1xf32> to vector<8x1024xf32>
    %254 = arith.cmpf oeq, %250, %253 : vector<8x1024xf32>
    %c1024_i32_88 = arith.constant 1024 : i32
    %255 = vector.broadcast %c1024_i32_88 : i32 to vector<8x1024xi32>
    %256 = arith.select %254, %7, %255 : vector<8x1024xi1>, vector<8x1024xi32>
    %cst_89 = arith.constant dense<2147483647> : vector<8xi32>
    %257 = vector.multi_reduction <minsi>, %256, %cst_89 [1] : vector<8x1024xi32> to vector<8xi32>
    %258 = vector.shape_cast %257 : vector<8xi32> to vector<8x1xi32>
    %259 = vector.broadcast %258 : vector<8x1xi32> to vector<8x1024xi32>
    %260 = arith.cmpi eq, %7, %259 : vector<8x1024xi32>
    %cst_90 = arith.constant 0.000000e+00 : f32
    %261 = vector.broadcast %cst_90 : f32 to vector<8x1024xf32>
    %262 = arith.select %260, %248, %261 : vector<8x1024xi1>, vector<8x1024xf32>
    %c2_91 = arith.constant 2 : index
    %263 = memref.load %arg4[%c2_91] : memref<4xf32, #tpu.memory_space<smem>>
    %264 = vector.broadcast %263 : f32 to vector<8x1024xf32>
    %265 = arith.mulf %262, %264 : vector<8x1024xf32>
    %266 = arith.addf %244, %265 : vector<8x1024xf32>
    %cst_92 = arith.constant 0.111111112 : f32
    %267 = vector.broadcast %cst_92 : f32 to vector<8x1024xf32>
    %268 = arith.mulf %199, %267 : vector<8x1024xf32>
    %cst_93 = arith.constant 1.000000e+00 : f32
    %269 = vector.broadcast %cst_93 : f32 to vector<8x1024xf32>
    %270 = arith.subf %269, %268 : vector<8x1024xf32>
    %271 = vector.broadcast %6 : vector<1x1024xf32> to vector<8x1024xf32>
    %272 = arith.addf %270, %271 : vector<8x1024xf32>
    %cst_94 = arith.constant dense<0xFF800000> : vector<8xf32>
    %273 = vector.multi_reduction <maximumf>, %272, %cst_94 [1] : vector<8x1024xf32> to vector<8xf32>
    %274 = vector.shape_cast %273 : vector<8xf32> to vector<8x1xf32>
    %275 = vector.broadcast %274 : vector<8x1xf32> to vector<8x1024xf32>
    %276 = arith.cmpf oeq, %272, %275 : vector<8x1024xf32>
    %c1024_i32_95 = arith.constant 1024 : i32
    %277 = vector.broadcast %c1024_i32_95 : i32 to vector<8x1024xi32>
    %278 = arith.select %276, %7, %277 : vector<8x1024xi1>, vector<8x1024xi32>
    %cst_96 = arith.constant dense<2147483647> : vector<8xi32>
    %279 = vector.multi_reduction <minsi>, %278, %cst_96 [1] : vector<8x1024xi32> to vector<8xi32>
    %280 = vector.shape_cast %279 : vector<8xi32> to vector<8x1xi32>
    %281 = vector.broadcast %280 : vector<8x1xi32> to vector<8x1024xi32>
    %282 = arith.cmpi eq, %7, %281 : vector<8x1024xi32>
    %cst_97 = arith.constant 0.000000e+00 : f32
    %283 = vector.broadcast %cst_97 : f32 to vector<8x1024xf32>
    %284 = arith.select %282, %270, %283 : vector<8x1024xi1>, vector<8x1024xf32>
    %c3_98 = arith.constant 3 : index
    %285 = memref.load %arg4[%c3_98] : memref<4xf32, #tpu.memory_space<smem>>
    %286 = vector.broadcast %285 : f32 to vector<8x1024xf32>
    %287 = arith.mulf %284, %286 : vector<8x1024xf32>
    %288 = arith.addf %266, %287 : vector<8x1024xf32>
    %c0_99 = arith.constant 0 : index
    %289 = memref.load %arg5[%c0_99] : memref<1xf32, #tpu.memory_space<smem>>
    %290 = vector.broadcast %289 : f32 to vector<8x1024xf32>
    %291 = arith.addf %288, %290 : vector<8x1024xf32>
    %292 = arith.negf %291 : vector<8x1024xf32>
    %293 = math.exp %292 : vector<8x1024xf32>
    %cst_100 = arith.constant 1.000000e+00 : f32
    %294 = vector.broadcast %cst_100 : f32 to vector<8x1024xf32>
    %295 = arith.addf %294, %293 : vector<8x1024xf32>
    %296 = arith.divf %294, %295 : vector<8x1024xf32>
    %297 = arith.index_cast %3 : i32 to index
    %c0_101 = arith.constant 0 : index
    %298 = vector.load %arg9[%297, %c0_101] : memref<8x1024xf32, #tpu.memory_space<vmem>>, vector<8x1024xf32>
    tpu.vector_store %arg9[%297, %c0_101], %296 {strides = array<i32>} : memref<8x1024xf32, #tpu.memory_space<vmem>>, vector<8x1024xf32>,
    %c1_i32_102 = arith.constant 1 : i32
    %c0_103 = arith.constant 0 : index
    %c0_104 = arith.constant 0 : index
    %299 = vector.load %arg9[%c0_103, %c0_104] : memref<8x1024xf32, #tpu.memory_space<vmem>>, vector<8x1024xf32>
    %c0_105 = arith.constant 0 : index
    %c0_106 = arith.constant 0 : index
    %300 = vector.load %arg6[%c0_105, %c0_106] : memref<1024x128xf32, #tpu.memory_space<vmem>>, vector<1024x128xf32>
    %cst_107 = arith.constant dense<0.000000e+00> : vector<8x128xf32>
    %301 = tpu.matmul %299, %300, %cst_107 {dimension_numbers = #tpu.dot_dimension_numbers<[1], [0], [0], [1], [0, 0, 1, 1], [], []>} : vector<8x1024xf32>, vector<1024x128xf32>, vector<8x128xf32> -> vector<8x128xf32>
    %c0_108 = arith.constant 0 : index
    %c0_109 = arith.constant 0 : index
    %302 = vector.load %arg7[%c0_108, %c0_109] : memref<1x128xf32, #tpu.memory_space<vmem>>, vector<1x128xf32>
    %303 = vector.broadcast %302 : vector<1x128xf32> to vector<8x128xf32>
    %304 = arith.addf %301, %303 : vector<8x128xf32>
    %305 = arith.negf %304 : vector<8x128xf32>
    %306 = math.exp %305 : vector<8x128xf32>
    %cst_110 = arith.constant 1.000000e+00 : f32
    %307 = vector.broadcast %cst_110 : f32 to vector<8x128xf32>
    %308 = arith.addf %307, %306 : vector<8x128xf32>
    %309 = arith.divf %307, %308 : vector<8x128xf32>
    %c0_111 = arith.constant 0 : index
    %c0_112 = arith.constant 0 : index
    %310 = vector.load %arg8[%c0_111, %c0_112] : memref<8x128xf32, #tpu.memory_space<vmem>>, vector<8x128xf32>
    tpu.vector_store %arg8[%c0_111, %c0_112], %309 {strides = array<i32>} : memref<8x128xf32, #tpu.memory_space<vmem>>, vector<8x128xf32>,
    return
  }
  func.func @transform_0(%arg0: i32) -> (i32, i32) {
    %c0_i32 = arith.constant 0 : i32
    %c0_i32_0 = arith.constant 0 : i32
    return %arg0, %c0_i32 : i32, i32
  }
  func.func @transform_1(%arg0: i32) -> (i32, i32) {
    %c0_i32 = arith.constant 0 : i32
    %c0_i32_0 = arith.constant 0 : i32
    %c0_i32_1 = arith.constant 0 : i32
    return %c0_i32, %c0_i32_0 : i32, i32
  }
  func.func @transform_2(%arg0: i32) -> (i32, i32) {
    %c0_i32 = arith.constant 0 : i32
    %c0_i32_0 = arith.constant 0 : i32
    %c0_i32_1 = arith.constant 0 : i32
    return %c0_i32, %c0_i32_0 : i32, i32
  }
  func.func @transform_3(%arg0: i32) -> i32 {
    %c0_i32 = arith.constant 0 : i32
    %c0_i32_0 = arith.constant 0 : i32
    return %c0_i32 : i32
  }
  func.func @transform_4(%arg0: i32) -> i32 {
    %c0_i32 = arith.constant 0 : i32
    %c0_i32_0 = arith.constant 0 : i32
    return %c0_i32 : i32
  }
  func.func @transform_5(%arg0: i32) -> (i32, i32) {
    %c0_i32 = arith.constant 0 : i32
    %c0_i32_0 = arith.constant 0 : i32
    %c0_i32_1 = arith.constant 0 : i32
    return %c0_i32, %c0_i32_0 : i32, i32
  }
  func.func @transform_6(%arg0: i32) -> (i32, i32) {
    %c0_i32 = arith.constant 0 : i32
    %c0_i32_0 = arith.constant 0 : i32
    %c0_i32_1 = arith.constant 0 : i32
    return %c0_i32, %c0_i32_0 : i32, i32
  }
  func.func @transform_7(%arg0: i32) -> (i32, i32) {
    %c0_i32 = arith.constant 0 : i32
    %c0_i32_0 = arith.constant 0 : i32
    return %arg0, %c0_i32 : i32, i32
  }
}

</mosaic_0001>

<bundles_post_ra>
// kernel: tpu_custom_call.1
= control target key start
LH: loop header
LB: loop body
LE: loop exit
PB: predicated region body
PF: predicated region fallthrough
CT: control target
= control target key end

     0   :  { %6 = vsyncpa [#allocation3], 0  ;;  %s106_s0 = inlined_call_operand.hbm [shape: s32[8,128], index: 0, kind: input, shape index: {}]   ;;  %s107_s1 = inlined_call_operand.hbm [shape: s32[8,128], index: 1, kind: output, shape index: {}]  }
   0x1   :  { %7 = vsyncpa [#allocation4], 0  ;;  %s87_s6 = smov [#allocation2]  }
   0x2   :  { %s14_s7 = sshll.u32 %s87_s6, 4  ;;  %s15_s7 = int_to_ptr.vmem [resolvable:$true] %s14_s7 }
   0x3   :  { %s51_s8 = scalar_lea.vmem %s15_s7, 128  ;;  %p56_p1 = scmp.lt.s32.totalorder %s15_s7, %s15_s7 }
   0x4   :  { %p52_p0 = scmp.ne.s32.totalorder %s15_s7, %s51_s8  ;;  %p57_p2 = scmp.lt.s32.totalorder %s51_s8, %s51_s8 }
   0x6   :  { %p58_p3 = por %p57_p2, %p56_p1 }
   0x8   :  { %p59_p4 = pnand %p58_p3, %p52_p0 }
   0xa   :  { %62 = shalt.err (!%p59_p4)
}
   0xb   :  { %17 = dma.hbm_to_vmem [thread:$0]  %s106_s0, 128, %s15_s7, [#allocation3]  }
   0xc   :  { %83 = dma.done.wait [#allocation3], 128  }
   0xd   :  { %84 = vsyncadd [#allocation3], 4294967168  ;;  %v21_v0 = vld [vmem:[#allocation2] sm:$0xff]  ;;  %s88_s11 = smov 1   ;;  %s89_s12 = smov [#allocation5]  }
   0xe   :  { %22 = vrot.lane.b32.xlu0 %v21_v0, %s88_s11  ;;  %s31_s13 = sshll.u32 %s89_s12, 4  ;;  %s32_s13 = int_to_ptr.vmem [resolvable:$true] %s31_s13 }
   0xf   :  { %s63_s14 = scalar_lea.vmem %s32_s13, 128  ;;  %p68_p6 = scmp.lt.s32.totalorder %s32_s13, %s32_s13 }
  0x10   :  { %p64_p5 = scmp.ne.s32.totalorder %s32_s13, %s63_s14  ;;  %p69_p7 = scmp.lt.s32.totalorder %s63_s14, %s63_s14 }
  0x12   :  { %p70_p8 = por %p69_p7, %p68_p6 }
  0x14   :  { %p71_p9 = pnand %p70_p8, %p64_p5 }
  0x80   :  { %v23_v1 = vpop.permute.xlu0 %22 }
  0x81   :  { %24 = vst [vmem:[#allocation5] sm:$0xff] %v23_v1 }
  0x82   :  { %74 = shalt.err (!%p71_p9)
}
  0x83   :  { %34 = dma.vmem_to_hbm [thread:$0]  %s32_s13, 128, %s107_s1, [#allocation4]  }
  0x84   :  { %85 = dma.done.wait [#allocation4], 128  }
  0x85   :  { %86 = vsyncadd [#allocation4], 4294967168 }
  0x86   :  { %38 = vsyncpa [#allocation3], 1 }
  0x87   :  { %39 = vsyncpa [#allocation4], 1 }

// kernel: geneo_mlp_forward.1
= control target key start
LH: loop header
LB: loop body
LE: loop exit
PB: predicated region body
PF: predicated region fallthrough
CT: control target
= control target key end

     0   :  { %13 = vsyncpa [#allocation5], 0  ;;  %s5040_s0 = inlined_call_operand.vmem [shape: f32[8,1024], index: 0, kind: input, shape index: {}]   ;;  %s5041_s1 = inlined_call_operand.vmem [shape: f32[1,1024], index: 1, kind: input, shape index: {}]   ;;  %s5042_s2 = inlined_call_operand.vmem [shape: f32[4,9], index: 2, kind: input, shape index: {}]   ;;  %s5043_s3 = inlined_call_operand.vmem [shape: f32[4], index: 3, kind: input, shape index: {}]   ;;  %s5044_s4 = inlined_call_operand.<no memory space> [shape: f32[1], index: 4, kind: input, shape index: {}]   ;;  %s5045_s5 = inlined_call_operand.vmem [shape: f32[1024,128], index: 5, kind: input, shape index: {}]   ;;  %s5046_s6 = inlined_call_operand.vmem [shape: f32[1,128], index: 6, kind: input, shape index: {}]   ;;  %s5047_s7 = inlined_call_operand.vmem [shape: f32[8,128], index: 7, kind: output, shape index: {}]  }
   0x1   :  { %s25_s26 = sshll.u32 %s5042_s2, 4  ;;  %s26_s26 = int_to_ptr.vmem [resolvable:$true] %s25_s26 }
   0x2   :  { %14 = vsyncpa [#allocation7], 0  ;;  %s35_s29 = sshll.u32 %s5043_s3, 4  ;;  %s2432_s30 = scalar_lea.vmem %s26_s26, 64  ;;  %s36_s29 = int_to_ptr.vmem [resolvable:$true] %s35_s29 }
   0x3   :  { %p2433_p0 = scmp.ne.s32.totalorder %s26_s26, %s2432_s30  ;;  %p2437_p1 = scmp.lt.s32.totalorder %s26_s26, %s26_s26 }
   0x4   :  { %p2438_p2 = scmp.lt.s32.totalorder %s2432_s30, %s2432_s30 }
   0x6   :  { %p2439_p3 = por %p2438_p2, %p2437_p1 }
   0x8   :  { %p2440_p4 = pnand %p2439_p3, %p2433_p0 }
   0xa   :  { %2443 = shalt.err (!%p2440_p4)
}
   0xb   :  { %s2460_s8 = smov [#allocation4]   ;;  %s2444_s9 = scalar_lea.vmem %s36_s29, 16 }
   0xc   :  { %28 = dma.vmem_to_smem %s26_s26, 64, %s2460_s8, [#allocation5]  }
   0xd   :  { %p2445_p5 = scmp.ne.s32.totalorder %s36_s29, %s2444_s9  ;;  %p2449_p6 = scmp.lt.s32.totalorder %s36_s29, %s36_s29 }
   0xe   :  { %p2450_p7 = scmp.lt.s32.totalorder %s2444_s9, %s2444_s9 }
  0x10   :  { %p2451_p8 = por %p2450_p7, %p2449_p6 }
  0x12   :  { %p2452_p9 = pnand %p2451_p8, %p2445_p5 }
  0x14   :  { %2455 = shalt.err (!%p2452_p9)
}
  0x15   :  { %s2461_s2 = smov [#allocation6]  }
  0x16   :  { %38 = dma.vmem_to_smem %s36_s29, 16, %s2461_s2, [#allocation7]  }
  0x17   :  { %2456 = dma.done.wait [#allocation5], 64  }
  0x18   :  { %2457 = vsyncadd [#allocation5], 4294967232 }
  0x19   :  { %2458 = dma.done.wait [#allocation7], 16  }
  0x1a   :  { %2459 = vsyncadd [#allocation7], 4294967280 }
  0x1b   :  { %51 = sfence }
  0x1c   :  { %v2519_v0 = vld [vmem:[%s5040_s0 + $0x10] sm:$0xff]  ;;  %v2524_v1 = vld [vmem:[%s5040_s0] sm:$0xff]  ;;  %s2462_s13 = smov 31   ;;  %v2531_v2 = vld [vmem:[%s5040_s0 + $0x18] sm:$0xff]  ;;  %s2463_s26 = smov 30   ;;  %v5048_v8 = vlaneseq }
  0x1d   :  { %77 = vrot.lane.b32.xlu1 %v2519_v0, %s2462_s13  ;;  %73 = vrot.lane.b32.xlu0 %v2524_v1, %s2462_s13  ;;  %v2536_v3 = vld [vmem:[%s5040_s0 + $0x8] sm:$0xff]  ;;  %v2548_v5 = vld [vmem:[%s5040_s0 + $0x20] sm:$0xff]  ;;  %s2465_s27 = smov 1   ;;  %s2466_s28 = smov 127  }
  0x1e   :  { %v2543_v4 = vld [vmem:[%s5040_s0 + $0x28] sm:$0xff]  ;;  %v2555_v6 = vld [vmem:[%s5040_s0 + $0x38] sm:$0xff]  ;;  %v2560_v7 = vld [vmem:[%s5040_s0 + $0x30] sm:$0xff]  ;;  %s2464_s0 = smov 29   ;;  %s2596_s29 = sld [smem:[#allocation4]]  ;;  %v2674_v19 = vand.u32 127, %v5048_v8 }
  0x1f   :  { %5090 = vst [vmem:[#allocation10_spill] sm:$0xff] %v2560_v7  ;;  %s2598_s30 = sld [smem:[#allocation4 + $0x80]]  ;;  %s2467_s9 = smov 99  }
  0x20   :  { %s2600_s8 = sld [smem:[#allocation4 + $0x100]]  ;;  %s2468_s24 = smov 98   ;;  %vm89_vm0 = vcmp.lt.s32.totalorder %v2674_v19, 31  ;;  %vm218_vm1 = vcmp.lt.s32.totalorder %v2674_v19, 30  ;;  %vm347_vm2 = vcmp.lt.s32.totalorder %v2674_v19, 29  ;;  %vm476_vm3 = vcmp.lt.s32.totalorder %v2674_v19, 1 }
  0x21   :  { %79 = vrot.lane.b32.xlu1 %v2531_v2, %s2462_s13  ;;  %75 = vrot.lane.b32.xlu0 %v2536_v3, %s2462_s13  ;;  %s2604_s2 = sld [smem:[#allocation4 + $0x180]]  ;;  %vm709_vm4 = vcmp.lt.s32.totalorder %v2674_v19, 127  ;;  %vm838_vm5 = vcmp.lt.s32.totalorder %v2674_v19, 99  ;;  %vm967_vm6 = vcmp.lt.s32.totalorder %v2674_v19, 98  ;;  %vm1096_vm7 = vcmp.lt.s32.totalorder %v2674_v19, 97 }
  0x22   :  { %s2606_s3 = sld [smem:[#allocation4 + $0x1]] }
  0x23   :  { %s2608_s10 = sld [smem:[#allocation4 + $0x81]] }
  0x24   :  { %s2610_s11 = sld [smem:[#allocation4 + $0x101]]  ;;  %v2639_v9 = vstv %s2596_s29  ;;  %s2469_s29 = smov 97  }
  0x25   :  { %83 = vrot.lane.b32.xlu1 %v2543_v4, %s2462_s13  ;;  %81 = vrot.lane.b32.xlu0 %v2548_v5, %s2462_s13  ;;  %s2614_s12 = sld [smem:[#allocation4 + $0x181]]  ;;  %v2642_v10 = vstv %s2598_s30 }
  0x26   :  { %s2618_s14 = sld [smem:[#allocation4 + $0x82]]  ;;  %v2645_v11 = vstv %s2600_s8 }
  0x27   :  { %s2620_s15 = sld [smem:[#allocation4 + $0x102]]  ;;  %v2648_v12 = vstv %s2604_s2 }
  0x28   :  { %s2624_s16 = sld [smem:[#allocation4 + $0x182]]  ;;  %v2651_v13 = vstv %s2606_s3 }
  0x29   :  { %87 = vrot.lane.b32.xlu1 %v2555_v6, %s2462_s13  ;;  %85 = vrot.lane.b32.xlu0 %v2560_v7, %s2462_s13  ;;  %s2616_s13 = sld [smem:[#allocation4 + $0x2]]  ;;  %v2658_v15 = vstv %s2608_s10 }
  0x2a   :  { %s2626_s17 = sld [smem:[#allocation4 + $0x3]]  ;;  %v2661_v16 = vstv %s2610_s11 }
  0x2b   :  { %s2213_s18 = sld [smem:[#allocation4 + $0x4]]  ;;  %v2664_v17 = vstv %s2614_s12 }
  0x2c   :  { %s2628_s19 = sld [smem:[#allocation4 + $0x83]]  ;;  %v2677_v20 = vstv %s2618_s14 }
  0x2d   :  { %204 = vrot.lane.b32.xlu1 %v2536_v3, %s2463_s26  ;;  %202 = vrot.lane.b32.xlu0 %v2524_v1, %s2463_s26  ;;  %s2214_s20 = sld [smem:[#allocation4 + $0x84]]  ;;  %v2682_v22 = vstv %s2620_s15 }
  0x2e   :  { %s2215_s21 = sld [smem:[#allocation4 + $0x104]]  ;;  %v2685_v23 = vstv %s2624_s16 }
  0x2f   :  { %s2216_s22 = sld [smem:[#allocation4 + $0x184]]  ;;  %v2667_v18 = vstv %s2616_s13 }
  0x30   :  { %s2211_s23 = sld [smem:[#allocation4 + $0x103]]  ;;  %v2692_v26 = vstv %s2626_s17 }
  0x31   :  { %208 = vrot.lane.b32.xlu1 %v2531_v2, %s2463_s26  ;;  %206 = vrot.lane.b32.xlu0 %v2519_v0, %s2463_s26  ;;  %s2636_s25 = sld [smem:[#allocation4 + $0x183]]  ;;  %v2653_v14 = vstv %s2213_s18  ;;  %5093 = vst [vmem:[#allocation13_spill] sm:$0xff] %v2692_v26 }
  0x32   :  { %v592_v25 = vsub.f32 %v2536_v3, %v2653_v14  ;;  %v2695_v27 = vstv %s2628_s19  ;;  %v593_v29 = vsub.f32 %v2519_v0, %v2653_v14  ;;  %v591_v31 = vsub.f32 %v2524_v1, %v2653_v14  ;;  %s3569_s30 = sld [smem:[#allocation4 + $0x6]] }
  0x33   :  { %v2679_v21 = vstv %s2214_s20  ;;  %5094 = vst [vmem:[#allocation14_spill] sm:$0xff] %v2695_v27  ;;  %v594_v45 = vsub.f32 %v2531_v2, %v2653_v14  ;;  %v595_v53 = vsub.f32 %v2548_v5, %v2653_v14  ;;  %s3577_s8 = sld [smem:[#allocation4 + $0x86]] }
  0x34   :  { %5091 = vst [vmem:[#allocation11_spill] sm:$0xff] %v2679_v21  ;;  %v2687_v24 = vstv %s2215_s21  ;;  %v617_v32 = vsub.f32 %v2524_v1, %v2679_v21  ;;  %v618_v33 = vsub.f32 %v2536_v3, %v2679_v21  ;;  %v2726_v38 = vand.u32 2147483647, %v592_v25  ;;  %s3594_s2 = sld [smem:[#allocation4 + $0x186]] }
  0x35   :  { %212 = vrot.lane.b32.xlu1 %v2543_v4, %s2463_s26  ;;  %210 = vrot.lane.b32.xlu0 %v2548_v5, %s2463_s26  ;;  %5092 = vst [vmem:[#allocation12_spill] sm:$0xff] %v2687_v24  ;;  %v2697_v28 = vstv %s2216_s22  ;;  %v643_v35 = vsub.f32 %v2524_v1, %v2687_v24  ;;  %v644_v37 = vsub.f32 %v2536_v3, %v2687_v24  ;;  %v2739_v43 = vand.u32 2147483647, %v593_v29  ;;  %s3723_s3 = sld [smem:[#allocation4 + $0x7]] }
  0x36   :  { %5095 = vst [vmem:[#allocation15_spill] sm:$0xff] %v2697_v28  ;;  %v2701_v30 = vstv %s2211_s23  ;;  %v669_v36 = vsub.f32 %v2524_v1, %v2697_v28  ;;  %5098 = vst [vmem:[#allocation18_spill] sm:$0xff] %v2726_v38  ;;  %v619_v39 = vsub.f32 %v2519_v0, %v2679_v21  ;;  %v645_v40 = vsub.f32 %v2519_v0, %v2687_v24  ;;  %s3734_s10 = sld [smem:[#allocation4 + $0x87]] }
  0x37   :  { %5096 = vst [vmem:[#allocation16_spill] sm:$0xff] %v2701_v30  ;;  %v2714_v34 = vstv %s2636_s25  ;;  %v670_v41 = vsub.f32 %v2536_v3, %v2697_v28  ;;  %5100 = vst [vmem:[#allocation20_spill] sm:$0xff] %v2739_v43  ;;  %v671_v44 = vsub.f32 %v2519_v0, %v2697_v28  ;;  %v2745_v46 = vand.u32 2147483647, %v591_v31  ;;  %s3744_s11 = sld [smem:[#allocation4 + $0x107]] }
  0x38   :  { %5097 = vst [vmem:[#allocation17_spill] sm:$0xff] %v2714_v34  ;;  %v2747_v47 = vand.u32 2147483647, %v617_v32  ;;  %v2749_v48 = vand.u32 2147483647, %v618_v33  ;;  %v620_v49 = vsub.f32 %v2531_v2, %v2679_v21  ;;  %v621_v57 = vsub.f32 %v2548_v5, %v2679_v21  ;;  %s3751_s12 = sld [smem:[#allocation4 + $0x187]] }
  0x39   :  { %216 = vrot.lane.b32.xlu1 %v2555_v6, %s2463_s26  ;;  %214 = vrot.lane.b32.xlu0 %v2560_v7, %s2463_s26  ;;  %s2655_s26 = sld [smem:[#allocation4 + $0x5]]  ;;  %5101 = vst [vmem:[#allocation21_spill] sm:$0xff] %v2745_v46  ;;  %v2758_v50 = vand.u32 2147483647, %v643_v35  ;;  %v2760_v51 = vand.u32 2147483647, %v669_v36  ;;  %v646_v60 = vsub.f32 %v2531_v2, %v2687_v24  ;;  %v672_v61 = vsub.f32 %v2531_v2, %v2697_v28 }
  0x3a   :  { %5102 = vst [vmem:[#allocation22_spill] sm:$0xff] %v2747_v47  ;;  %5103 = vst [vmem:[#allocation23_spill] sm:$0xff] %v2749_v48  ;;  %v2762_v52 = vand.u32 2147483647, %v644_v37  ;;  %v2766_v54 = vand.u32 2147483647, %v619_v39  ;;  %v647_v63 = vsub.f32 %v2548_v5, %v2687_v24  ;;  %v673_v25 = vsub.f32 %v2548_v5, %v2697_v28 }
  0x3b   :  { %5104 = vst [vmem:[#allocation24_spill] sm:$0xff] %v2758_v50  ;;  %5105 = vst [vmem:[#allocation25_spill] sm:$0xff] %v2760_v51  ;;  %v2768_v55 = vand.u32 2147483647, %v645_v40  ;;  %v2770_v56 = vand.u32 2147483647, %v670_v41  ;;  %v596_v29 = vsub.f32 %v2543_v4, %v2653_v14  ;;  %v598_v32 = vsub.f32 %v2555_v6, %v2653_v14 }
  0x3c   :  { %5106 = vst [vmem:[#allocation26_spill] sm:$0xff] %v2762_v52  ;;  %5107 = vst [vmem:[#allocation27_spill] sm:$0xff] %v2766_v54  ;;  %v2774_v58 = vand.u32 2147483647, %v671_v44  ;;  %v2776_v59 = vand.u32 2147483647, %v594_v45  ;;  %v624_v33 = vsub.f32 %v2555_v6, %v2679_v21  ;;  %v650_v35 = vsub.f32 %v2555_v6, %v2687_v24 }
  0x3d   :  { %333 = vrot.lane.b32.xlu1 %v2536_v3, %s2464_s0  ;;  %331 = vrot.lane.b32.xlu0 %v2524_v1, %s2464_s0  ;;  %5108 = vst [vmem:[#allocation28_spill] sm:$0xff] %v2768_v55  ;;  %5109 = vst [vmem:[#allocation29_spill] sm:$0xff] %v2770_v56  ;;  %v2782_v62 = vand.u32 2147483647, %v620_v49  ;;  %v2794_v31 = vand.u32 2147483647, %v595_v53  ;;  %v622_v37 = vsub.f32 %v2543_v4, %v2679_v21 }
  0x3e   :  { %5110 = vst [vmem:[#allocation30_spill] sm:$0xff] %v2774_v58  ;;  %5111 = vst [vmem:[#allocation31_spill] sm:$0xff] %v2776_v59  ;;  %v2802_v36 = vand.u32 2147483647, %v621_v57  ;;  %v2812_v41 = vand.u32 2147483647, %v646_v60  ;;  %v648_v45 = vsub.f32 %v2543_v4, %v2687_v24  ;;  %v674_v49 = vsub.f32 %v2543_v4, %v2697_v28 }
  0x3f   :  { %v2735_v42 = vstv %s2655_s26  ;;  %5112 = vst [vmem:[#allocation32_spill] sm:$0xff] %v2782_v62  ;;  %5113 = vst [vmem:[#allocation33_spill] sm:$0xff] %v2794_v31  ;;  %v2814_v44 = vand.u32 2147483647, %v672_v61  ;;  %v2825_v57 = vand.u32 2147483647, %v673_v25 }
  0x40   :  { %5099 = vst [vmem:[#allocation19_spill] sm:$0xff] %v2735_v42  ;;  %5114 = vst [vmem:[#allocation34_spill] sm:$0xff] %v2802_v36  ;;  %v2827_v8 = vand.u32 2147483647, %v596_v29  ;;  %v2836_v61 = vand.u32 2147483647, %v598_v32 }
  0x41   :  { %337 = vrot.lane.b32.xlu1 %v2531_v2, %s2464_s0  ;;  %335 = vrot.lane.b32.xlu0 %v2519_v0, %s2464_s0  ;;  %5115 = vst [vmem:[#allocation35_spill] sm:$0xff] %v2812_v41  ;;  %5116 = vst [vmem:[#allocation36_spill] sm:$0xff] %v2814_v44  ;;  %v2838_v44 = vand.u32 2147483647, %v624_v33  ;;  %v2840_v41 = vand.u32 2147483647, %v650_v35 }
  0x42   :  { %5119 = vst [vmem:[#allocation39_spill] sm:$0xff] %v2825_v57  ;;  %5120 = vst [vmem:[#allocation40_spill] sm:$0xff] %v2827_v8  ;;  %v2849_v8 = vand.u32 2147483647, %v622_v37  ;;  %v2855_v33 = vand.u32 2147483647, %v648_v45 }
  0x43   :  { %5122 = vst [vmem:[#allocation42_spill] sm:$0xff] %v2836_v61  ;;  %5123 = vst [vmem:[#allocation43_spill] sm:$0xff] %v2838_v44  ;;  %v2857_v35 = vand.u32 2147483647, %v674_v49  ;;  %s3893_s13 = sld [smem:[#allocation4 + $0x8]] }
  0x44   :  { %5124 = vst [vmem:[#allocation44_spill] sm:$0xff] %v2840_v41  ;;  %5128 = vst [vmem:[#allocation48_spill] sm:$0xff] %v2849_v8  ;;  %s3905_s14 = sld [smem:[#allocation4 + $0x88]] }
  0x45   :  { %341 = vrot.lane.b32.xlu1 %v2543_v4, %s2464_s0  ;;  %339 = vrot.lane.b32.xlu0 %v2548_v5, %s2464_s0  ;;  %5129 = vst [vmem:[#allocation49_spill] sm:$0xff] %v2855_v33  ;;  %5130 = vst [vmem:[#allocation50_spill] sm:$0xff] %v2857_v35  ;;  %s3916_s15 = sld [smem:[#allocation4 + $0x108]] }
  0x46   :  { %s3926_s16 = sld [smem:[#allocation4 + $0x188]] }
  0x47   :  { %s1343_s17 = sld [smem:[#allocation6]] }
  0x48   :  { %s4690_s18 = sld [smem:[#allocation6 + $0x2]] }
  0x49   :  { %345 = vrot.lane.b32.xlu1 %v2555_v6, %s2464_s0  ;;  %343 = vrot.lane.b32.xlu0 %v2560_v7, %s2464_s0  ;;  %s2716_s0 = sld [smem:[#allocation4 + $0x85]] }
  0x4d   :  { %462 = vrot.lane.b32.xlu1 %v2536_v3, %s2465_s27  ;;  %460 = vrot.lane.b32.xlu0 %v2524_v1, %s2465_s27 }
  0x4f   :  { %v2821_v53 = vstv %s2716_s0 }
  0x50   :  { %5117 = vst [vmem:[#allocation37_spill] sm:$0xff] %v2821_v53 }
  0x51   :  { %466 = vrot.lane.b32.xlu1 %v2531_v2, %s2465_s27  ;;  %464 = vrot.lane.b32.xlu0 %v2519_v0, %s2465_s27 }
  0x55   :  { %470 = vrot.lane.b32.xlu1 %v2543_v4, %s2465_s27  ;;  %468 = vrot.lane.b32.xlu0 %v2548_v5, %s2465_s27 }
  0x59   :  { %474 = vrot.lane.b32.xlu1 %v2555_v6, %s2465_s27  ;;  %472 = vrot.lane.b32.xlu0 %v2560_v7, %s2465_s27  ;;  %s2724_s27 = sld [smem:[#allocation4 + $0x105]] }
  0x5d   :  { %695 = vrot.lane.b32.xlu1 %v2536_v3, %s2466_s28  ;;  %693 = vrot.lane.b32.xlu0 %v2524_v1, %s2466_s28 }
  0x5f   :  { %v2834_v60 = vstv %s2724_s27 }
  0x60   :  { %5121 = vst [vmem:[#allocation41_spill] sm:$0xff] %v2834_v60 }
  0x61   :  { %699 = vrot.lane.b32.xlu1 %v2531_v2, %s2466_s28  ;;  %697 = vrot.lane.b32.xlu0 %v2519_v0, %s2466_s28 }
  0x65   :  { %703 = vrot.lane.b32.xlu1 %v2543_v4, %s2466_s28  ;;  %701 = vrot.lane.b32.xlu0 %v2548_v5, %s2466_s28 }
  0x69   :  { %707 = vrot.lane.b32.xlu1 %v2555_v6, %s2466_s28  ;;  %705 = vrot.lane.b32.xlu0 %v2560_v7, %s2466_s28  ;;  %s2737_s28 = sld [smem:[#allocation4 + $0x185]] }
  0x6d   :  { %824 = vrot.lane.b32.xlu1 %v2536_v3, %s2467_s9  ;;  %822 = vrot.lane.b32.xlu0 %v2524_v1, %s2467_s9 }
  0x71   :  { %828 = vrot.lane.b32.xlu1 %v2531_v2, %s2467_s9  ;;  %826 = vrot.lane.b32.xlu0 %v2519_v0, %s2467_s9 }
  0x75   :  { %832 = vrot.lane.b32.xlu1 %v2543_v4, %s2467_s9  ;;  %830 = vrot.lane.b32.xlu0 %v2548_v5, %s2467_s9 }
  0x79   :  { %836 = vrot.lane.b32.xlu1 %v2555_v6, %s2467_s9  ;;  %834 = vrot.lane.b32.xlu0 %v2560_v7, %s2467_s9  ;;  %s3583_s9 = sld [smem:[#allocation4 + $0x106]] }
  0x7d   :  { %953 = vrot.lane.b32.xlu1 %v2536_v3, %s2468_s24  ;;  %951 = vrot.lane.b32.xlu0 %v2524_v1, %s2468_s24 }
  0x81   :  { %957 = vrot.lane.b32.xlu1 %v2531_v2, %s2468_s24  ;;  %955 = vrot.lane.b32.xlu0 %v2519_v0, %s2468_s24 }
  0x85   :  { %961 = vrot.lane.b32.xlu1 %v2543_v4, %s2468_s24  ;;  %959 = vrot.lane.b32.xlu0 %v2548_v5, %s2468_s24 }
  0x89   :  { %965 = vrot.lane.b32.xlu1 %v2555_v6, %s2468_s24  ;;  %963 = vrot.lane.b32.xlu0 %v2560_v7, %s2468_s24 }
  0x8d   :  { %1082 = vrot.lane.b32.xlu1 %v2536_v3, %s2469_s29  ;;  %1080 = vrot.lane.b32.xlu0 %v2524_v1, %s2469_s29  ;;  %v676_v3 = vsub.f32 %v2555_v6, %v2697_v28  ;;  %v597_v1 = vsub.f32 %v2560_v7, %v2653_v14  ;;  %v2823_v14 = vand.u32 2147483647, %v647_v63  ;;  %v2843_v63 = vstv %s2737_s28 }
  0x8e   :  { %5125 = vst [vmem:[#allocation45_spill] sm:$0xff] %v2843_v63 }
  0x8f   :  { %v78_v39 = vpop.permute.xlu1 %77  ;;  %v2810_v40 = vpop.permute.xlu0 %73  ;;  %5118 = vst [vmem:[#allocation38_spill] sm:$0xff] %v2823_v14  ;;  %v2845_v25 = vand.u32 2147483647, %v676_v3  ;;  %v2847_v29 = vand.u32 2147483647, %v597_v1 }
  0x91   :  { %1086 = vrot.lane.b32.xlu1 %v2531_v2, %s2469_s29  ;;  %1084 = vrot.lane.b32.xlu0 %v2519_v0, %s2469_s29  ;;  %5126 = vst [vmem:[#allocation46_spill] sm:$0xff] %v2845_v25  ;;  %5127 = vst [vmem:[#allocation47_spill] sm:$0xff] %v2847_v29 }
  0x93   :  { %v80_v2 = vpop.permute.xlu1 %79  ;;  %v76_v57 = vpop.permute.xlu0 %75 }
  0x94   :  { %v94_v3 = vsel %vm89_vm0, %v78_v39, %v80_v2  ;;  %v95_v1 = vsel %vm89_vm0, %v76_v57, %v78_v39  ;;  %v96_v37 = vsel %vm89_vm0, %v2810_v40, %v76_v57 }
  0x95   :  { %v103_v8 = vsub.f32 %v94_v3, %v2639_v9  ;;  %v129_v45 = vsub.f32 %v94_v3, %v2642_v10  ;;  %v155_v49 = vsub.f32 %v94_v3, %v2645_v11  ;;  %v181_v32 = vsub.f32 %v94_v3, %v2648_v12  ;;  %1090 = vrot.lane.b32.xlu1 %v2543_v4, %s2469_s29 }
  0x96   :  { %v101_v39 = vsub.f32 %v96_v37, %v2639_v9  ;;  %v102_v35 = vsub.f32 %v95_v1, %v2639_v9  ;;  %v127_v57 = vsub.f32 %v96_v37, %v2642_v10  ;;  %v128_v33 = vsub.f32 %v95_v1, %v2642_v10  ;;  %1088 = vrot.lane.b32.xlu0 %v2548_v5, %s2469_s29 }
  0x97   :  { %v2880_v0 = vand.u32 2147483647, %v103_v8  ;;  %v2882_v29 = vand.u32 2147483647, %v129_v45  ;;  %v2884_v25 = vand.u32 2147483647, %v155_v49  ;;  %v153_v3 = vsub.f32 %v96_v37, %v2645_v11  ;;  %v84_v4 = vpop.permute.xlu1 %83  ;;  %v82_v41 = vpop.permute.xlu0 %81 }
  0x98   :  { %v2887_v44 = vand.u32 2147483647, %v181_v32  ;;  %v2889_v61 = vand.u32 2147483647, %v101_v39  ;;  %v2891_v14 = vand.u32 2147483647, %v102_v35  ;;  %v154_v36 = vsub.f32 %v95_v1, %v2645_v11 }
  0x99   :  { %v2894_v62 = vand.u32 2147483647, %v127_v57  ;;  %v2896_v5 = vand.u32 2147483647, %v128_v33  ;;  %v2898_v8 = vand.u32 2147483647, %v153_v3  ;;  %v179_v45 = vsub.f32 %v96_v37, %v2648_v12  ;;  %1094 = vrot.lane.b32.xlu1 %v2555_v6, %s2469_s29 }
  0x9a   :  { %v2903_v49 = vand.u32 2147483647, %v154_v36  ;;  %v180_v32 = vsub.f32 %v95_v1, %v2648_v12  ;;  %v92_v35 = vsel %vm89_vm0, %v82_v41, %v84_v4  ;;  %v93_v39 = vsel %vm89_vm0, %v80_v2, %v82_v41  ;;  %1092 = vrot.lane.b32.xlu0 %v2560_v7, %s2469_s29 }
  0x9b   :  { %v2913_v33 = vand.u32 2147483647, %v179_v45  ;;  %v104_v37 = vsub.f32 %v93_v39, %v2639_v9  ;;  %v105_v6 = vsub.f32 %v92_v35, %v2639_v9  ;;  %v130_v36 = vsub.f32 %v93_v39, %v2642_v10  ;;  %v88_v1 = vpop.permute.xlu1 %87  ;;  %v86_v57 = vpop.permute.xlu0 %85 }
  0x9c   :  { %v2918_v3 = vand.u32 2147483647, %v180_v32  ;;  %v131_v31 = vsub.f32 %v92_v35, %v2642_v10  ;;  %v156_v41 = vsub.f32 %v93_v39, %v2645_v11  ;;  %v157_v2 = vsub.f32 %v92_v35, %v2645_v11 }
  0x9d   :  { %v2923_v59 = vand.u32 2147483647, %v104_v37  ;;  %v2925_v45 = vand.u32 2147483647, %v105_v6  ;;  %v2927_v58 = vand.u32 2147483647, %v130_v36  ;;  %v182_v56 = vsub.f32 %v93_v39, %v2648_v12 }
  0x9e   :  { %v2930_v55 = vand.u32 2147483647, %v131_v31  ;;  %v2932_v52 = vand.u32 2147483647, %v156_v41  ;;  %v2934_v32 = vand.u32 2147483647, %v157_v2  ;;  %v183_v54 = vsub.f32 %v92_v35, %v2648_v12 }
  0x9f   :  { %v2937_v48 = vand.u32 2147483647, %v182_v56  ;;  %v97_v37 = vsel %vm89_vm0, %v88_v1, %v2810_v40  ;;  %v90_v6 = vsel %vm89_vm0, %v86_v57, %v88_v1  ;;  %v91_v39 = vsel %vm89_vm0, %v84_v4, %v86_v57  ;;  %v205_v31 = vpop.permute.xlu1 %204  ;;  %v2946_v36 = vpop.permute.xlu0 %202 }
  0xa0   :  { %v2948_v41 = vand.u32 2147483647, %v183_v54  ;;  %v100_v2 = vsub.f32 %v97_v37, %v2639_v9  ;;  %v126_v56 = vsub.f32 %v97_v37, %v2642_v10  ;;  %v152_v35 = vsub.f32 %v97_v37, %v2645_v11 }
  0xa1   :  { %v178_v43 = vsub.f32 %v97_v37, %v2648_v12  ;;  %v106_v40 = vsub.f32 %v91_v39, %v2639_v9  ;;  %v107_v1 = vsub.f32 %v90_v6, %v2639_v9  ;;  %v132_v38 = vsub.f32 %v91_v39, %v2642_v10 }
  0xa2   :  { %v2957_v4 = vand.u32 2147483647, %v100_v2  ;;  %v2959_v57 = vand.u32 2147483647, %v126_v56  ;;  %v2961_v54 = vand.u32 2147483647, %v152_v35  ;;  %v133_v63 = vsub.f32 %v90_v6, %v2642_v10 }
  0xa3   :  { %v2964_v60 = vand.u32 2147483647, %v178_v43  ;;  %v2966_v51 = vand.u32 2147483647, %v106_v40  ;;  %v2968_v53 = vand.u32 2147483647, %v107_v1  ;;  %v158_v37 = vsub.f32 %v91_v39, %v2645_v11  ;;  %v209_v42 = vpop.permute.xlu1 %208  ;;  %v207_v9 = vpop.permute.xlu0 %206 }
  0xa4   :  { %v2971_v50 = vand.u32 2147483647, %v132_v38  ;;  %v2973_v2 = vand.u32 2147483647, %v133_v63  ;;  %v159_v56 = vsub.f32 %v90_v6, %v2645_v11  ;;  %v184_v35 = vsub.f32 %v91_v39, %v2648_v12 }
  0xa5   :  { %v2977_v47 = vand.u32 2147483647, %v158_v37  ;;  %v185_v10 = vsub.f32 %v90_v6, %v2648_v12  ;;  %v225_v43 = vsel %vm218_vm1, %v2946_v36, %v205_v31  ;;  %v223_v40 = vsel %vm218_vm1, %v207_v9, %v209_v42 }
  0xa6   :  { %v2985_v1 = vand.u32 2147483647, %v159_v56  ;;  %v2987_v38 = vand.u32 2147483647, %v184_v35  ;;  %v230_v63 = vsub.f32 %v225_v43, %v2651_v13  ;;  %v256_v11 = vsub.f32 %v225_v43, %v2658_v15 }
  0xa7   :  { %v2991_v39 = vand.u32 2147483647, %v185_v10  ;;  %v282_v37 = vsub.f32 %v225_v43, %v2661_v16  ;;  %v308_v12 = vsub.f32 %v225_v43, %v2664_v17  ;;  %v224_v6 = vsel %vm218_vm1, %v205_v31, %v207_v9  ;;  %v211_v27 = vpop.permute.xlu0 %210 }
  0xa8   :  { %v238_v46 = vand.u32 2147483647, %v230_v63  ;;  %v264_v28 = vand.u32 2147483647, %v256_v11  ;;  %v231_v56 = vsub.f32 %v224_v6, %v2651_v13  ;;  %v232_v35 = vsub.f32 %v223_v40, %v2651_v13 }
  0xa9   :  { %v290_v24 = vand.u32 2147483647, %v282_v37  ;;  %v316_v21 = vand.u32 2147483647, %v308_v12  ;;  %v257_v7 = vsub.f32 %v224_v6, %v2658_v15  ;;  %v258_v10 = vsub.f32 %v223_v40, %v2658_v15  ;;  %v213_v12 = vpop.permute.xlu1 %212 }
  0xaa   :  { %v3002_v34 = vadd.f32 %v238_v46, %v2889_v61  ;;  %v3005_v43 = vadd.f32 %v264_v28, %v2894_v62  ;;  %v239_v30 = vand.u32 2147483647, %v231_v56  ;;  %v240_v31 = vand.u32 2147483647, %v232_v35 }
  0xab   :  { %v3008_v9 = vadd.f32 %v290_v24, %v2898_v8  ;;  %v3011_v63 = vadd.f32 %v316_v21, %v2913_v33  ;;  %v265_v11 = vand.u32 2147483647, %v257_v7  ;;  %v266_v37 = vand.u32 2147483647, %v258_v10 }
  0xac   :  { %v3014_v26 = vadd.f32 %v239_v30, %v2891_v14  ;;  %v3017_v46 = vadd.f32 %v240_v31, %v2880_v0  ;;  %v283_v28 = vsub.f32 %v224_v6, %v2661_v16  ;;  %v284_v62 = vsub.f32 %v223_v40, %v2661_v16 }
  0xad   :  { %v3022_v24 = vadd.f32 %v265_v11, %v2896_v5  ;;  %v3025_v21 = vadd.f32 %v266_v37, %v2882_v29  ;;  %v309_v7 = vsub.f32 %v224_v6, %v2664_v17  ;;  %v310_v61 = vsub.f32 %v223_v40, %v2664_v17 }
  0xae   :  { %v291_v8 = vand.u32 2147483647, %v283_v28  ;;  %v292_v30 = vand.u32 2147483647, %v284_v62  ;;  %v221_v14 = vsel %vm218_vm1, %v211_v27, %v213_v12  ;;  %v222_v0 = vsel %vm218_vm1, %v209_v42, %v211_v27 }
  0xaf   :  { %v317_v33 = vand.u32 2147483647, %v309_v7  ;;  %v318_v56 = vand.u32 2147483647, %v310_v61  ;;  %v233_v5 = vsub.f32 %v222_v0, %v2651_v13  ;;  %v234_v35 = vsub.f32 %v221_v14, %v2651_v13  ;;  %v215_v7 = vpop.permute.xlu0 %214 }
  0xb0   :  { %v3036_v29 = vadd.f32 %v291_v8, %v2903_v49  ;;  %v3039_v6 = vadd.f32 %v292_v30, %v2884_v25  ;;  %v259_v40 = vsub.f32 %v222_v0, %v2658_v15  ;;  %v260_v10 = vsub.f32 %v221_v14, %v2658_v15  ;;  %v217_v25 = vpop.permute.xlu1 %216 }
  0xb1   :  { %v3044_v31 = vadd.f32 %v317_v33, %v2918_v3  ;;  %v3047_v27 = vadd.f32 %v318_v56, %v2887_v44  ;;  %v241_v42 = vand.u32 2147483647, %v233_v5  ;;  %v242_v11 = vand.u32 2147483647, %v234_v35 }
  0xb2   :  { %v267_v37 = vand.u32 2147483647, %v259_v40  ;;  %v268_v28 = vand.u32 2147483647, %v260_v10  ;;  %v285_v49 = vsub.f32 %v222_v0, %v2661_v16  ;;  %v286_v62 = vsub.f32 %v221_v14, %v2661_v16 }
  0xb3   :  { %v3052_v61 = vadd.f32 %v241_v42, %v2923_v59  ;;  %v3055_v8 = vadd.f32 %v242_v11, %v2925_v45  ;;  %v311_v3 = vsub.f32 %v222_v0, %v2664_v17  ;;  %v312_v44 = vsub.f32 %v221_v14, %v2664_v17 }
  0xb4   :  { %v3061_v30 = vadd.f32 %v267_v37, %v2927_v58  ;;  %v3064_v33 = vadd.f32 %v268_v28, %v2930_v55  ;;  %v293_v56 = vand.u32 2147483647, %v285_v49  ;;  %v294_v5 = vand.u32 2147483647, %v286_v62  ;;  %v334_v49 = vpop.permute.xlu1 %333 }
  0xb5   :  { %v319_v35 = vand.u32 2147483647, %v311_v3  ;;  %v320_v59 = vand.u32 2147483647, %v312_v44  ;;  %v226_v45 = vsel %vm218_vm1, %v217_v25, %v2946_v36  ;;  %v219_v0 = vsel %vm218_vm1, %v215_v7, %v217_v25 }
  0xb6   :  { %v3072_v14 = vadd.f32 %v293_v56, %v2932_v52  ;;  %v3075_v58 = vadd.f32 %v294_v5, %v2934_v32  ;;  %v229_v55 = vsub.f32 %v226_v45, %v2651_v13  ;;  %v255_v40 = vsub.f32 %v226_v45, %v2658_v15 }
  0xb7   :  { %v3080_v10 = vadd.f32 %v319_v35, %v2937_v48  ;;  %v3083_v42 = vadd.f32 %v320_v59, %v2948_v41  ;;  %v281_v36 = vsub.f32 %v226_v45, %v2661_v16  ;;  %v307_v11 = vsub.f32 %v226_v45, %v2664_v17  ;;  %v3092_v41 = vpop.permute.xlu0 %331 }
  0xb8   :  { %v237_v37 = vand.u32 2147483647, %v229_v55  ;;  %v263_v52 = vand.u32 2147483647, %v255_v40  ;;  %v220_v32 = vsel %vm218_vm1, %v213_v12, %v215_v7  ;;  %v236_v28 = vsub.f32 %v219_v0, %v2651_v13 }
  0xb9   :  { %v289_v62 = vand.u32 2147483647, %v281_v36  ;;  %v315_v25 = vand.u32 2147483647, %v307_v11  ;;  %v235_v48 = vsub.f32 %v220_v32, %v2651_v13  ;;  %v261_v3 = vsub.f32 %v220_v32, %v2658_v15 }
  0xba   :  { %v3095_v44 = vadd.f32 %v237_v37, %v2957_v4  ;;  %v3098_v56 = vadd.f32 %v263_v52, %v2959_v57  ;;  %v244_v5 = vand.u32 2147483647, %v236_v28  ;;  %v262_v12 = vsub.f32 %v219_v0, %v2658_v15 }
  0xbb   :  { %v3102_v7 = vadd.f32 %v289_v62, %v2961_v54  ;;  %v3105_v35 = vadd.f32 %v315_v25, %v2964_v60  ;;  %v243_v13 = vand.u32 2147483647, %v235_v48  ;;  %v269_v59 = vand.u32 2147483647, %v261_v3  ;;  %v336_v62 = vpop.permute.xlu0 %335 }
  0xbc   :  { %v3108_v45 = vadd.f32 %v244_v5, %v2968_v53  ;;  %v270_v55 = vand.u32 2147483647, %v262_v12  ;;  %v287_v4 = vsub.f32 %v220_v32, %v2661_v16  ;;  %v288_v57 = vsub.f32 %v219_v0, %v2661_v16  ;;  %v338_v16 = vpop.permute.xlu1 %337 }
  0xbd   :  { %v3113_v40 = vadd.f32 %v243_v13, %v2966_v51  ;;  %v3116_v15 = vadd.f32 %v269_v59, %v2971_v50  ;;  %v313_v54 = vsub.f32 %v220_v32, %v2664_v17  ;;  %v314_v60 = vsub.f32 %v219_v0, %v2664_v17 }
  0xbe   :  { %v3121_v36 = vadd.f32 %v270_v55, %v2973_v2  ;;  %v295_v53 = vand.u32 2147483647, %v287_v4  ;;  %v296_v11 = vand.u32 2147483647, %v288_v57  ;;  %v354_v37 = vsel %vm347_vm2, %v3092_v41, %v334_v49 }
  0xbf   :  { %v321_v52 = vand.u32 2147483647, %v313_v54  ;;  %v322_v51 = vand.u32 2147483647, %v314_v60  ;;  %v359_v28 = vsub.f32 %v354_v37, %v2667_v18  ;;  %v385_v50 = vsub.f32 %v354_v37, %v2677_v20 }
  0xc0   :  { %v3129_v32 = vadd.f32 %v295_v53, %v2977_v47  ;;  %v3132_v17 = vadd.f32 %v296_v11, %v2985_v1  ;;  %v411_v2 = vsub.f32 %v354_v37, %v2682_v22  ;;  %v437_v0 = vsub.f32 %v354_v37, %v2685_v23  ;;  %v342_v60 = vpop.permute.xlu1 %341 }
  0xc1   :  { %v3137_v25 = vadd.f32 %v321_v52, %v2987_v38  ;;  %v3140_v48 = vadd.f32 %v322_v51, %v2991_v39  ;;  %v367_v3 = vand.u32 2147483647, %v359_v28  ;;  %v393_v5 = vand.u32 2147483647, %v385_v50  ;;  %v340_v28 = vpop.permute.xlu0 %339 }
  0xc2   :  { %v419_v12 = vand.u32 2147483647, %v411_v2  ;;  %v445_v13 = vand.u32 2147483647, %v437_v0  ;;  %v352_v47 = vsel %vm347_vm2, %v336_v62, %v338_v16  ;;  %v353_v1 = vsel %vm347_vm2, %v334_v49, %v336_v62 }
  0xc3   :  { %v3147_v59 = vadd.f32 %v367_v3, %v3002_v34  ;;  %v3150_v55 = vadd.f32 %v393_v5, %v3005_v43  ;;  %v360_v38 = vsub.f32 %v353_v1, %v2667_v18  ;;  %v361_v39 = vsub.f32 %v352_v47, %v2667_v18 }
  0xc4   :  { %v3155_v4 = vadd.f32 %v419_v12, %v3008_v9  ;;  %v3158_v57 = vadd.f32 %v445_v13, %v3011_v63  ;;  %v386_v54 = vsub.f32 %v353_v1, %v2677_v20  ;;  %v387_v49 = vsub.f32 %v352_v47, %v2677_v20 }
  0xc5   :  { %v368_v34 = vand.u32 2147483647, %v360_v38  ;;  %v369_v53 = vand.u32 2147483647, %v361_v39  ;;  %v412_v43 = vsub.f32 %v353_v1, %v2682_v22  ;;  %v413_v11 = vsub.f32 %v352_v47, %v2682_v22  ;;  %v346_v38 = vpop.permute.xlu1 %345 }
  0xc6   :  { %v394_v37 = vand.u32 2147483647, %v386_v54  ;;  %v395_v52 = vand.u32 2147483647, %v387_v49  ;;  %v438_v51 = vsub.f32 %v353_v1, %v2685_v23  ;;  %v439_v9 = vsub.f32 %v352_v47, %v2685_v23 }
  0xc7   :  { %v3167_v63 = vadd.f32 %v368_v34, %v3014_v26  ;;  %v3170_v50 = vadd.f32 %v369_v53, %v3017_v46  ;;  %v420_v62 = vand.u32 2147483647, %v412_v43  ;;  %v421_v2 = vand.u32 2147483647, %v413_v11 }
  0xc8   :  { %v3173_v0 = vadd.f32 %v394_v37, %v3022_v24  ;;  %v3176_v3 = vadd.f32 %v395_v52, %v3025_v21  ;;  %v446_v5 = vand.u32 2147483647, %v438_v51  ;;  %v447_v12 = vand.u32 2147483647, %v439_v9  ;;  %v344_v52 = vpop.permute.xlu0 %343 }
  0xc9   :  { %v3179_v13 = vadd.f32 %v420_v62, %v3036_v29  ;;  %v3182_v47 = vadd.f32 %v421_v2, %v3039_v6  ;;  %v350_v26 = vsel %vm347_vm2, %v340_v28, %v342_v60  ;;  %v351_v46 = vsel %vm347_vm2, %v338_v16, %v340_v28 }
  0xca   :  { %v3189_v24 = vadd.f32 %v446_v5, %v3044_v31  ;;  %v3192_v21 = vadd.f32 %v447_v12, %v3047_v27  ;;  %v362_v1 = vsub.f32 %v351_v46, %v2667_v18  ;;  %v363_v29 = vsub.f32 %v350_v26, %v2667_v18 }
  0xcb   :  { %v388_v6 = vsub.f32 %v351_v46, %v2677_v20  ;;  %v389_v39 = vsub.f32 %v350_v26, %v2677_v20  ;;  %v414_v54 = vsub.f32 %v351_v46, %v2682_v22  ;;  %v415_v49 = vsub.f32 %v350_v26, %v2682_v22 }
  0xcc   :  { %v370_v16 = vand.u32 2147483647, %v362_v1  ;;  %v371_v34 = vand.u32 2147483647, %v363_v29  ;;  %v440_v31 = vsub.f32 %v351_v46, %v2685_v23  ;;  %v441_v27 = vsub.f32 %v350_v26, %v2685_v23 }
  0xcd   :  { %v396_v53 = vand.u32 2147483647, %v388_v6  ;;  %v397_v43 = vand.u32 2147483647, %v389_v39  ;;  %v422_v11 = vand.u32 2147483647, %v414_v54  ;;  %v355_v37 = vsel %vm347_vm2, %v346_v38, %v3092_v41  ;;  %v463_v39 = vpop.permute.xlu1 %462 }
  0xce   :  { %v3207_v51 = vadd.f32 %v370_v16, %v3052_v61  ;;  %v3210_v9 = vadd.f32 %v371_v34, %v3055_v8  ;;  %v423_v28 = vand.u32 2147483647, %v415_v49  ;;  %v448_v62 = vand.u32 2147483647, %v440_v31  ;;  %v3241_v34 = vpop.permute.xlu0 %460 }
  0xcf   :  { %v3213_v2 = vadd.f32 %v396_v53, %v3061_v30  ;;  %v3216_v5 = vadd.f32 %v397_v43, %v3064_v33  ;;  %v3219_v12 = vadd.f32 %v422_v11, %v3072_v14  ;;  %v449_v41 = vand.u32 2147483647, %v441_v27 }
  0xd0   :  { %v3222_v26 = vadd.f32 %v423_v28, %v3075_v58  ;;  %v3225_v61 = vadd.f32 %v448_v62, %v3080_v10  ;;  %v358_v8 = vsub.f32 %v355_v37, %v2667_v18  ;;  %v384_v46 = vsub.f32 %v355_v37, %v2677_v20 }
  0xd1   :  { %v3230_v30 = vadd.f32 %v449_v41, %v3083_v42  ;;  %v410_v33 = vsub.f32 %v355_v37, %v2682_v22  ;;  %v436_v1 = vsub.f32 %v355_v37, %v2685_v23  ;;  %v348_v14 = vsel %vm347_vm2, %v344_v52, %v346_v38 }
  0xd2   :  { %v366_v29 = vand.u32 2147483647, %v358_v8  ;;  %v392_v58 = vand.u32 2147483647, %v384_v46  ;;  %v349_v10 = vsel %vm347_vm2, %v342_v60, %v344_v52  ;;  %v365_v6 = vsub.f32 %v348_v14, %v2667_v18 }
  0xd3   :  { %v418_v54 = vand.u32 2147483647, %v410_v33  ;;  %v444_v49 = vand.u32 2147483647, %v436_v1  ;;  %v364_v42 = vsub.f32 %v349_v10, %v2667_v18  ;;  %v390_v16 = vsub.f32 %v349_v10, %v2677_v20  ;;  %v5131_v33 = vld [vmem:[#allocation13_spill] sm:$0xff] }
  0xd4   :  { %v3244_v31 = vadd.f32 %v366_v29, %v3095_v44  ;;  %v3247_v38 = vadd.f32 %v392_v58, %v3098_v56  ;;  %v373_v27 = vand.u32 2147483647, %v365_v6  ;;  %v391_v60 = vsub.f32 %v348_v14, %v2677_v20  ;;  %v465_v58 = vpop.permute.xlu0 %464  ;;  %v5134_v6 = vld [vmem:[#allocation17_spill] sm:$0xff] }
  0xd5   :  { %v3251_v53 = vadd.f32 %v418_v54, %v3102_v7  ;;  %v3254_v43 = vadd.f32 %v444_v49, %v3105_v35  ;;  %v372_v18 = vand.u32 2147483647, %v364_v42  ;;  %v398_v11 = vand.u32 2147483647, %v390_v16 }
  0xd6   :  { %v3257_v37 = vadd.f32 %v373_v27, %v3108_v45  ;;  %v399_v52 = vand.u32 2147483647, %v391_v60  ;;  %v416_v44 = vsub.f32 %v349_v10, %v2682_v22  ;;  %v417_v56 = vsub.f32 %v348_v14, %v2682_v22  ;;  %v467_v22 = vpop.permute.xlu1 %466 }
  0xd7   :  { %v3262_v28 = vadd.f32 %v372_v18, %v3113_v40  ;;  %v3265_v20 = vadd.f32 %v398_v11, %v3116_v15  ;;  %v442_v7 = vsub.f32 %v349_v10, %v2685_v23  ;;  %v443_v35 = vsub.f32 %v348_v14, %v2685_v23  ;;  %v5132_v15 = vld [vmem:[#allocation14_spill] sm:$0xff] }
  0xd8   :  { %v3270_v62 = vadd.f32 %v399_v52, %v3121_v36  ;;  %v424_v45 = vand.u32 2147483647, %v416_v44  ;;  %v425_v41 = vand.u32 2147483647, %v417_v56  ;;  %v483_v8 = vsel %vm476_vm3, %v3241_v34, %v463_v39  ;;  %v5133_v36 = vld [vmem:[#allocation16_spill] sm:$0xff] }
  0xd9   :  { %v450_v46 = vand.u32 2147483647, %v442_v7  ;;  %v451_v40 = vand.u32 2147483647, %v443_v35  ;;  %v488_v1 = vsub.f32 %v483_v8, %v5131_v33  ;;  %v514_v29 = vsub.f32 %v483_v8, %v5132_v15 }
  0xda   :  { %v3278_v10 = vadd.f32 %v424_v45, %v3129_v32  ;;  %v3281_v23 = vadd.f32 %v425_v41, %v3132_v17  ;;  %v540_v14 = vsub.f32 %v483_v8, %v5133_v36  ;;  %v566_v54 = vsub.f32 %v483_v8, %v5134_v6  ;;  %v471_v35 = vpop.permute.xlu1 %470 }
  0xdb   :  { %v3286_v49 = vadd.f32 %v450_v46, %v3137_v25  ;;  %v3289_v42 = vadd.f32 %v451_v40, %v3140_v48  ;;  %v496_v16 = vand.u32 2147483647, %v488_v1  ;;  %v522_v27 = vand.u32 2147483647, %v514_v29  ;;  %v469_v40 = vpop.permute.xlu0 %468  ;;  %v5135_v1 = vld [vmem:[#allocation10_spill] sm:$0xff] }
  0xdc   :  { %v548_v60 = vand.u32 2147483647, %v540_v14  ;;  %v574_v18 = vand.u32 2147483647, %v566_v54  ;;  %v481_v32 = vsel %vm476_vm3, %v465_v58, %v467_v22  ;;  %v482_v17 = vsel %vm476_vm3, %v463_v39, %v465_v58 }
  0xdd   :  { %v3296_v11 = vadd.f32 %v496_v16, %v3147_v59  ;;  %v3299_v52 = vadd.f32 %v522_v27, %v3150_v55  ;;  %v489_v25 = vsub.f32 %v482_v17, %v5131_v33  ;;  %v490_v48 = vsub.f32 %v481_v32, %v5131_v33  ;;  %v5138_v16 = vld [vmem:[#allocation12_spill] sm:$0xff] }
  0xde   :  { %v3304_v44 = vadd.f32 %v548_v60, %v3155_v4  ;;  %v3307_v56 = vadd.f32 %v574_v18, %v3158_v57  ;;  %v515_v7 = vsub.f32 %v482_v17, %v5132_v15  ;;  %v516_v39 = vsub.f32 %v481_v32, %v5132_v15  ;;  %v5136_v57 = vld [vmem:[#allocation11_spill] sm:$0xff] }
  0xdf   :  { %v497_v59 = vand.u32 2147483647, %v489_v25  ;;  %v498_v45 = vand.u32 2147483647, %v490_v48  ;;  %v541_v55 = vsub.f32 %v482_v17, %v5133_v36  ;;  %v542_v41 = vsub.f32 %v481_v32, %v5133_v36  ;;  %v5140_v18 = vld [vmem:[#allocation15_spill] sm:$0xff] }
  0xe0   :  { %v523_v8 = vand.u32 2147483647, %v515_v7  ;;  %v567_v46 = vsub.f32 %v482_v17, %v5134_v6  ;;  %v568_v4 = vsub.f32 %v481_v32, %v5134_v6  ;;  %v5137_v29 = vsub.f32 %v5135_v1, %v5136_v57 }
  0xe1   :  { %v3321_v14 = vadd.f32 %v497_v59, %v3167_v63  ;;  %v549_v54 = vand.u32 2147483647, %v541_v55  ;;  %v5139_v27 = vsub.f32 %v5135_v1, %v5138_v16  ;;  %v5141_v17 = vsub.f32 %v5135_v1, %v5140_v18 }
  0xe2   :  { %v3318_v58 = vand.u32 2147483647, %v5137_v29  ;;  %v3334_v32 = vadd.f32 %v498_v45, %v3170_v50  ;;  %v524_v48 = vand.u32 2147483647, %v516_v39  ;;  %v3337_v7 = vadd.f32 %v523_v8, %v3173_v0  ;;  %v475_v39 = vpop.permute.xlu1 %474 }
  0xe3   :  { %v3326_v60 = vand.u32 2147483647, %v5139_v27  ;;  %v3331_v25 = vand.u32 2147483647, %v5141_v17  ;;  %v575_v63 = vand.u32 2147483647, %v567_v46  ;;  %v3340_v55 = vadd.f32 %v549_v54, %v3179_v13 }
  0xe4   :  { %v550_v59 = vand.u32 2147483647, %v542_v41  ;;  %v479_v57 = vsel %vm476_vm3, %v469_v40, %v471_v35  ;;  %v480_v1 = vsel %vm476_vm3, %v467_v22, %v469_v40  ;;  %v576_v29 = vand.u32 2147483647, %v568_v4 }
  0xe5   :  { %5142 = vst [vmem:[#allocation13_spill] sm:$0xff] %v3331_v25  ;;  %v3347_v16 = vadd.f32 %v575_v63, %v3189_v24  ;;  %v491_v50 = vsub.f32 %v480_v1, %v5131_v33  ;;  %v492_v0 = vsub.f32 %v479_v57, %v5131_v33  ;;  %v517_v45 = vsub.f32 %v480_v1, %v5132_v15 }
  0xe6   :  { %v518_v13 = vsub.f32 %v479_v57, %v5132_v15  ;;  %v543_v41 = vsub.f32 %v480_v1, %v5133_v36  ;;  %v544_v8 = vsub.f32 %v479_v57, %v5133_v36  ;;  %v569_v22 = vsub.f32 %v480_v1, %v5134_v6 }
  0xe7   :  { %v499_v46 = vand.u32 2147483647, %v491_v50  ;;  %v500_v54 = vand.u32 2147483647, %v492_v0  ;;  %v570_v24 = vsub.f32 %v479_v57, %v5134_v6  ;;  %v525_v4 = vand.u32 2147483647, %v517_v45  ;;  %v473_v57 = vpop.permute.xlu0 %472 }
  0xe8   :  { %v526_v40 = vand.u32 2147483647, %v518_v13  ;;  %v551_v27 = vand.u32 2147483647, %v543_v41  ;;  %v484_v18 = vsel %vm476_vm3, %v475_v39, %v3241_v34  ;;  %v3361_v17 = vadd.f32 %v524_v48, %v3176_v3 }
  0xe9   :  { %v3364_v63 = vadd.f32 %v550_v59, %v3182_v47  ;;  %v3367_v50 = vadd.f32 %v576_v29, %v3192_v21  ;;  %v3370_v1 = vadd.f32 %v499_v46, %v3207_v51  ;;  %v3373_v0 = vadd.f32 %v500_v54, %v3210_v9 }
  0xea   :  { %v3376_v45 = vadd.f32 %v525_v4, %v3213_v2  ;;  %v552_v34 = vand.u32 2147483647, %v544_v8  ;;  %v577_v13 = vand.u32 2147483647, %v569_v22  ;;  %v3380_v3 = vadd.f32 %v526_v40, %v3216_v5 }
  0xeb   :  { %v3383_v47 = vadd.f32 %v551_v27, %v3219_v12  ;;  %v487_v21 = vsub.f32 %v484_v18, %v5131_v33  ;;  %v513_v51 = vsub.f32 %v484_v18, %v5132_v15  ;;  %v578_v48 = vand.u32 2147483647, %v570_v24 }
  0xec   :  { %v539_v9 = vsub.f32 %v484_v18, %v5133_v36  ;;  %v565_v2 = vsub.f32 %v484_v18, %v5134_v6  ;;  %v477_v59 = vsel %vm476_vm3, %v473_v57, %v475_v39  ;;  %v478_v5 = vsel %vm476_vm3, %v471_v35, %v473_v57 }
  0xed   :  { %v495_v29 = vand.u32 2147483647, %v487_v21  ;;  %v521_v41 = vand.u32 2147483647, %v513_v51  ;;  %v494_v12 = vsub.f32 %v477_v59, %v5131_v33  ;;  %v493_v54 = vsub.f32 %v478_v5, %v5131_v33 }
  0xee   :  { %v547_v8 = vand.u32 2147483647, %v539_v9  ;;  %v573_v46 = vand.u32 2147483647, %v565_v2  ;;  %v519_v22 = vsub.f32 %v478_v5, %v5132_v15  ;;  %v520_v39 = vsub.f32 %v477_v59, %v5132_v15  ;;  %v696_v15 = vpop.permute.xlu1 %695  ;;  %v3414_v2 = vpop.permute.xlu0 %693 }
  0xef   :  { %v503_v24 = vadd.f32 %v495_v29, %v3244_v31  ;;  %v529_v4 = vadd.f32 %v521_v41, %v3247_v38  ;;  %v502_v40 = vand.u32 2147483647, %v494_v12  ;;  %v501_v35 = vand.u32 2147483647, %v493_v54  ;;  %v5144_v41 = vld [vmem:[#allocation22_spill] sm:$0xff]  ;;  %v5145_v12 = vld [vmem:[#allocation24_spill] sm:$0xff] }
  0xf0   :  { %v555_v27 = vadd.f32 %v547_v8, %v3251_v53  ;;  %v581_v18 = vadd.f32 %v573_v46, %v3254_v43  ;;  %v527_v57 = vand.u32 2147483647, %v519_v22  ;;  %v3402_v21 = vadd.f32 %v552_v34, %v3222_v26  ;;  %v5147_v54 = vld [vmem:[#allocation37_spill] sm:$0xff] }
  0xf1   :  { %v528_v51 = vand.u32 2147483647, %v520_v39  ;;  %v545_v33 = vsub.f32 %v478_v5, %v5133_v36  ;;  %v546_v9 = vsub.f32 %v477_v59, %v5133_v36  ;;  %v3407_v31 = vadd.f32 %v577_v13, %v3225_v61  ;;  %v5150_v39 = vld [vmem:[#allocation41_spill] sm:$0xff] }
  0xf2   :  { %v3410_v38 = vadd.f32 %v578_v48, %v3230_v30  ;;  %v571_v53 = vsub.f32 %v478_v5, %v5134_v6  ;;  %v572_v43 = vsub.f32 %v477_v59, %v5134_v6  ;;  %v3417_v26 = vadd.f32 %v501_v35, %v3262_v28  ;;  %v5143_v6 = vld [vmem:[#allocation21_spill] sm:$0xff] }
  0xf3   :  { %v3420_v34 = vadd.f32 %v502_v40, %v3257_v37  ;;  %v553_v36 = vand.u32 2147483647, %v545_v33  ;;  %v554_v29 = vand.u32 2147483647, %v546_v9  ;;  %v3423_v61 = vadd.f32 %v527_v57, %v3265_v20  ;;  %v5151_v35 = vld [vmem:[#allocation45_spill] sm:$0xff]  ;;  %v5152_v9 = vld [vmem:[#allocation18_spill] sm:$0xff] }
  0xf4   :  { %v3426_v30 = vadd.f32 %v528_v51, %v3270_v62  ;;  %v579_v13 = vand.u32 2147483647, %v571_v53  ;;  %v580_v48 = vand.u32 2147483647, %v572_v43  ;;  %v607_v59 = vadd.f32 %v5143_v6, %v503_v24  ;;  %v5146_v62 = vld [vmem:[#allocation19_spill] sm:$0xff]  ;;  %v698_v43 = vpop.permute.xlu0 %697 }
  0xf5   :  { %v633_v5 = vadd.f32 %v5144_v41, %v529_v4  ;;  %v659_v28 = vadd.f32 %v5145_v12, %v555_v27  ;;  %v716_v37 = vsel %vm709_vm4, %v3414_v2, %v696_v15  ;;  %v3435_v8 = vadd.f32 %v553_v36, %v3278_v10  ;;  %v5149_v4 = vld [vmem:[#allocation25_spill] sm:$0xff]  ;;  %v5155_v6 = vld [vmem:[#allocation27_spill] sm:$0xff] }
  0xf6   :  { %v3438_v20 = vadd.f32 %v554_v29, %v3281_v23  ;;  %v720_v46 = vsub.f32 %v716_v37, %v5146_v62  ;;  %v746_v22 = vsub.f32 %v716_v37, %v5147_v54  ;;  %v3443_v24 = vadd.f32 %v579_v13, %v3286_v49  ;;  %v700_v23 = vpop.permute.xlu1 %699  ;;  %v5153_v49 = vld [vmem:[#allocation20_spill] sm:$0xff] }
  0xf7   :  { %v685_v40 = vadd.f32 %v5149_v4, %v581_v18  ;;  %v772_v27 = vsub.f32 %v716_v37, %v5150_v39  ;;  %v798_v57 = vsub.f32 %v716_v37, %v5151_v35  ;;  %v3449_v51 = vadd.f32 %v580_v48, %v3289_v42  ;;  %v5154_v18 = vld [vmem:[#allocation23_spill] sm:$0xff]  ;;  %v5157_v48 = vld [vmem:[#allocation26_spill] sm:$0xff]  ;;  %v5160_v4 = vld [vmem:[#allocation29_spill] sm:$0xff] }
  0xf8   :  { %5148 = vst [vmem:[#allocation14_spill] sm:$0xff] %v3443_v24  ;;  %v728_v10 = vand.u32 2147483647, %v720_v46  ;;  %v754_v33 = vand.u32 2147483647, %v746_v22  ;;  %v608_v53 = vadd.f32 %v5152_v9, %v3296_v11  ;;  %v609_v29 = vadd.f32 %v5153_v49, %v3321_v14  ;;  %v5158_v46 = vld [vmem:[#allocation28_spill] sm:$0xff] }
  0xf9   :  { %v780_v36 = vand.u32 2147483647, %v772_v27  ;;  %v634_v13 = vadd.f32 %v5154_v18, %v3299_v52  ;;  %v635_v41 = vadd.f32 %v5155_v6, %v3337_v7  ;;  %v806_v42 = vand.u32 2147483647, %v798_v57 }
  0xfa   :  { %v3459_v12 = vadd.f32 %v728_v10, %v607_v59  ;;  %v660_v37 = vadd.f32 %v5157_v48, %v3304_v44  ;;  %v661_v11 = vadd.f32 %v5158_v46, %v3340_v55  ;;  %v3465_v22 = vadd.f32 %v754_v33, %v633_v5  ;;  %v5161_v33 = vld [vmem:[#allocation30_spill] sm:$0xff] }
  0xfb   :  { %v686_v14 = vadd.f32 %v5160_v4, %v3307_v56  ;;  %v714_v52 = vsel %vm709_vm4, %v698_v43, %v700_v23  ;;  %v715_v7 = vsel %vm709_vm4, %v696_v15, %v698_v43  ;;  %v687_v9 = vadd.f32 %v5161_v33, %v3347_v16 }
  0xfc   :  { %5156 = vst [vmem:[#allocation16_spill] sm:$0xff] %v3459_v12  ;;  %5159 = vst [vmem:[#allocation17_spill] sm:$0xff] %v3465_v22  ;;  %v721_v59 = vsub.f32 %v715_v7, %v5146_v62  ;;  %v722_v27 = vsub.f32 %v714_v52, %v5146_v62  ;;  %v747_v44 = vsub.f32 %v715_v7, %v5147_v54  ;;  %v5162_v12 = vld [vmem:[#allocation31_spill] sm:$0xff] }
  0xfd   :  { %v748_v57 = vsub.f32 %v714_v52, %v5147_v54  ;;  %v773_v55 = vsub.f32 %v715_v7, %v5150_v39  ;;  %v774_v5 = vsub.f32 %v714_v52, %v5150_v39  ;;  %v799_v56 = vsub.f32 %v715_v7, %v5151_v35  ;;  %v5163_v7 = vld [vmem:[#allocation33_spill] sm:$0xff] }
  0xfe   :  { %v800_v10 = vsub.f32 %v714_v52, %v5151_v35  ;;  %v729_v15 = vand.u32 2147483647, %v721_v59  ;;  %v730_v43 = vand.u32 2147483647, %v722_v27  ;;  %v755_v49 = vand.u32 2147483647, %v747_v44  ;;  %v702_v27 = vpop.permute.xlu0 %701 }
  0xff   :  { %v3483_v18 = vadd.f32 %v780_v36, %v659_v28  ;;  %v756_v6 = vand.u32 2147483647, %v748_v57  ;;  %v781_v48 = vand.u32 2147483647, %v773_v55  ;;  %v782_v46 = vand.u32 2147483647, %v774_v5  ;;  %v3497_v36 = vpop.permute.xlu1 %703 }
 0x100   :  { %v3485_v4 = vadd.f32 %v806_v42, %v685_v40  ;;  %v807_v22 = vand.u32 2147483647, %v799_v56  ;;  %v610_v25 = vadd.f32 %v5162_v12, %v3334_v32  ;;  %v611_v52 = vadd.f32 %v5163_v7, %v3370_v1  ;;  %v5164_v1 = vld [vmem:[#allocation32_spill] sm:$0xff]  ;;  %v5166_v57 = vld [vmem:[#allocation35_spill] sm:$0xff] }
 0x101   :  { %v3491_v24 = vadd.f32 %v729_v15, %v608_v53  ;;  %v3493_v16 = vadd.f32 %v730_v43, %v609_v29  ;;  %v3495_v59 = vadd.f32 %v755_v49, %v634_v13  ;;  %v808_v28 = vand.u32 2147483647, %v800_v10  ;;  %v5165_v29 = vld [vmem:[#allocation34_spill] sm:$0xff] }
 0x102   :  { %v3499_v44 = vadd.f32 %v756_v6, %v635_v41  ;;  %v3501_v40 = vadd.f32 %v781_v48, %v660_v37  ;;  %v3503_v42 = vadd.f32 %v782_v46, %v661_v11  ;;  %v3505_v32 = vadd.f32 %v807_v22, %v686_v14  ;;  %v5167_v41 = vld [vmem:[#allocation38_spill] sm:$0xff]  ;;  %v5168_v37 = vld [vmem:[#allocation36_spill] sm:$0xff] }
 0x103   :  { %v3507_v12 = vadd.f32 %v808_v28, %v687_v9  ;;  %v636_v53 = vadd.f32 %v5164_v1, %v3361_v17  ;;  %v637_v13 = vadd.f32 %v5165_v29, %v3376_v45  ;;  %v662_v55 = vadd.f32 %v5166_v57, %v3364_v63  ;;  %v5169_v9 = vld [vmem:[#allocation39_spill] sm:$0xff]  ;;  %v708_v7 = vpop.permute.xlu1 %707  ;;  %v5170_v28 = vld [vmem:[#allocation42_spill] sm:$0xff] }
 0x104   :  { %v663_v5 = vadd.f32 %v5167_v41, %v3383_v47  ;;  %v688_v11 = vadd.f32 %v5168_v37, %v3367_v50  ;;  %v712_v22 = vsel %vm709_vm4, %v702_v27, %v3497_v36  ;;  %v713_v14 = vsel %vm709_vm4, %v700_v23, %v702_v27  ;;  %v5171_v29 = vld [vmem:[#allocation43_spill] sm:$0xff]  ;;  %v5172_v41 = vld [vmem:[#allocation44_spill] sm:$0xff] }
 0x105   :  { %v723_v17 = vsub.f32 %v713_v14, %v5146_v62  ;;  %v724_v45 = vsub.f32 %v712_v22, %v5146_v62  ;;  %v749_v56 = vsub.f32 %v713_v14, %v5147_v54  ;;  %v750_v63 = vsub.f32 %v712_v22, %v5147_v54 }
 0x106   :  { %v775_v47 = vsub.f32 %v713_v14, %v5150_v39  ;;  %v776_v10 = vsub.f32 %v712_v22, %v5150_v39  ;;  %v801_v50 = vsub.f32 %v713_v14, %v5151_v35  ;;  %v802_v33 = vsub.f32 %v712_v22, %v5151_v35  ;;  %v5173_v22 = vld [vmem:[#allocation46_spill] sm:$0xff]  ;;  %v706_v14 = vpop.permute.xlu0 %705 }
 0x107   :  { %v689_v15 = vadd.f32 %v5169_v9, %v3407_v31  ;;  %v731_v23 = vand.u32 2147483647, %v723_v17  ;;  %v732_v43 = vand.u32 2147483647, %v724_v45  ;;  %v757_v49 = vand.u32 2147483647, %v749_v56 }
 0x108   :  { %v758_v6 = vand.u32 2147483647, %v750_v63  ;;  %v783_v48 = vand.u32 2147483647, %v775_v47  ;;  %v784_v46 = vand.u32 2147483647, %v776_v10  ;;  %v614_v27 = vadd.f32 %v5170_v28, %v3420_v34 }
 0x109   :  { %v809_v1 = vand.u32 2147483647, %v801_v50  ;;  %v640_v57 = vadd.f32 %v5171_v29, %v3426_v30  ;;  %v666_v37 = vadd.f32 %v5172_v41, %v3438_v20  ;;  %v692_v31 = vadd.f32 %v5173_v22, %v3449_v51  ;;  %v5175_v50 = vld [vmem:[#allocation47_spill] sm:$0xff]  ;;  %v5180_v28 = vld [vmem:[#allocation13_spill] sm:$0xff] }
 0x10a   :  { %v3542_v17 = vadd.f32 %v731_v23, %v610_v25  ;;  %v3544_v45 = vadd.f32 %v732_v43, %v611_v52  ;;  %v3546_v56 = vadd.f32 %v757_v49, %v636_v53  ;;  %v810_v63 = vand.u32 2147483647, %v802_v33 }
 0x10b   :  { %v3548_v47 = vadd.f32 %v758_v6, %v637_v13  ;;  %v3550_v34 = vadd.f32 %v783_v48, %v662_v55  ;;  %v3552_v10 = vadd.f32 %v784_v46, %v663_v5  ;;  %v717_v30 = vsel %vm709_vm4, %v708_v7, %v3414_v2  ;;  %v5174_v55 = vld [vmem:[#allocation40_spill] sm:$0xff]  ;;  %v825_v48 = vpop.permute.xlu1 %824 }
 0x10c   :  { %v3557_v20 = vadd.f32 %v809_v1, %v688_v11  ;;  %v727_v25 = vsub.f32 %v717_v30, %v5146_v62  ;;  %v753_v51 = vsub.f32 %v717_v30, %v5147_v54  ;;  %v779_v52 = vsub.f32 %v717_v30, %v5150_v39  ;;  %v5176_v11 = vld [vmem:[#allocation48_spill] sm:$0xff] }
 0x10d   :  { %v3562_v53 = vadd.f32 %v810_v63, %v689_v15  ;;  %v805_v13 = vsub.f32 %v717_v30, %v5151_v35  ;;  %v612_v5 = vadd.f32 %v5174_v55, %v3373_v0  ;;  %v613_v33 = vadd.f32 %v5175_v50, %v3417_v26  ;;  %v5177_v15 = vld [vmem:[#allocation49_spill] sm:$0xff] }
 0x10e   :  { %v735_v2 = vand.u32 2147483647, %v727_v25  ;;  %v638_v9 = vadd.f32 %v5176_v11, %v3380_v3  ;;  %v639_v23 = vadd.f32 %v3318_v58, %v3423_v61  ;;  %v664_v43 = vadd.f32 %v5177_v15, %v3402_v21  ;;  %v3585_v3 = vpop.permute.xlu0 %822  ;;  %v5178_v58 = vld [vmem:[#allocation50_spill] sm:$0xff] }
 0x10f   :  { %v761_v49 = vand.u32 2147483647, %v753_v51  ;;  %v787_v6 = vand.u32 2147483647, %v779_v52  ;;  %v665_v0 = vadd.f32 %v3326_v60, %v3435_v8  ;;  %v710_v26 = vsel %vm709_vm4, %v706_v14, %v708_v7  ;;  %v5179_v21 = vld [vmem:[#allocation14_spill] sm:$0xff] }
 0x110   :  { %v813_v46 = vand.u32 2147483647, %v805_v13  ;;  %v690_v61 = vadd.f32 %v5178_v58, %v3410_v38  ;;  %v691_v1 = vadd.f32 %v5180_v28, %v5179_v21  ;;  %v711_v29 = vsel %vm709_vm4, %v3497_v36, %v706_v14 }
 0x111   :  { %v3596_v60 = vadd.f32 %v735_v2, %v614_v27  ;;  %v725_v8 = vsub.f32 %v711_v29, %v5146_v62  ;;  %v726_v7 = vsub.f32 %v710_v26, %v5146_v62  ;;  %v751_v41 = vsub.f32 %v711_v29, %v5147_v54 }
 0x112   :  { %v752_v38 = vsub.f32 %v710_v26, %v5147_v54  ;;  %v777_v22 = vsub.f32 %v711_v29, %v5150_v39  ;;  %v778_v63 = vsub.f32 %v710_v26, %v5150_v39  ;;  %v803_v30 = vsub.f32 %v711_v29, %v5151_v35  ;;  %v827_v2 = vpop.permute.xlu0 %826 }
 0x113   :  { %v3605_v36 = vadd.f32 %v761_v49, %v640_v57  ;;  %v733_v14 = vand.u32 2147483647, %v725_v8  ;;  %v734_v27 = vand.u32 2147483647, %v726_v7  ;;  %v759_v25 = vand.u32 2147483647, %v751_v41  ;;  %v829_v57 = vpop.permute.xlu1 %828 }
 0x114   :  { %v3607_v51 = vadd.f32 %v787_v6, %v666_v37  ;;  %v760_v62 = vand.u32 2147483647, %v752_v38  ;;  %v785_v52 = vand.u32 2147483647, %v777_v22  ;;  %v804_v13 = vsub.f32 %v710_v26, %v5151_v35 }
 0x115   :  { %v3610_v54 = vadd.f32 %v813_v46, %v692_v31  ;;  %v3612_v55 = vadd.f32 %v733_v14, %v612_v5  ;;  %v786_v39 = vand.u32 2147483647, %v778_v63  ;;  %v3615_v50 = vstv %s3569_s30 }
 0x116   :  { %v3617_v11 = vadd.f32 %v734_v27, %v613_v33  ;;  %v3619_v37 = vadd.f32 %v759_v25, %v638_v9  ;;  %v3621_v15 = vadd.f32 %v760_v62, %v639_v23  ;;  %v811_v49 = vand.u32 2147483647, %v803_v30 }
 0x117   :  { %v3623_v6 = vadd.f32 %v785_v52, %v664_v43  ;;  %v3627_v35 = vstv %s3577_s8  ;;  %v3630_v31 = vstv %s3583_s9  ;;  %v812_v5 = vand.u32 2147483647, %v804_v13  ;;  %v3660_v13 = vpop.permute.xlu1 %832 }
 0x118   :  { %v3633_v26 = vstv %s3594_s2  ;;  %v845_v33 = vsel %vm838_vm5, %v3585_v3, %v825_v48  ;;  %v843_v9 = vsel %vm838_vm5, %v827_v2, %v829_v57  ;;  %v3644_v21 = vadd.f32 %v786_v39, %v665_v0  ;;  %v831_v39 = vpop.permute.xlu0 %830 }
 0x119   :  { %v849_v23 = vsub.f32 %v845_v33, %v3615_v50  ;;  %v875_v43 = vsub.f32 %v845_v33, %v3627_v35  ;;  %v901_v46 = vsub.f32 %v845_v33, %v3630_v31  ;;  %v927_v58 = vsub.f32 %v845_v33, %v3633_v26 }
 0x11a   :  { %v844_v28 = vsel %vm838_vm5, %v825_v48, %v827_v2  ;;  %v851_v29 = vsub.f32 %v843_v9, %v3615_v50  ;;  %v877_v8 = vsub.f32 %v843_v9, %v3627_v35  ;;  %v903_v27 = vsub.f32 %v843_v9, %v3630_v31  ;;  %v5181_v48 = vld [vmem:[#allocation16_spill] sm:$0xff]  ;;  %v5182_v2 = vld [vmem:[#allocation17_spill] sm:$0xff] }
 0x11b   :  { %v857_v7 = vand.u32 2147483647, %v849_v23  ;;  %v883_v41 = vand.u32 2147483647, %v875_v43  ;;  %v909_v38 = vand.u32 2147483647, %v901_v46  ;;  %v850_v22 = vsub.f32 %v844_v28, %v3615_v50 }
 0x11c   :  { %v935_v63 = vand.u32 2147483647, %v927_v58  ;;  %v859_v30 = vand.u32 2147483647, %v851_v29  ;;  %v876_v14 = vsub.f32 %v844_v28, %v3627_v35  ;;  %v3653_v0 = vadd.f32 %v811_v49, %v690_v61 }
 0x11d   :  { %v3655_v25 = vadd.f32 %v812_v5, %v691_v1  ;;  %v3658_v62 = vadd.f32 %v857_v7, %v5181_v48  ;;  %v885_v52 = vand.u32 2147483647, %v877_v8  ;;  %v3663_v33 = vadd.f32 %v883_v41, %v5182_v2 }
 0x11e   :  { %v3666_v23 = vadd.f32 %v909_v38, %v3483_v18  ;;  %v3669_v43 = vadd.f32 %v935_v63, %v3485_v4  ;;  %v858_v61 = vand.u32 2147483647, %v850_v22  ;;  %v3672_v1 = vadd.f32 %v859_v30, %v3493_v16 }
 0x11f   :  { %v884_v49 = vand.u32 2147483647, %v876_v14  ;;  %v902_v5 = vsub.f32 %v844_v28, %v3630_v31  ;;  %v928_v46 = vsub.f32 %v844_v28, %v3633_v26  ;;  %v911_v58 = vand.u32 2147483647, %v903_v27  ;;  %v837_v14 = vpop.permute.xlu1 %836  ;;  %v835_v27 = vpop.permute.xlu0 %834 }
 0x120   :  { %v929_v29 = vsub.f32 %v843_v9, %v3633_v26  ;;  %v841_v18 = vsel %vm838_vm5, %v831_v39, %v3660_v13  ;;  %v842_v4 = vsel %vm838_vm5, %v829_v57, %v831_v39  ;;  %v3683_v8 = vadd.f32 %v885_v52, %v3499_v44 }
 0x121   :  { %v910_v16 = vand.u32 2147483647, %v902_v5  ;;  %v936_v7 = vand.u32 2147483647, %v928_v46  ;;  %v852_v41 = vsub.f32 %v842_v4, %v3615_v50  ;;  %v853_v28 = vsub.f32 %v841_v18, %v3615_v50 }
 0x122   :  { %v937_v38 = vand.u32 2147483647, %v929_v29  ;;  %v878_v22 = vsub.f32 %v842_v4, %v3627_v35  ;;  %v879_v9 = vsub.f32 %v841_v18, %v3627_v35  ;;  %v3690_v63 = vadd.f32 %v858_v61, %v3491_v24 }
 0x123   :  { %v3693_v30 = vadd.f32 %v884_v49, %v3495_v59  ;;  %v860_v57 = vand.u32 2147483647, %v852_v41  ;;  %v904_v44 = vsub.f32 %v842_v4, %v3630_v31  ;;  %v3697_v48 = vadd.f32 %v910_v16, %v3501_v40 }
 0x124   :  { %v3700_v52 = vadd.f32 %v911_v58, %v3503_v42  ;;  %v3703_v39 = vadd.f32 %v936_v7, %v3505_v32  ;;  %v861_v2 = vand.u32 2147483647, %v853_v28  ;;  %v886_v24 = vand.u32 2147483647, %v878_v22  ;;  %v3736_v28 = vpop.permute.xlu0 %951 }
 0x125   :  { %v887_v61 = vand.u32 2147483647, %v879_v9  ;;  %v905_v59 = vsub.f32 %v841_v18, %v3630_v31  ;;  %v930_v49 = vsub.f32 %v842_v4, %v3633_v26  ;;  %v3708_v5 = vadd.f32 %v937_v38, %v3507_v12  ;;  %v954_v38 = vpop.permute.xlu1 %953 }
 0x126   :  { %v3711_v46 = vadd.f32 %v860_v57, %v3542_v17  ;;  %v912_v40 = vand.u32 2147483647, %v904_v44  ;;  %v931_v42 = vsub.f32 %v841_v18, %v3633_v26  ;;  %v3715_v58 = vadd.f32 %v861_v2, %v3544_v45 }
 0x127   :  { %v913_v32 = vand.u32 2147483647, %v905_v59  ;;  %v938_v29 = vand.u32 2147483647, %v930_v49  ;;  %v846_v16 = vsel %vm838_vm5, %v837_v14, %v3585_v3  ;;  %v3726_v18 = vadd.f32 %v886_v24, %v3546_v56 }
 0x128   :  { %v939_v7 = vand.u32 2147483647, %v931_v42  ;;  %v856_v4 = vsub.f32 %v846_v16, %v3615_v50  ;;  %v882_v12 = vsub.f32 %v846_v16, %v3627_v35  ;;  %v908_v17 = vsub.f32 %v846_v16, %v3630_v31 }
 0x129   :  { %v3729_v45 = vadd.f32 %v887_v61, %v3548_v47  ;;  %v934_v41 = vsub.f32 %v846_v16, %v3633_v26  ;;  %v839_v3 = vsel %vm838_vm5, %v835_v27, %v837_v14  ;;  %v3739_v22 = vadd.f32 %v912_v40, %v3550_v34  ;;  %v956_v16 = vpop.permute.xlu0 %955 }
 0x12a   :  { %v3742_v9 = vadd.f32 %v913_v32, %v3552_v10  ;;  %v864_v56 = vand.u32 2147483647, %v856_v4  ;;  %v890_v57 = vand.u32 2147483647, %v882_v12  ;;  %v916_v47 = vand.u32 2147483647, %v908_v17 }
 0x12b   :  { %v840_v44 = vsel %vm838_vm5, %v3660_v13, %v835_v27  ;;  %v855_v14 = vsub.f32 %v839_v3, %v3615_v50  ;;  %v881_v2 = vsub.f32 %v839_v3, %v3627_v35  ;;  %v3754_v34 = vadd.f32 %v938_v29, %v3557_v20 }
 0x12c   :  { %v3757_v10 = vadd.f32 %v939_v7, %v3562_v53  ;;  %v942_v24 = vand.u32 2147483647, %v934_v41  ;;  %v854_v61 = vsub.f32 %v840_v44, %v3615_v50  ;;  %v3761_v59 = vadd.f32 %v864_v56, %v3596_v60 }
 0x12d   :  { %v863_v49 = vand.u32 2147483647, %v855_v14  ;;  %v880_v13 = vsub.f32 %v840_v44, %v3627_v35  ;;  %v889_v27 = vand.u32 2147483647, %v881_v2  ;;  %v906_v42 = vsub.f32 %v840_v44, %v3630_v31  ;;  %v958_v35 = vpop.permute.xlu1 %957 }
 0x12e   :  { %v862_v40 = vand.u32 2147483647, %v854_v61  ;;  %v907_v20 = vsub.f32 %v839_v3, %v3630_v31  ;;  %v932_v32 = vsub.f32 %v840_v44, %v3633_v26  ;;  %v3768_v53 = vadd.f32 %v890_v57, %v3605_v36 }
 0x12f   :  { %v3771_v50 = vadd.f32 %v916_v47, %v3607_v51  ;;  %v888_v60 = vand.u32 2147483647, %v880_v13  ;;  %v933_v29 = vsub.f32 %v839_v3, %v3633_v26  ;;  %v3775_v7 = vadd.f32 %v942_v24, %v3610_v54 }
 0x130   :  { %v3778_v31 = vadd.f32 %v863_v49, %v3617_v11  ;;  %v3781_v36 = vadd.f32 %v889_v27, %v3621_v15  ;;  %v914_v4 = vand.u32 2147483647, %v906_v42  ;;  %v915_v51 = vand.u32 2147483647, %v907_v20  ;;  %v960_v49 = vpop.permute.xlu0 %959 }
 0x131   :  { %v940_v12 = vand.u32 2147483647, %v932_v32  ;;  %v3785_v17 = vstv %s3723_s3  ;;  %v3788_v26 = vadd.f32 %v862_v40, %v3612_v55  ;;  %v3791_v41 = vadd.f32 %v888_v60, %v3619_v37  ;;  %v3822_v61 = vpop.permute.xlu1 %961 }
 0x132   :  { %v941_v54 = vand.u32 2147483647, %v933_v29  ;;  %v3794_v3 = vstv %s3734_s10  ;;  %v3797_v11 = vadd.f32 %v914_v4, %v3623_v6  ;;  %v3800_v15 = vstv %s3744_s11 }
 0x133   :  { %v3803_v56 = vstv %s3751_s12  ;;  %v974_v57 = vsel %vm967_vm6, %v3736_v28, %v954_v38  ;;  %v3813_v14 = vadd.f32 %v915_v51, %v3644_v21  ;;  %v3816_v6 = vadd.f32 %v940_v12, %v3653_v0 }
 0x134   :  { %v978_v55 = vsub.f32 %v974_v57, %v3785_v17  ;;  %v1004_v47 = vsub.f32 %v974_v57, %v3794_v3  ;;  %v1030_v37 = vsub.f32 %v974_v57, %v3800_v15  ;;  %v1056_v44 = vsub.f32 %v974_v57, %v3803_v56 }
 0x135   :  { %v972_v2 = vsel %vm967_vm6, %v956_v16, %v958_v35  ;;  %v973_v24 = vsel %vm967_vm6, %v954_v38, %v956_v16  ;;  %v3829_v60 = vadd.f32 %v941_v54, %v3655_v25  ;;  %v970_v38 = vsel %vm967_vm6, %v960_v49, %v3822_v61 }
 0x136   :  { %v986_v13 = vand.u32 2147483647, %v978_v55  ;;  %v1012_v27 = vand.u32 2147483647, %v1004_v47  ;;  %v1038_v40 = vand.u32 2147483647, %v1030_v37  ;;  %v979_v42 = vsub.f32 %v973_v24, %v3785_v17 }
 0x137   :  { %v1064_v20 = vand.u32 2147483647, %v1056_v44  ;;  %v980_v21 = vsub.f32 %v972_v2, %v3785_v17  ;;  %v1005_v0 = vsub.f32 %v973_v24, %v3794_v3  ;;  %v1006_v32 = vsub.f32 %v972_v2, %v3794_v3 }
 0x138   :  { %v987_v29 = vand.u32 2147483647, %v979_v42  ;;  %v971_v16 = vsel %vm967_vm6, %v958_v35, %v960_v49  ;;  %v3837_v4 = vadd.f32 %v986_v13, %v3658_v62  ;;  %v3840_v51 = vadd.f32 %v1012_v27, %v3663_v33 }
 0x139   :  { %v988_v12 = vand.u32 2147483647, %v980_v21  ;;  %v1013_v57 = vand.u32 2147483647, %v1005_v0  ;;  %v1014_v55 = vand.u32 2147483647, %v1006_v32  ;;  %v1031_v25 = vsub.f32 %v973_v24, %v3800_v15 }
 0x13a   :  { %v1032_v54 = vsub.f32 %v972_v2, %v3800_v15  ;;  %v1057_v47 = vsub.f32 %v973_v24, %v3803_v56  ;;  %v3846_v37 = vadd.f32 %v1038_v40, %v3666_v23  ;;  %v3849_v35 = vadd.f32 %v1064_v20, %v3669_v43 }
 0x13b   :  { %v3852_v62 = vadd.f32 %v987_v29, %v3690_v63  ;;  %v1058_v33 = vsub.f32 %v972_v2, %v3803_v56  ;;  %v1039_v44 = vand.u32 2147483647, %v1031_v25  ;;  %v981_v27 = vsub.f32 %v971_v16, %v3785_v17  ;;  %v966_v25 = vpop.permute.xlu1 %965 }
 0x13c   :  { %v1040_v49 = vand.u32 2147483647, %v1032_v54  ;;  %v1065_v13 = vand.u32 2147483647, %v1057_v47  ;;  %v982_v21 = vsub.f32 %v970_v38, %v3785_v17  ;;  %v1007_v24 = vsub.f32 %v971_v16, %v3794_v3 }
 0x13d   :  { %v1066_v42 = vand.u32 2147483647, %v1058_v33  ;;  %v1008_v23 = vsub.f32 %v970_v38, %v3794_v3  ;;  %v3860_v43 = vadd.f32 %v988_v12, %v3672_v1  ;;  %v3863_v63 = vadd.f32 %v1013_v57, %v3693_v30  ;;  %v964_v57 = vpop.permute.xlu0 %963 }
 0x13e   :  { %v3866_v2 = vadd.f32 %v1014_v55, %v3683_v8  ;;  %v989_v40 = vand.u32 2147483647, %v981_v27  ;;  %v3869_v20 = vadd.f32 %v1039_v44, %v3697_v48  ;;  %v3872_v0 = vadd.f32 %v1040_v49, %v3700_v52 }
 0x13f   :  { %v990_v32 = vand.u32 2147483647, %v982_v21  ;;  %v1015_v29 = vand.u32 2147483647, %v1007_v24  ;;  %v1016_v54 = vand.u32 2147483647, %v1008_v23  ;;  %v1033_v1 = vsub.f32 %v971_v16, %v3800_v15 }
 0x140   :  { %v1034_v12 = vsub.f32 %v970_v38, %v3800_v15  ;;  %v1059_v30 = vsub.f32 %v971_v16, %v3803_v56  ;;  %v3878_v8 = vadd.f32 %v1065_v13, %v3703_v39  ;;  %v3881_v48 = vadd.f32 %v1066_v42, %v3708_v5 }
 0x141   :  { %v3884_v52 = vadd.f32 %v989_v40, %v3711_v46  ;;  %v1060_v55 = vsub.f32 %v970_v38, %v3803_v56  ;;  %v1041_v47 = vand.u32 2147483647, %v1033_v1  ;;  %v975_v49 = vsel %vm967_vm6, %v966_v25, %v3736_v28  ;;  %v1083_v40 = vpop.permute.xlu1 %1082 }
 0x142   :  { %v1042_v33 = vand.u32 2147483647, %v1034_v12  ;;  %v1067_v44 = vand.u32 2147483647, %v1059_v30  ;;  %v985_v27 = vsub.f32 %v975_v49, %v3785_v17  ;;  %v1011_v39 = vsub.f32 %v975_v49, %v3794_v3 }
 0x143   :  { %v1068_v16 = vand.u32 2147483647, %v1060_v55  ;;  %v1037_v5 = vsub.f32 %v975_v49, %v3800_v15  ;;  %v3896_v46 = vadd.f32 %v990_v32, %v3715_v58  ;;  %v3899_v38 = vadd.f32 %v1015_v29, %v3726_v18 }
 0x144   :  { %v3902_v13 = vadd.f32 %v1016_v54, %v3729_v45  ;;  %v1063_v28 = vsub.f32 %v975_v49, %v3803_v56  ;;  %v3908_v42 = vadd.f32 %v1041_v47, %v3739_v22  ;;  %v3911_v21 = vadd.f32 %v1042_v33, %v3742_v9  ;;  %v3928_v9 = vpop.permute.xlu0 %1080 }
 0x145   :  { %v3914_v24 = vadd.f32 %v1067_v44, %v3754_v34  ;;  %v993_v58 = vand.u32 2147483647, %v985_v27  ;;  %v3919_v18 = vadd.f32 %v1068_v16, %v3757_v10  ;;  %v1019_v45 = vand.u32 2147483647, %v1011_v39  ;;  %v1087_v39 = vpop.permute.xlu1 %1086 }
 0x146   :  { %v968_v23 = vsel %vm967_vm6, %v964_v57, %v966_v25  ;;  %v969_v22 = vsel %vm967_vm6, %v3822_v61, %v964_v57  ;;  %v1045_v34 = vand.u32 2147483647, %v1037_v5  ;;  %v1071_v32 = vand.u32 2147483647, %v1063_v28 }
 0x147   :  { %v983_v29 = vsub.f32 %v969_v22, %v3785_v17  ;;  %v3933_v10 = vadd.f32 %v993_v58, %v3761_v59  ;;  %v984_v25 = vsub.f32 %v968_v23, %v3785_v17  ;;  %v1009_v54 = vsub.f32 %v969_v22, %v3794_v3 }
 0x148   :  { %v1010_v61 = vsub.f32 %v968_v23, %v3794_v3  ;;  %v1035_v12 = vsub.f32 %v969_v22, %v3800_v15  ;;  %v1036_v30 = vsub.f32 %v968_v23, %v3800_v15  ;;  %v1061_v57 = vsub.f32 %v969_v22, %v3803_v56 }
 0x149   :  { %v991_v1 = vand.u32 2147483647, %v983_v29  ;;  %v992_v55 = vand.u32 2147483647, %v984_v25  ;;  %v1017_v47 = vand.u32 2147483647, %v1009_v54  ;;  %v1062_v59 = vsub.f32 %v968_v23, %v3803_v56 }
 0x14a   :  { %v1018_v33 = vand.u32 2147483647, %v1010_v61  ;;  %v3943_v17 = vadd.f32 %v1019_v45, %v3768_v53  ;;  %v3946_v3 = vadd.f32 %v1045_v34, %v3771_v50  ;;  %v1043_v44 = vand.u32 2147483647, %v1035_v12  ;;  %v1085_v53 = vpop.permute.xlu0 %1084 }
 0x14b   :  { %v1044_v49 = vand.u32 2147483647, %v1036_v30  ;;  %v3949_v15 = vadd.f32 %v1071_v32, %v3775_v7  ;;  %v3952_v16 = vadd.f32 %v991_v1, %v3788_v26  ;;  %v3955_v27 = vadd.f32 %v992_v55, %v3778_v31 }
 0x14c   :  { %v1069_v56 = vand.u32 2147483647, %v1061_v57  ;;  %v3958_v5 = vadd.f32 %v1017_v47, %v3791_v41  ;;  %v3961_v50 = vadd.f32 %v1018_v33, %v3781_v36  ;;  %v1070_v28 = vand.u32 2147483647, %v1062_v59  ;;  %v3998_v59 = vpop.permute.xlu1 %1090 }
 0x14d   :  { %v3964_v58 = vstv %s3893_s13  ;;  %v3967_v7 = vadd.f32 %v1043_v44, %v3797_v11  ;;  %v3970_v26 = vstv %s3905_s14  ;;  %v3973_v45 = vstv %s3916_s15 }
 0x14e   :  { %v3976_v31 = vstv %s3926_s16  ;;  %v3979_v23 = vadd.f32 %v1044_v49, %v3813_v14  ;;  %v1103_v36 = vsel %vm1096_vm7, %v3928_v9, %v1083_v40  ;;  %v1101_v41 = vsel %vm1096_vm7, %v1085_v53, %v1087_v39  ;;  %v1089_v44 = vpop.permute.xlu0 %1088  ;;  %s2233_s16 = sld [smem:[#allocation6 + $0x1]] }
 0x14f   :  { %v1102_v11 = vsel %vm1096_vm7, %v1083_v40, %v1085_v53  ;;  %v1107_v22 = vsub.f32 %v1103_v36, %v3964_v58  ;;  %v1133_v34 = vsub.f32 %v1103_v36, %v3970_v26  ;;  %v1159_v32 = vsub.f32 %v1103_v36, %v3973_v45 }
 0x150   :  { %5183 = vst [vmem:[#allocation10_spill] sm:$0xff] %v3979_v23  ;;  %v1185_v29 = vsub.f32 %v1103_v36, %v3976_v31  ;;  %v1108_v14 = vsub.f32 %v1102_v11, %v3964_v58  ;;  %v1109_v25 = vsub.f32 %v1101_v41, %v3964_v58  ;;  %v1134_v54 = vsub.f32 %v1102_v11, %v3970_v26 }
 0x151   :  { %v1135_v61 = vsub.f32 %v1101_v41, %v3970_v26  ;;  %v1115_v1 = vand.u32 2147483647, %v1107_v22  ;;  %v1141_v12 = vand.u32 2147483647, %v1133_v34  ;;  %v1167_v30 = vand.u32 2147483647, %v1159_v32 }
 0x152   :  { %v1160_v40 = vsub.f32 %v1102_v11, %v3973_v45  ;;  %v1193_v57 = vand.u32 2147483647, %v1185_v29  ;;  %v1116_v55 = vand.u32 2147483647, %v1108_v14  ;;  %v1117_v47 = vand.u32 2147483647, %v1109_v25 }
 0x153   :  { %v1161_v33 = vsub.f32 %v1101_v41, %v3973_v45  ;;  %v1123_v49 = vadd.f32 %v1115_v1, %v3837_v4  ;;  %v1149_v53 = vadd.f32 %v1141_v12, %v3840_v51  ;;  %v1175_v36 = vadd.f32 %v1167_v30, %v3846_v37 }
 0x154   :  { %v1142_v23 = vand.u32 2147483647, %v1134_v54  ;;  %v4004_v22 = vadd.f32 %v1069_v56, %v3816_v6  ;;  %v4007_v34 = vadd.f32 %v1070_v28, %v3829_v60  ;;  %v1201_v32 = vadd.f32 %v1193_v57, %v3849_v35 }
 0x155   :  { %v1143_v29 = vand.u32 2147483647, %v1135_v61  ;;  %v4010_v14 = vmul.f32 0.11111111, %v1123_v49  ;;  %v1124_v25 = vadd.f32 %v1116_v55, %v3852_v62  ;;  %v1125_v4 = vadd.f32 %v1117_v47, %v3860_v43 }
 0x156   :  { %v1099_v51 = vsel %vm1096_vm7, %v1089_v44, %v3998_v59  ;;  %v1150_v37 = vadd.f32 %v1142_v23, %v3863_v63  ;;  %v1168_v56 = vand.u32 2147483647, %v1160_v40  ;;  %v1169_v60 = vand.u32 2147483647, %v1161_v33 }
 0x157   :  { %5184 = vst [vmem:[#allocation11_spill] sm:$0xff] %v4010_v14  ;;  %v1151_v6 = vadd.f32 %v1143_v29, %v3866_v2  ;;  %v4019_v28 = vmul.f32 0.11111111, %v1149_v53  ;;  %v4021_v35 = vmul.f32 0.11111111, %v1175_v36  ;;  %v1186_v62 = vsub.f32 %v1102_v11, %v3976_v31 }
 0x158   :  { %v4023_v54 = vmul.f32 0.11111111, %v1201_v32  ;;  %v5064_v43 = vsub.f32 1.0, %v4010_v14  ;;  %v1176_v61 = vadd.f32 %v1168_v56, %v3869_v20  ;;  %v1177_v1 = vadd.f32 %v1169_v60, %v3872_v0  ;;  %v1095_v0 = vpop.permute.xlu1 %1094 }
 0x159   :  { %5185 = vst [vmem:[#allocation12_spill] sm:$0xff] %v4021_v35  ;;  %v1187_v63 = vsub.f32 %v1101_v41, %v3976_v31  ;;  %v1194_v23 = vand.u32 2147483647, %v1186_v62  ;;  %v4030_v2 = vmul.f32 0.11111111, %v1124_v25  ;;  %v1100_v30 = vsel %vm1096_vm7, %v1087_v39, %v1089_v44 }
 0x15a   :  { %v4032_v12 = vmul.f32 0.11111111, %v1125_v4  ;;  %v4036_v57 = vmul.f32 0.11111111, %v1150_v37  ;;  %v4038_v11 = vmul.f32 0.11111111, %v1151_v6  ;;  %v1110_v55 = vsub.f32 %v1100_v30, %v3964_v58 }
 0x15b   :  { %5186 = vst [vmem:[#allocation15_spill] sm:$0xff] %v4030_v2  ;;  %v1195_v40 = vand.u32 2147483647, %v1187_v63  ;;  %v5068_v20 = vsub.f32 1.0, %v4019_v28  ;;  %v1202_v41 = vadd.f32 %v1194_v23, %v3878_v8  ;;  %v4044_v47 = vmul.f32 0.11111111, %v1176_v61 }
 0x15c   :  { %5187 = vst [vmem:[#allocation21_spill] sm:$0xff] %v4032_v12  ;;  %5188 = vst [vmem:[#allocation22_spill] sm:$0xff] %v4036_v57  ;;  %v5065_v39 = vsub.f32 1.0, %v4030_v2  ;;  %v5071_v44 = vsub.f32 1.0, %v4032_v12  ;;  %v5066_v53 = vsub.f32 1.0, %v4036_v57  ;;  %v5067_v36 = vsub.f32 1.0, %v4038_v11 }
 0x15d   :  { %5189 = vst [vmem:[#allocation24_spill] sm:$0xff] %v4044_v47  ;;  %v1203_v49 = vadd.f32 %v1195_v40, %v3881_v48  ;;  %v1111_v32 = vsub.f32 %v1099_v51, %v3964_v58  ;;  %v1118_v29 = vand.u32 2147483647, %v1110_v55  ;;  %v4053_v25 = vmul.f32 0.11111111, %v1177_v1 }
 0x15e   :  { %v1136_v4 = vsub.f32 %v1100_v30, %v3970_v26  ;;  %v1137_v37 = vsub.f32 %v1099_v51, %v3970_v26  ;;  %v4058_v48 = vmul.f32 0.11111111, %v1202_v41  ;;  %v1162_v60 = vsub.f32 %v1100_v30, %v3973_v45 }
 0x15f   :  { %5190 = vst [vmem:[#allocation19_spill] sm:$0xff] %v4053_v25  ;;  %v1119_v6 = vand.u32 2147483647, %v1111_v32  ;;  %v1126_v56 = vadd.f32 %v1118_v29, %v3884_v52  ;;  %v4062_v62 = vmul.f32 0.11111111, %v1203_v49  ;;  %v1163_v1 = vsub.f32 %v1099_v51, %v3973_v45 }
 0x160   :  { %5191 = vst [vmem:[#allocation37_spill] sm:$0xff] %v4058_v48  ;;  %v1144_v61 = vand.u32 2147483647, %v1136_v4  ;;  %v1145_v63 = vand.u32 2147483647, %v1137_v37  ;;  %v1188_v55 = vsub.f32 %v1100_v30, %v3976_v31  ;;  %v1189_v33 = vsub.f32 %v1099_v51, %v3976_v31 }
 0x161   :  { %v1127_v23 = vadd.f32 %v1119_v6, %v3896_v46  ;;  %v1170_v40 = vand.u32 2147483647, %v1162_v60  ;;  %v1171_v52 = vand.u32 2147483647, %v1163_v1  ;;  %v4070_v29 = vmul.f32 0.11111111, %v1126_v56 }
 0x162   :  { %v1152_v41 = vadd.f32 %v1144_v61, %v3899_v38  ;;  %v1153_v32 = vadd.f32 %v1145_v63, %v3902_v13  ;;  %v1196_v4 = vand.u32 2147483647, %v1188_v55  ;;  %v1197_v37 = vand.u32 2147483647, %v1189_v33  ;;  %v1093_v63 = vpop.permute.xlu0 %1092 }
 0x163   :  { %5192 = vst [vmem:[#allocation25_spill] sm:$0xff] %v4070_v29  ;;  %v1178_v49 = vadd.f32 %v1170_v40, %v3908_v42  ;;  %v4073_v8 = vmul.f32 0.11111111, %v1127_v23  ;;  %v1179_v30 = vadd.f32 %v1171_v52, %v3911_v21  ;;  %v1104_v21 = vsel %vm1096_vm7, %v1095_v0, %v3928_v9 }
 0x164   :  { %v4077_v6 = vmul.f32 0.11111111, %v1152_v41  ;;  %v4079_v51 = vmul.f32 0.11111111, %v1153_v32  ;;  %v1204_v13 = vadd.f32 %v1196_v4, %v3914_v24  ;;  %v1205_v56 = vadd.f32 %v1197_v37, %v3919_v18 }
 0x165   :  { %5193 = vst [vmem:[#allocation41_spill] sm:$0xff] %v4073_v8  ;;  %v4084_v42 = vmul.f32 0.11111111, %v1178_v49  ;;  %v4094_v24 = vmul.f32 0.11111111, %v1179_v30  ;;  %v1114_v18 = vsub.f32 %v1104_v21, %v3964_v58  ;;  %v1140_v55 = vsub.f32 %v1104_v21, %v3970_v26 }
 0x166   :  { %5194 = vst [vmem:[#allocation45_spill] sm:$0xff] %v4077_v6  ;;  %v5063_v1 = vsub.f32 1.0, %v4077_v6  ;;  %v5070_v23 = vsub.f32 1.0, %v4079_v51  ;;  %v1166_v41 = vsub.f32 %v1104_v21, %v3973_v45  ;;  %v1192_v32 = vsub.f32 %v1104_v21, %v3976_v31 }
 0x167   :  { %5195 = vst [vmem:[#allocation18_spill] sm:$0xff] %v4094_v24  ;;  %v4101_v52 = vmul.f32 0.11111111, %v1204_v13  ;;  %v4103_v9 = vmul.f32 0.11111111, %v1205_v56  ;;  %v1097_v4 = vsel %vm1096_vm7, %v1093_v63, %v1095_v0  ;;  %v1098_v38 = vsel %vm1096_vm7, %v3998_v59, %v1093_v63 }
 0x168   :  { %v1122_v49 = vand.u32 2147483647, %v1114_v18  ;;  %v1148_v37 = vand.u32 2147483647, %v1140_v55  ;;  %v1174_v30 = vand.u32 2147483647, %v1166_v41  ;;  %v1112_v46 = vsub.f32 %v1098_v38, %v3964_v58 }
 0x169   :  { %v1200_v33 = vand.u32 2147483647, %v1192_v32  ;;  %v1113_v13 = vsub.f32 %v1097_v4, %v3964_v58  ;;  %v1138_v56 = vsub.f32 %v1098_v38, %v3970_v26  ;;  %v1139_v55 = vsub.f32 %v1097_v4, %v3970_v26 }
 0x16a   :  { %v1130_v40 = vadd.f32 %v1122_v49, %v3933_v10  ;;  %v1156_v21 = vadd.f32 %v1148_v37, %v3943_v17  ;;  %v1182_v18 = vadd.f32 %v1174_v30, %v3946_v3  ;;  %v1120_v32 = vand.u32 2147483647, %v1112_v46 }
 0x16b   :  { %v1208_v0 = vadd.f32 %v1200_v33, %v3949_v15  ;;  %v1121_v59 = vand.u32 2147483647, %v1113_v13  ;;  %v1164_v10 = vsub.f32 %v1098_v38, %v3973_v45  ;;  %v1165_v17 = vsub.f32 %v1097_v4, %v3973_v45 }
 0x16c   :  { %v4118_v41 = vmul.f32 0.11111111, %v1130_v40  ;;  %v4123_v49 = vmul.f32 0.11111111, %v1156_v21  ;;  %v4126_v37 = vmul.f32 0.11111111, %v1182_v18  ;;  %v1128_v3 = vadd.f32 %v1120_v32, %v3952_v16 }
 0x16d   :  { %v1129_v15 = vadd.f32 %v1121_v59, %v3955_v27  ;;  %v1146_v26 = vand.u32 2147483647, %v1138_v56  ;;  %v4132_v40 = vmul.f32 0.11111111, %v1208_v0  ;;  %v1147_v30 = vand.u32 2147483647, %v1139_v55 }
 0x16e   :  { %5196 = vst [vmem:[#allocation20_spill] sm:$0xff] %v4118_v41  ;;  %5197 = vst [vmem:[#allocation23_spill] sm:$0xff] %v4123_v49  ;;  %v1172_v21 = vand.u32 2147483647, %v1164_v10  ;;  %v1173_v58 = vand.u32 2147483647, %v1165_v17  ;;  %v1190_v45 = vsub.f32 %v1098_v38, %v3976_v31  ;;  %v1191_v16 = vsub.f32 %v1097_v4, %v3976_v31 }
 0x16f   :  { %v1154_v13 = vadd.f32 %v1146_v26, %v3958_v5  ;;  %v1155_v18 = vadd.f32 %v1147_v30, %v3961_v50  ;;  %v4138_v32 = vmul.f32 0.11111111, %v1128_v3  ;;  %v4140_v27 = vmul.f32 0.11111111, %v1129_v15  ;;  %v5200_v59 = vld [vmem:[#allocation10_spill] sm:$0xff] }
 0x170   :  { %v1180_v56 = vadd.f32 %v1172_v21, %v3967_v7  ;;  %v1181_v0 = vadd.f32 %v1173_v58, %v5200_v59  ;;  %v1198_v46 = vand.u32 2147483647, %v1190_v45  ;;  %v1199_v38 = vand.u32 2147483647, %v1191_v16 }
 0x171   :  { %5198 = vst [vmem:[#allocation27_spill] sm:$0xff] %v4138_v32  ;;  %5199 = vst [vmem:[#allocation26_spill] sm:$0xff] %v4140_v27  ;;  %v4144_v55 = vmul.f32 0.11111111, %v1154_v13  ;;  %v4148_v17 = vmul.f32 0.11111111, %v1155_v18  ;;  %v5203_v26 = vlaneseq }
 0x172   :  { %v1206_v31 = vadd.f32 %v1198_v46, %v4004_v22  ;;  %v4152_v4 = vmul.f32 0.11111111, %v1180_v56  ;;  %v4154_v3 = vmul.f32 0.11111111, %v1181_v0  ;;  %v1207_v7 = vadd.f32 %v1199_v38, %v4007_v34  ;;  %v63_v22 = vld [vmem:[%s5041_s1] sm:$0xff]  ;;  %s2235_s1 = sld [smem:[#allocation6 + $0x3]] }
 0x173   :  { %5201 = vst [vmem:[#allocation28_spill] sm:$0xff] %v4144_v55  ;;  %v1227_v30 = vshrl.u32 %v5203_v26, 7  ;;  %v5062_v13 = vsub.f32 1.0, %v4144_v55  ;;  %v5069_v21 = vsub.f32 1.0, %v4148_v17  ;;  %v5208_v50 = vsub.f32 1.0, %v4070_v29 }
 0x174   :  { %5202 = vst [vmem:[#allocation29_spill] sm:$0xff] %v4154_v3  ;;  %v4163_v18 = vmul.f32 0.11111111, %v1206_v31  ;;  %v4168_v46 = vmul.f32 0.11111111, %v1207_v7  ;;  %v5213_v6 = vsub.f32 1.0, %v4094_v24 }
 0x175   :  { %v1228_v34 = vsub.s32 0, %v1227_v30  ;;  %v1232_v16 = vsub.s32 1, %v1227_v30  ;;  %v1236_v56 = vsub.s32 2, %v1227_v30  ;;  %v1240_v0 = vsub.s32 3, %v1227_v30 }
 0x176   :  { %v1244_v38 = vsub.s32 4, %v1227_v30  ;;  %v1248_v26 = vsub.s32 5, %v1227_v30  ;;  %v1252_v15 = vsub.s32 6, %v1227_v30  ;;  %v1256_v58 = vsub.s32 7, %v1227_v30 }
 0x177   :  { %v1229_v10 = vrot.slane %v63_v22, %v1228_v34  ;;  %v1233_v45 = vrot.slane %v63_v22, %v1232_v16  ;;  %v1237_v31 = vrot.slane %v63_v22, %v1236_v56  ;;  %v1241_v63 = vrot.slane %v63_v22, %v1240_v0 }
 0x178   :  { %v1245_v33 = vrot.slane %v63_v22, %v1244_v38  ;;  %v1249_v60 = vrot.slane %v63_v22, %v1248_v26  ;;  %v1253_v5 = vrot.slane %v63_v22, %v1252_v15  ;;  %v1257_v56 = vrot.slane %v63_v22, %v1256_v58 }
 0x179   :  { %v4175_v61 = vadd.f32 %v5068_v20, %v1229_v10  ;;  %v4179_v59 = vadd.f32 %v5066_v53, %v1233_v45  ;;  %v4183_v34 = vadd.f32 %v5067_v36, %v1237_v31  ;;  %v4195_v0 = vadd.f32 %v5063_v1, %v1241_v63 }
 0x17a   :  { %v4187_v16 = vadd.f32 %v5070_v23, %v1245_v33  ;;  %v4191_v30 = vadd.f32 %v5062_v13, %v1249_v60  ;;  %v4199_v15 = vadd.f32 %v1229_v10, %v5064_v43  ;;  %v4203_v38 = vadd.f32 %v1233_v45, %v5065_v39 }
 0x17b   :  { %v4207_v26 = vadd.f32 %v5069_v21, %v1253_v5  ;;  %v4215_v22 = vadd.f32 %v1237_v31, %v5071_v44  ;;  %v5204_v1 = vsub.f32 1.0, %v4123_v49  ;;  %v5205_v39 = vsub.f32 1.0, %v4073_v8 }
 0x17c   :  { %v1385_v13 = vmax.f32 %v4175_v61, %v4187_v16  ;;  %v1386_v58 = vmax.f32 %v4179_v59, %v4191_v30  ;;  %v5206_v36 = vsub.f32 1.0, %v4138_v32  ;;  %v5207_v21 = vsub.f32 1.0, %v4140_v27 }
 0x17d   :  { %v4219_v43 = vadd.f32 %v5204_v1, %v1257_v56  ;;  %v4223_v53 = vadd.f32 %v1245_v33, %v5205_v39  ;;  %v1387_v44 = vmax.f32 %v4183_v34, %v4207_v26  ;;  %v4237_v1 = vadd.f32 %v1241_v63, %v5208_v50 }
 0x17e   :  { %v4227_v20 = vadd.f32 %v1249_v60, %v5206_v36  ;;  %v4231_v23 = vadd.f32 %v1253_v5, %v5207_v21  ;;  %v1389_v7 = vmax.f32 %v1385_v13, %v1386_v58  ;;  %v5209_v49 = vsub.f32 1.0, %v4118_v41 }
 0x17f   :  { %v1388_v36 = vmax.f32 %v4195_v0, %v4219_v43  ;;  %v1274_v55 = vmax.f32 %v4199_v15, %v4223_v53  ;;  %v5210_v58 = vsub.f32 1.0, %v4021_v35  ;;  %v5212_v32 = vsub.f32 1.0, %v4053_v25 }
 0x180   :  { %v4241_v39 = vadd.f32 %v1257_v56, %v5209_v49  ;;  %v1275_v21 = vmax.f32 %v4203_v38, %v4227_v20  ;;  %v1276_v13 = vmax.f32 %v4215_v22, %v4231_v23  ;;  %v5211_v49 = vsub.f32 1.0, %v4044_v47 }
 0x181   :  { %v4255_v41 = vadd.f32 %v5210_v58, %v1229_v10  ;;  %v4263_v2 = vadd.f32 %v5212_v32, %v1237_v31  ;;  %v1390_v27 = vmax.f32 %v1387_v44, %v1388_v36  ;;  %v4267_v12 = vadd.f32 %v5213_v6, %v1245_v33 }
 0x182   :  { %v1277_v50 = vmax.f32 %v4237_v1, %v4241_v39  ;;  %v4259_v29 = vadd.f32 %v5211_v49, %v1233_v45  ;;  %v1278_v8 = vmax.f32 %v1274_v55, %v1275_v21  ;;  %v5214_v14 = vsub.f32 1.0, %v4152_v4 }
 0x183   :  { %v5215_v35 = vsub.f32 1.0, %v4084_v42  ;;  %v5216_v49 = vsub.f32 1.0, %v4154_v3  ;;  %v5217_v44 = vsub.f32 1.0, %v4126_v37  ;;  %v1391_v55 = vmax.f32 %v1389_v7, %v1390_v27 }
 0x184   :  { %v4271_v57 = vadd.f32 %v5214_v14, %v1249_v60  ;;  %v1279_v58 = vmax.f32 %v1276_v13, %v1277_v50  ;;  %v1496_v6 = vmax.f32 %v4255_v41, %v4267_v12  ;;  %v5218_v36 = vsub.f32 1.0, %v4023_v54 }
 0x185   :  { %v4275_v47 = vadd.f32 %v5215_v35, %v1241_v63  ;;  %v4279_v25 = vadd.f32 %v5216_v49, %v1253_v5  ;;  %v4283_v32 = vadd.f32 %v5217_v44, %v1257_v56  ;;  %v5219_v49 = vsub.f32 1.0, %v4058_v48  ;;  %1392 = vmax.xlane.f32.xlu1 %v1391_v55 }
 0x186   :  { %v1497_v14 = vmax.f32 %v4259_v29, %v4271_v57  ;;  %v4291_v21 = vadd.f32 %v5218_v36, %v1229_v10  ;;  %v1280_v35 = vmax.f32 %v1278_v8, %v1279_v58  ;;  %v5220_v44 = vsub.f32 1.0, %v4062_v62 }
 0x187   :  { %v1498_v13 = vmax.f32 %v4263_v2, %v4279_v25  ;;  %v1499_v50 = vmax.f32 %v4275_v47, %v4283_v32  ;;  %v4299_v27 = vadd.f32 %v5219_v49, %v1233_v45  ;;  %v5221_v10 = vsub.f32 1.0, %v4103_v9 }
 0x188   :  { %v1500_v7 = vmax.f32 %v1496_v6, %v1497_v14  ;;  %v4303_v3 = vadd.f32 %v5220_v44, %v1237_v31  ;;  %v5222_v8 = vsub.f32 1.0, %v4163_v18  ;;  %1281 = vmax.xlane.f32.xlu0 %v1280_v35  ;;  %v5223_v48 = vsub.f32 1.0, %v4101_v52 }
 0x189   :  { %v4307_v36 = vadd.f32 %v5221_v10, %v1245_v33  ;;  %v1501_v24 = vmax.f32 %v1498_v13, %v1499_v50  ;;  %v5224_v55 = vsub.f32 1.0, %v4168_v46  ;;  %v5225_v31 = vsub.f32 1.0, %v4132_v40 }
 0x18a   :  { %v4311_v58 = vadd.f32 %v5222_v8, %v1249_v60  ;;  %v4315_v45 = vadd.f32 %v5223_v48, %v1241_v63  ;;  %v4337_v49 = vadd.s32 256, %v2674_v19  ;;  %v4340_v44 = vadd.s32 384, %v2674_v19 }
 0x18b   :  { %v4319_v6 = vadd.f32 %v5224_v55, %v1253_v5  ;;  %v4323_v14 = vadd.f32 %v5225_v31, %v1257_v56  ;;  %v1607_v33 = vmax.f32 %v4291_v21, %v4307_v36  ;;  %v1502_v35 = vmax.f32 %v1500_v7, %v1501_v24 }
 0x18c   :  { %v1608_v60 = vmax.f32 %v4299_v27, %v4311_v58  ;;  %v4334_v56 = vadd.s32 128, %v2674_v19  ;;  %v4343_v7 = vadd.s32 512, %v2674_v19  ;;  %v4346_v10 = vadd.s32 640, %v2674_v19 }
 0x18d   :  { %v1609_v13 = vmax.f32 %v4303_v3, %v4319_v6  ;;  %v1610_v48 = vmax.f32 %v4315_v45, %v4323_v14  ;;  %1503 = vmax.xlane.f32.xlu0 %v1502_v35  ;;  %v4349_v8 = vadd.s32 768, %v2674_v19  ;;  %v4352_v55 = vadd.s32 896, %v2674_v19 }
 0x18e   :  { %v1611_v63 = vmax.f32 %v1607_v33, %v1608_v60 }
 0x18f   :  { %v1612_v5 = vmax.f32 %v1609_v13, %v1610_v48 }
 0x191   :  { %v1613_v50 = vmax.f32 %v1611_v63, %v1612_v5 }
 0x193   :  { %1614 = vmax.xlane.f32.xlu0 %v1613_v50 }
 0x20e   :  { %v1393_v24 = vpop.xlane.xlu1 %1392 }
 0x20f   :  { %vm1394_vm8 = vcmp.eq.f32.partialorder %v4175_v61, %v1393_v24  ;;  %vm1395_vm9 = vcmp.eq.f32.partialorder %v4179_v59, %v1393_v24  ;;  %vm1396_vm10 = vcmp.eq.f32.partialorder %v4183_v34, %v1393_v24  ;;  %vm1397_vm11 = vcmp.eq.f32.partialorder %v4195_v0, %v1393_v24 }
 0x210   :  { %vm1398_vm12 = vcmp.eq.f32.partialorder %v4187_v16, %v1393_v24  ;;  %vm1399_vm13 = vcmp.eq.f32.partialorder %v4191_v30, %v1393_v24  ;;  %vm1400_vm14 = vcmp.eq.f32.partialorder %v4207_v26, %v1393_v24  ;;  %vm1401_vm15 = vcmp.eq.f32.partialorder %v4219_v43, %v1393_v24 }
 0x211   :  { %v1402_v31 = vsel %vm1394_vm8, %v2674_v19, 1024  ;;  %v1403_v33 = vsel %vm1395_vm9, %v4334_v56, 1024  ;;  %v1404_v61 = vsel %vm1396_vm10, %v4337_v49, 1024  ;;  %v1405_v59 = vsel %vm1397_vm11, %v4340_v44, 1024  ;;  %v1282_v60 = vpop.xlane.xlu0 %1281 }
 0x212   :  { %v1406_v34 = vsel %vm1398_vm12, %v4343_v7, 1024  ;;  %v1407_v0 = vsel %vm1399_vm13, %v4346_v10, 1024  ;;  %v1408_v16 = vsel %vm1400_vm14, %v4349_v8, 1024  ;;  %v1409_v30 = vsel %vm1401_vm15, %v4352_v55, 1024 }
 0x213   :  { %vm1410_vm0 = vcmp.lt.s32.totalorder %v1402_v31, %v1406_v34  ;;  %vm1412_vm1 = vcmp.lt.s32.totalorder %v1403_v33, %v1407_v0  ;;  %vm1414_vm2 = vcmp.lt.s32.totalorder %v1404_v61, %v1408_v16  ;;  %vm1416_vm3 = vcmp.lt.s32.totalorder %v1405_v59, %v1409_v30 }
 0x214   :  { %v1411_v43 = vsel %vm1410_vm0, %v1402_v31, %v1406_v34  ;;  %v1413_v26 = vsel %vm1412_vm1, %v1403_v33, %v1407_v0  ;;  %v1415_v35 = vsel %vm1414_vm2, %v1404_v61, %v1408_v16  ;;  %v1417_v13 = vsel %vm1416_vm3, %v1405_v59, %v1409_v30 }
 0x215   :  { %vm1418_vm4 = vcmp.lt.s32.totalorder %v1411_v43, %v1413_v26  ;;  %vm1420_vm5 = vcmp.lt.s32.totalorder %v1415_v35, %v1417_v13  ;;  %vm1283_vm6 = vcmp.eq.f32.partialorder %v4199_v15, %v1282_v60  ;;  %vm1284_vm7 = vcmp.eq.f32.partialorder %v4203_v38, %v1282_v60 }
 0x216   :  { %v1419_v48 = vsel %vm1418_vm4, %v1411_v43, %v1413_v26  ;;  %v1421_v63 = vsel %vm1420_vm5, %v1415_v35, %v1417_v13  ;;  %vm1285_vm8 = vcmp.eq.f32.partialorder %v4215_v22, %v1282_v60  ;;  %vm1286_vm9 = vcmp.eq.f32.partialorder %v4237_v1, %v1282_v60  ;;  %v1504_v50 = vpop.xlane.xlu0 %1503 }
 0x217   :  { %vm1422_vm10 = vcmp.lt.s32.totalorder %v1419_v48, %v1421_v63  ;;  %vm1287_vm11 = vcmp.eq.f32.partialorder %v4223_v53, %v1282_v60  ;;  %vm1288_vm12 = vcmp.eq.f32.partialorder %v4227_v20, %v1282_v60  ;;  %vm1289_vm13 = vcmp.eq.f32.partialorder %v4231_v23, %v1282_v60 }
 0x218   :  { %v4377_v5 = vsel %vm1422_vm10, %v1419_v48, %v1421_v63  ;;  %vm1290_vm14 = vcmp.eq.f32.partialorder %v4241_v39, %v1282_v60  ;;  %v1291_v15 = vsel %vm1283_vm6, %v2674_v19, 1024  ;;  %v1292_v38 = vsel %vm1284_vm7, %v4334_v56, 1024 }
 0x219   :  { %v1425_v22 = vshra.s32 %v4377_v5, 16  ;;  %v1293_v1 = vsel %vm1285_vm8, %v4337_v49, 1024  ;;  %v1294_v24 = vsel %vm1286_vm9, %v4340_v44, 1024  ;;  %v1295_v53 = vsel %vm1287_vm11, %v4343_v7, 1024 }
 0x21a   :  { %v1296_v20 = vsel %vm1288_vm12, %v4346_v10, 1024  ;;  %v1297_v23 = vsel %vm1289_vm13, %v4349_v8, 1024  ;;  %v1298_v31 = vsel %vm1290_vm14, %v4352_v55, 1024  ;;  %vm1299_vm15 = vcmp.lt.s32.totalorder %v1291_v15, %v1295_v53 }
 0x21b   :  { %v4389_v39 = vcvt.s32.f32 %v1425_v22  ;;  %v1300_v33 = vsel %vm1299_vm15, %v1291_v15, %v1295_v53  ;;  %vm1301_vm0 = vcmp.lt.s32.totalorder %v1292_v38, %v1296_v20  ;;  %vm1303_vm1 = vcmp.lt.s32.totalorder %v1293_v1, %v1297_v23 }
 0x21c   :  { %v1302_v61 = vsel %vm1301_vm0, %v1292_v38, %v1296_v20  ;;  %v1304_v59 = vsel %vm1303_vm1, %v1293_v1, %v1297_v23  ;;  %vm1305_vm2 = vcmp.lt.s32.totalorder %v1294_v24, %v1298_v31  ;;  %vm1505_vm3 = vcmp.eq.f32.partialorder %v4255_v41, %v1504_v50 }
 0x21d   :  { %1428 = vmin.xlane.f32.xlu0 %v4389_v39  ;;  %v1306_v60 = vsel %vm1305_vm2, %v1294_v24, %v1298_v31  ;;  %vm1307_vm4 = vcmp.lt.s32.totalorder %v1300_v33, %v1302_v61  ;;  %vm1506_vm5 = vcmp.eq.f32.partialorder %v4259_v29, %v1504_v50  ;;  %vm1507_vm6 = vcmp.eq.f32.partialorder %v4263_v2, %v1504_v50 }
 0x21e   :  { %v1308_v34 = vsel %vm1307_vm4, %v1300_v33, %v1302_v61  ;;  %vm1309_vm7 = vcmp.lt.s32.totalorder %v1304_v59, %v1306_v60  ;;  %vm1508_vm8 = vcmp.eq.f32.partialorder %v4275_v47, %v1504_v50  ;;  %vm1509_vm9 = vcmp.eq.f32.partialorder %v4267_v12, %v1504_v50 }
 0x21f   :  { %v1310_v0 = vsel %vm1309_vm7, %v1304_v59, %v1306_v60  ;;  %vm1510_vm10 = vcmp.eq.f32.partialorder %v4271_v57, %v1504_v50  ;;  %vm1511_vm11 = vcmp.eq.f32.partialorder %v4279_v25, %v1504_v50  ;;  %vm1512_vm12 = vcmp.eq.f32.partialorder %v4283_v32, %v1504_v50  ;;  %v1615_v57 = vpop.xlane.xlu0 %1614 }
 0x220   :  { %vm1311_vm13 = vcmp.lt.s32.totalorder %v1308_v34, %v1310_v0  ;;  %v1513_v41 = vsel %vm1505_vm3, %v2674_v19, 1024  ;;  %v1514_v29 = vsel %vm1506_vm5, %v4334_v56, 1024  ;;  %v1515_v2 = vsel %vm1507_vm6, %v4337_v49, 1024 }
 0x221   :  { %v4403_v16 = vsel %vm1311_vm13, %v1308_v34, %v1310_v0  ;;  %v1516_v47 = vsel %vm1508_vm8, %v4340_v44, 1024  ;;  %v1517_v12 = vsel %vm1509_vm9, %v4343_v7, 1024  ;;  %v1518_v30 = vsel %vm1510_vm10, %v4346_v10, 1024 }
 0x222   :  { %v1314_v25 = vshra.s32 %v4403_v16, 16  ;;  %v1519_v32 = vsel %vm1511_vm11, %v4349_v8, 1024  ;;  %v1520_v43 = vsel %vm1512_vm12, %v4352_v55, 1024  ;;  %vm1521_vm14 = vcmp.lt.s32.totalorder %v1513_v41, %v1517_v12 }
 0x223   :  { %v1522_v26 = vsel %vm1521_vm14, %v1513_v41, %v1517_v12  ;;  %vm1523_vm15 = vcmp.lt.s32.totalorder %v1514_v29, %v1518_v30  ;;  %vm1525_vm0 = vcmp.lt.s32.totalorder %v1515_v2, %v1519_v32  ;;  %vm1527_vm1 = vcmp.lt.s32.totalorder %v1516_v47, %v1520_v43 }
 0x224   :  { %v1316_v35 = vcvt.s32.f32 %v1314_v25  ;;  %v1524_v13 = vsel %vm1523_vm15, %v1514_v29, %v1518_v30  ;;  %v1526_v48 = vsel %vm1525_vm0, %v1515_v2, %v1519_v32  ;;  %v1528_v63 = vsel %vm1527_vm1, %v1516_v47, %v1520_v43 }
 0x225   :  { %vm1529_vm2 = vcmp.lt.s32.totalorder %v1522_v26, %v1524_v13  ;;  %vm1531_vm3 = vcmp.lt.s32.totalorder %v1526_v48, %v1528_v63  ;;  %vm1616_vm4 = vcmp.eq.f32.partialorder %v4291_v21, %v1615_v57  ;;  %vm1617_vm5 = vcmp.eq.f32.partialorder %v4299_v27, %v1615_v57 }
 0x226   :  { %1317 = vmin.xlane.f32.xlu1 %v1316_v35  ;;  %v1530_v15 = vsel %vm1529_vm2, %v1522_v26, %v1524_v13  ;;  %v1532_v38 = vsel %vm1531_vm3, %v1526_v48, %v1528_v63  ;;  %vm1618_vm6 = vcmp.eq.f32.partialorder %v4303_v3, %v1615_v57  ;;  %vm1619_vm7 = vcmp.eq.f32.partialorder %v4315_v45, %v1615_v57  ;;  %v1833_v13 = vld [vmem:[%s5045_s5 + $0x1f8] sm:$0xff] }
 0x227   :  { %vm1533_vm8 = vcmp.lt.s32.totalorder %v1530_v15, %v1532_v38  ;;  %vm1620_vm9 = vcmp.eq.f32.partialorder %v4307_v36, %v1615_v57  ;;  %vm1621_vm10 = vcmp.eq.f32.partialorder %v4311_v58, %v1615_v57  ;;  %vm1622_vm11 = vcmp.eq.f32.partialorder %v4319_v6, %v1615_v57  ;;  %v1785_v48 = vld [vmem:[%s5045_s5 + $0x78] sm:$0xff]  ;;  %2281 = vmatprep.subr.mxu1 %v1833_v13  ;;  %v1808_v13 = vld [vmem:[%s5045_s5 + $0x130] sm:$0xff] }
 0x228   :  { %v1534_v50 = vsel %vm1533_vm8, %v1530_v15, %v1532_v38  ;;  %vm1623_vm12 = vcmp.eq.f32.partialorder %v4323_v14, %v1615_v57  ;;  %v1624_v21 = vsel %vm1616_vm4, %v2674_v19, 1024  ;;  %v1625_v27 = vsel %vm1617_vm5, %v4334_v56, 1024  ;;  %v1817_v63 = vld [vmem:[%s5045_s5 + $0x178] sm:$0xff]  ;;  %v1800_v15 = vld [vmem:[%s5045_s5 + $0xf0] sm:$0xff] }
 0x229   :  { %v1536_v22 = vshra.s32 %v1534_v50, 16  ;;  %v1626_v1 = vsel %vm1618_vm6, %v4337_v49, 1024  ;;  %v1627_v3 = vsel %vm1619_vm7, %v4340_v44, 1024  ;;  %v1628_v45 = vsel %vm1620_vm9, %v4343_v7, 1024  ;;  %v1832_v38 = vld [vmem:[%s5045_s5 + $0x1f0] sm:$0xff]  ;;  %2282 = vmatpush3.msra.mxu1 %v1817_v63  ;;  %v1823_v63 = vld [vmem:[%s5045_s5 + $0x1a8] sm:$0xff] }
 0x22a   :  { %v1629_v36 = vsel %vm1621_vm10, %v4346_v10, 1024  ;;  %v1630_v58 = vsel %vm1622_vm11, %v4349_v8, 1024  ;;  %v1631_v6 = vsel %vm1623_vm12, %v4352_v55, 1024  ;;  %vm1632_vm13 = vcmp.lt.s32.totalorder %v1624_v21, %v1628_v45  ;;  %2283 = vmatprep.subr.mxu1 %v1832_v38  ;;  %v1807_v38 = vld [vmem:[%s5045_s5 + $0x128] sm:$0xff] }
 0x22b   :  { %v1538_v24 = vcvt.s32.f32 %v1536_v22  ;;  %v1633_v14 = vsel %vm1632_vm13, %v1624_v21, %v1628_v45  ;;  %vm1634_vm14 = vcmp.lt.s32.totalorder %v1625_v27, %v1629_v36  ;;  %vm1636_vm15 = vcmp.lt.s32.totalorder %v1626_v1, %v1630_v58  ;;  %v1816_v21 = vld [vmem:[%s5045_s5 + $0x170] sm:$0xff]  ;;  %v1831_v22 = vld [vmem:[%s5045_s5 + $0x1e8] sm:$0xff]  ;;  %v1798_v45 = vld [vmem:[%s5045_s5 + $0xe0] sm:$0xff] }
 0x22c   :  { %v1635_v53 = vsel %vm1634_vm14, %v1625_v27, %v1629_v36  ;;  %v1637_v20 = vsel %vm1636_vm15, %v1626_v1, %v1630_v58  ;;  %vm1638_vm0 = vcmp.lt.s32.totalorder %v1627_v3, %v1631_v6  ;;  %v1424_v34 = vand.u32 65535, %v4377_v5  ;;  %v1799_v27 = vld [vmem:[%s5045_s5 + $0xe8] sm:$0xff]  ;;  %2284 = vmatpush3.msra.mxu1 %v1816_v21  ;;  %v1830_v36 = vld [vmem:[%s5045_s5 + $0x1e0] sm:$0xff] }
 0x22d   :  { %1539 = vmin.xlane.f32.xlu1 %v1538_v24  ;;  %v1639_v23 = vsel %vm1638_vm0, %v1627_v3, %v1631_v6  ;;  %vm1640_vm1 = vcmp.lt.s32.totalorder %v1633_v14, %v1635_v53  ;;  %v1313_v2 = vand.u32 65535, %v4403_v16  ;;  %v1535_v57 = vand.u32 65535, %v1534_v50  ;;  %v1784_v50 = vld [vmem:[%s5045_s5 + $0x70] sm:$0xff]  ;;  %v1783_v1 = vld [vmem:[%s5045_s5 + $0x68] sm:$0xff]  ;;  %2285 = vmatprep.subr.mxu1 %v1831_v22  ;;  %v1782_v58 = vld [vmem:[%s5045_s5 + $0x60] sm:$0xff] }
 0x22e   :  { %v1641_v31 = vsel %vm1640_vm1, %v1633_v14, %v1635_v53  ;;  %vm1642_vm2 = vcmp.lt.s32.totalorder %v1637_v20, %v1639_v23  ;;  %v1426_v41 = vcvt.s32.f32 %v1424_v34  ;;  %v1815_v3 = vld [vmem:[%s5045_s5 + $0x168] sm:$0xff]  ;;  %v1814_v6 = vld [vmem:[%s5045_s5 + $0x160] sm:$0xff]  ;;  %v1829_v14 = vld [vmem:[%s5045_s5 + $0x1d8] sm:$0xff] }
 0x22f   :  { %v1643_v33 = vsel %vm1642_vm2, %v1637_v20, %v1639_v23  ;;  %v1315_v12 = vcvt.s32.f32 %v1313_v2  ;;  %v1537_v5 = vcvt.s32.f32 %v1535_v57  ;;  %2286 = vmatpush3.msra.mxu1 %v1815_v3  ;;  %v1781_v53 = vld [vmem:[%s5045_s5 + $0x58] sm:$0xff]  ;;  %v1796_v23 = vld [vmem:[%s5045_s5 + $0xd0] sm:$0xff]  ;;  %v1779_v34 = vld [vmem:[%s5045_s5 + $0x48] sm:$0xff] }
 0x230   :  { %vm1644_vm3 = vcmp.lt.s32.totalorder %v1641_v31, %v1643_v33  ;;  %2287 = vmatprep.subr.mxu1 %v1830_v36  ;;  %v1813_v20 = vld [vmem:[%s5045_s5 + $0x158] sm:$0xff]  ;;  %v1826_v2 = vld [vmem:[%s5045_s5 + $0x1c0] sm:$0xff] }
 0x231   :  { %v1645_v61 = vsel %vm1644_vm3, %v1641_v31, %v1643_v33  ;;  %2288 = vmatpush3.msra.mxu1 %v1814_v6  ;;  %v1828_v31 = vld [vmem:[%s5045_s5 + $0x1d0] sm:$0xff]  ;;  %v1793_v57 = vld [vmem:[%s5045_s5 + $0xb8] sm:$0xff]  ;;  %v1822_v21 = vld [vmem:[%s5045_s5 + $0x1a0] sm:$0xff] }
 0x232   :  { %v1647_v59 = vshra.s32 %v1645_v61, 16  ;;  %2289 = vmatprep.subr.mxu1 %v1829_v14  ;;  %v1780_v33 = vld [vmem:[%s5045_s5 + $0x50] sm:$0xff]  ;;  %v1806_v22 = vld [vmem:[%s5045_s5 + $0x120] sm:$0xff]  ;;  %v1821_v3 = vld [vmem:[%s5045_s5 + $0x198] sm:$0xff] }
 0x233   :  { %2290 = vmatpush3.msra.mxu1 %v1813_v20  ;;  %v1805_v36 = vld [vmem:[%s5045_s5 + $0x118] sm:$0xff]  ;;  %v1820_v6 = vld [vmem:[%s5045_s5 + $0x190] sm:$0xff]  ;;  %v1819_v20 = vld [vmem:[%s5045_s5 + $0x188] sm:$0xff] }
 0x234   :  { %v1649_v60 = vcvt.s32.f32 %v1647_v59  ;;  %v1795_v59 = vld [vmem:[%s5045_s5 + $0xc8] sm:$0xff]  ;;  %2291 = vmatprep.subr.mxu1 %v1828_v31  ;;  %v1804_v14 = vld [vmem:[%s5045_s5 + $0x110] sm:$0xff] }
 0x235   :  { %v1803_v31 = vld [vmem:[%s5045_s5 + $0x108] sm:$0xff] }
 0x236   :  { %1650 = vmin.xlane.f32.xlu0 %v1649_v60 }
 0x2a6   :  { %v4428_v0 = vpop.xlane.xlu0 %1428 }
 0x2a7   :  { %vm1430_vm4 = vcmp.eq.f32.partialorder %v4389_v39, %v4428_v0  ;;  %v1646_v39 = vand.u32 65535, %v1645_v61  ;;  %v1812_v61 = vld [vmem:[%s5045_s5 + $0x150] sm:$0xff] }
 0x2a8   :  { %v1431_v29 = vsel %vm1430_vm4, %v1426_v41, inf  ;;  %v1811_v41 = vld [vmem:[%s5045_s5 + $0x148] sm:$0xff]  ;;  %2292 = vmatpush3.msra.mxu1 %v1812_v61  ;;  %v1818_v61 = vld [vmem:[%s5045_s5 + $0x180] sm:$0xff] }
 0x2a9   :  { %1432 = vmin.xlane.f32.xlu0 %v1431_v29  ;;  %v1648_v26 = vcvt.s32.f32 %v1646_v39  ;;  %v1794_v29 = vld [vmem:[%s5045_s5 + $0xc0] sm:$0xff]  ;;  %v1809_v39 = vld [vmem:[%s5045_s5 + $0x138] sm:$0xff] }
 0x2af   :  { %v4433_v47 = vpop.xlane.xlu1 %1317 }
 0x2b0   :  { %vm1319_vm5 = vcmp.eq.f32.partialorder %v1316_v35, %v4433_v47  ;;  %v1801_v35 = vld [vmem:[%s5045_s5 + $0xf8] sm:$0xff] }
 0x2b1   :  { %v1320_v30 = vsel %vm1319_vm5, %v1315_v12, inf  ;;  %2246 = vmatprep.subr.mxu0 %v1801_v35  ;;  %v1778_v12 = vld [vmem:[%s5045_s5 + $0x40] sm:$0xff]  ;;  %v1776_v35 = vld [vmem:[%s5045_s5 + $0x30] sm:$0xff] }
 0x2b2   :  { %1321 = vmin.xlane.f32.xlu1 %v1320_v30  ;;  %2247 = vmatpush3.msra.mxu0 %v1785_v48  ;;  %v1810_v30 = vld [vmem:[%s5045_s5 + $0x140] sm:$0xff]  ;;  %v1791_v48 = vld [vmem:[%s5045_s5 + $0xa8] sm:$0xff] }
 0x2b3   :  { %2248 = vmatprep.subr.mxu0 %v1800_v15  ;;  %v1775_v15 = vld [vmem:[%s5045_s5 + $0x28] sm:$0xff] }
 0x2b4   :  { %2249 = vmatpush3.msra.mxu0 %v1784_v50  ;;  %v1790_v50 = vld [vmem:[%s5045_s5 + $0xa0] sm:$0xff] }
 0x2b5   :  { %2250 = vmatprep.subr.mxu0 %v1799_v27  ;;  %v1774_v27 = vld [vmem:[%s5045_s5 + $0x20] sm:$0xff] }
 0x2b6   :  { %v4436_v25 = vpop.xlane.xlu1 %1539  ;;  %2251 = vmatpush3.msra.mxu0 %v1783_v1  ;;  %v1789_v1 = vld [vmem:[%s5045_s5 + $0x98] sm:$0xff] }
 0x2b7   :  { %vm1541_vm6 = vcmp.eq.f32.partialorder %v1538_v24, %v4436_v25  ;;  %v1797_v24 = vld [vmem:[%s5045_s5 + $0xd8] sm:$0xff]  ;;  %2252 = vmatprep.subr.mxu0 %v1798_v45 }
 0x2b8   :  { %v1542_v32 = vsel %vm1541_vm6, %v1537_v5, inf  ;;  %2253 = vmatpush3.msra.mxu0 %v1782_v58  ;;  %v1825_v5 = vld [vmem:[%s5045_s5 + $0x1b8] sm:$0xff]  ;;  %v1788_v58 = vld [vmem:[%s5045_s5 + $0x90] sm:$0xff] }
 0x2b9   :  { %1543 = vmin.xlane.f32.xlu1 %v1542_v32  ;;  %2254 = vmatprep.subr.mxu0 %v1797_v24  ;;  %v1777_v32 = vld [vmem:[%s5045_s5 + $0x38] sm:$0xff]  ;;  %v1772_v24 = vld [vmem:[%s5045_s5 + $0x10] sm:$0xff] }
 0x2ba   :  { %2255 = vmatpush3.msra.mxu0 %v1781_v53  ;;  %v1773_v45 = vld [vmem:[%s5045_s5 + $0x18] sm:$0xff]  ;;  %v1787_v53 = vld [vmem:[%s5045_s5 + $0x88] sm:$0xff] }
 0x2bb   :  { %2256 = vmatprep.subr.mxu0 %v1796_v23  ;;  %v1771_v23 = vld [vmem:[%s5045_s5 + $0x8] sm:$0xff] }
 0x2bc   :  { %2257 = vmatpush3.msra.mxu0 %v1780_v33  ;;  %v1786_v33 = vld [vmem:[%s5045_s5 + $0x80] sm:$0xff] }
 0x2bd   :  { %2258 = vmatprep.subr.mxu0 %v1795_v59  ;;  %v1770_v59 = vld [vmem:[%s5045_s5] sm:$0xff] }
 0x2be   :  { %2259 = vmatpush3.msra.mxu0 %v1779_v34  ;;  %v1865_v34 = vld [vmem:[%s5045_s5 + $0x2f8] sm:$0xff] }
 0x2bf   :  { %v4439_v43 = vpop.xlane.xlu0 %1650  ;;  %2260 = vmatprep.subr.mxu0 %v1794_v29  ;;  %v1435_v29 = vcvt.f32.s32 %v4428_v0  ;;  %v4651_v0 = vstv %s2233_s16 }
 0x2c0   :  { %vm1652_vm7 = vcmp.eq.f32.partialorder %v1649_v60, %v4439_v43  ;;  %v1827_v60 = vld [vmem:[%s5045_s5 + $0x1c8] sm:$0xff]  ;;  %2261 = vmatpush3.msra.mxu0 %v1778_v12 }
 0x2c1   :  { %v1653_v16 = vsel %vm1652_vm7, %v1648_v26, inf  ;;  %2293 = vmatprep.subr.mxu1 %v1827_v60  ;;  %v1792_v26 = vld [vmem:[%s5045_s5 + $0xb0] sm:$0xff]  ;;  %2262 = vmatprep.subr.mxu0 %v1793_v57  ;;  %v1802_v60 = vld [vmem:[%s5045_s5 + $0x100] sm:$0xff]  ;;  %v1436_v12 = vshll.u32 %v1435_v29, 16 }
 0x2c2   :  { %1654 = vmin.xlane.f32.xlu0 %v1653_v16  ;;  %2294 = vmatpush3.msra.mxu1 %v1811_v41  ;;  %v1824_v16 = vld [vmem:[%s5045_s5 + $0x1b0] sm:$0xff]  ;;  %v1897_v41 = vld [vmem:[%s5045_s5 + $0x3f8] sm:$0xff] }
 0x2c3   :  { %2295 = vmatprep.subr.mxu1 %v1826_v2  ;;  %2263 = vmatpush3.msra.mxu0 %v1777_v32  ;;  %v1546_v32 = vcvt.f32.s32 %v4436_v25 }
 0x2c4   :  { %2296 = vmatpush3.msra.mxu1 %v1810_v30  ;;  %2264 = vmatprep.subr.mxu0 %v1792_v26 }
 0x2c5   :  { %2297 = vmatprep.subr.mxu1 %v1825_v5  ;;  %2265 = vmatpush3.msra.mxu0 %v1776_v35  ;;  %v1324_v5 = vcvt.f32.s32 %v4433_v47  ;;  %v5226_v47 = vsub.f32 1.0, %v4079_v51  ;;  %v5227_v35 = vsub.f32 1.0, %v4148_v17  ;;  %v5228_v51 = vsub.f32 1.0, %v4019_v28 }
 0x2c6   :  { %2298 = vmatpush3.msra.mxu1 %v1809_v39  ;;  %2266 = vmatprep.subr.mxu0 %v1791_v48  ;;  %v1547_v48 = vshll.u32 %v1546_v32, 16 }
 0x2c7   :  { %2299 = vmatprep.subr.mxu1 %v1824_v16  ;;  %2267 = vmatpush3.msra.mxu0 %v1775_v15  ;;  %v1325_v39 = vshll.u32 %v1324_v5, 16 }
 0x2c8   :  { %2300 = vmatpush3.msra.mxu1 %v1808_v13  ;;  %2268 = vmatprep.subr.mxu0 %v1790_v50  ;;  %v5229_v50 = vsub.f32 1.0, %v4038_v11  ;;  %v5232_v11 = vld [vmem:[#allocation11_spill] sm:$0xff] }
 0x2c9   :  { %2301 = vmatprep.subr.mxu1 %v1823_v63  ;;  %2269 = vmatpush3.msra.mxu0 %v1774_v27  ;;  %v1657_v63 = vcvt.f32.s32 %v4439_v43 }
 0x2ca   :  { %2302 = vmatpush3.msra.mxu1 %v1807_v38  ;;  %2270 = vmatprep.subr.mxu0 %v1789_v1  ;;  %v4666_v38 = vstv %s1343_s17 }
 0x2cb   :  { %2303 = vmatprep.subr.mxu1 %v1822_v21  ;;  %2271 = vmatpush3.msra.mxu0 %v1773_v45 }
 0x2cc   :  { %2304 = vmatpush3.msra.mxu1 %v1806_v22  ;;  %2272 = vmatprep.subr.mxu0 %v1788_v58  ;;  %v5230_v22 = vld [vmem:[#allocation22_spill] sm:$0xff] }
 0x2cd   :  { %2305 = vmatprep.subr.mxu1 %v1821_v3  ;;  %2273 = vmatpush3.msra.mxu0 %v1772_v24  ;;  %v5231_v1 = vsub.f32 1.0, %v5230_v22  ;;  %v5233_v3 = vsub.f32 1.0, %v5232_v11  ;;  %v5236_v24 = vld [vmem:[#allocation45_spill] sm:$0xff] }
 0x2ce   :  { %2306 = vmatpush3.msra.mxu1 %v1805_v36  ;;  %2274 = vmatprep.subr.mxu0 %v1787_v53  ;;  %v5234_v36 = vld [vmem:[#allocation21_spill] sm:$0xff] }
 0x2cf   :  { %2307 = vmatprep.subr.mxu1 %v1820_v6  ;;  %2275 = vmatpush3.msra.mxu0 %v1771_v23  ;;  %v5235_v58 = vsub.f32 1.0, %v5234_v36 }
 0x2d0   :  { %2308 = vmatpush3.msra.mxu1 %v1804_v14  ;;  %2276 = vmatprep.subr.mxu0 %v1786_v33  ;;  %v5237_v14 = vsub.f32 1.0, %v5236_v24  ;;  %v5240_v33 = vld [vmem:[#allocation26_spill] sm:$0xff] }
 0x2d1   :  { %2309 = vmatprep.subr.mxu1 %v1819_v20  ;;  %2277 = vmatpush3.msra.mxu0 %v1770_v59  ;;  %v5238_v20 = vld [vmem:[#allocation41_spill] sm:$0xff] }
 0x2d2   :  { %2310 = vmatpush3.msra.mxu1 %v1803_v31  ;;  %2316 = vmatprep.subr.mxu0 %v1865_v34  ;;  %v5239_v23 = vsub.f32 1.0, %v5238_v20 }
 0x2d3   :  { %2311 = vmatprep.subr.mxu1 %v1818_v61  ;;  %v5241_v61 = vsub.f32 1.0, %v5240_v33 }
 0x2d4   :  { %2312 = vmatpush3.msra.mxu1 %v1802_v60 }
 0x2d5   :  { %2351 = vmatprep.subr.mxu1 %v1897_v41 }
 0x332   :  { %v1433_v2 = vpop.xlane.xlu0 %1432 }
 0x333   :  { %v1434_v30 = vcvt.f32.s32 %v1433_v2 }
 0x335   :  { %v4641_v57 = vadd.s32 %v1436_v12, %v1434_v30  ;;  %v5242_v30 = vld [vmem:[#allocation15_spill] sm:$0xff] }
 0x336   :  { %v5243_v5 = vsub.f32 1.0, %v5242_v30 }
 0x337   :  { %vm1442_vm8 = vcmp.eq.s32.totalorder %v4343_v7, %v4641_v57  ;;  %vm1444_vm9 = vcmp.eq.s32.totalorder %v4349_v8, %v4641_v57  ;;  %vm1438_vm10 = vcmp.eq.s32.totalorder %v2674_v19, %v4641_v57  ;;  %vm1440_vm11 = vcmp.eq.s32.totalorder %v4337_v49, %v4641_v57 }
 0x338   :  { %v1450_v25 = vsel %vm1442_vm8, %v5226_v47, 0.0  ;;  %v1452_v13 = vsel %vm1444_vm9, %v5227_v35, 0.0  ;;  %vm1439_vm12 = vcmp.eq.s32.totalorder %v4334_v56, %v4641_v57  ;;  %vm1443_vm13 = vcmp.eq.s32.totalorder %v4346_v10, %v4641_v57 }
 0x339   :  { %vm1441_vm14 = vcmp.eq.s32.totalorder %v4340_v44, %v4641_v57  ;;  %v1446_v17 = vsel %vm1438_vm10, %v5228_v51, 0.0  ;;  %v1448_v21 = vsel %vm1440_vm11, %v5229_v50, 0.0  ;;  %v1460_v43 = vmul.f32 %v4651_v0, %v1450_v25  ;;  %v5244_v50 = vld [vmem:[#allocation27_spill] sm:$0xff] }
 0x33a   :  { %v1462_v27 = vmul.f32 %v4651_v0, %v1452_v13  ;;  %v1447_v28 = vsel %vm1439_vm12, %v5231_v1, 0.0  ;;  %v1449_v53 = vsel %vm1441_vm14, %v5237_v14, 0.0  ;;  %v1456_v34 = vmul.f32 %v4651_v0, %v1446_v17  ;;  %v5246_v1 = vld [vmem:[#allocation28_spill] sm:$0xff] }
 0x33b   :  { %v1322_v26 = vpop.xlane.xlu1 %1321  ;;  %v1458_v41 = vmul.f32 %v4651_v0, %v1448_v21  ;;  %v1457_v13 = vmul.f32 %v4651_v0, %v1447_v28  ;;  %v5245_v21 = vsub.f32 1.0, %v5244_v50  ;;  %v5247_v11 = vsub.f32 1.0, %v5246_v1  ;;  %v5250_v14 = vld [vmem:[#allocation12_spill] sm:$0xff] }
 0x33c   :  { %v1323_v16 = vcvt.f32.s32 %v1322_v26  ;;  %vm1445_vm8 = vcmp.eq.s32.totalorder %v4352_v55, %v4641_v57  ;;  %v1459_v36 = vmul.f32 %v4651_v0, %v1449_v53  ;;  %v5251_v20 = vsub.f32 1.0, %v5250_v14  ;;  %v5254_v53 = vld [vmem:[#allocation23_spill] sm:$0xff]  ;;  %v5260_v1 = vld [vmem:[#allocation20_spill] sm:$0xff] }
 0x33d   :  { %v4747_v57 = vstv %s2235_s1  ;;  %v5259_v50 = vsub.f32 1.0, %v4084_v42  ;;  %v5263_v42 = vsub.f32 1.0, %v4023_v54 }
 0x33e   :  { %v4662_v15 = vadd.s32 %v1325_v39, %v1323_v16 }
 0x340   :  { %vm1327_vm15 = vcmp.eq.s32.totalorder %v2674_v19, %v4662_v15  ;;  %vm1329_vm0 = vcmp.eq.s32.totalorder %v4337_v49, %v4662_v15  ;;  %vm1331_vm1 = vcmp.eq.s32.totalorder %v4343_v7, %v4662_v15  ;;  %vm1333_vm2 = vcmp.eq.s32.totalorder %v4349_v8, %v4662_v15 }
 0x341   :  { %v1335_v45 = vsel %vm1327_vm15, %v5233_v3, 0.0  ;;  %v1337_v6 = vsel %vm1329_vm0, %v5235_v58, 0.0  ;;  %v1339_v31 = vsel %vm1331_vm1, %v5239_v23, 0.0  ;;  %v1341_v59 = vsel %vm1333_vm2, %v5241_v61, 0.0 }
 0x342   :  { %v1544_v60 = vpop.xlane.xlu1 %1543  ;;  %vm1328_vm3 = vcmp.eq.s32.totalorder %v4334_v56, %v4662_v15  ;;  %v1349_v2 = vmul.f32 %v4666_v38, %v1339_v31  ;;  %v1351_v12 = vmul.f32 %v4666_v38, %v1341_v59  ;;  %vm1332_vm4 = vcmp.eq.s32.totalorder %v4346_v10, %v4662_v15  ;;  %v5252_v31 = vld [vmem:[#allocation19_spill] sm:$0xff] }
 0x343   :  { %v1545_v29 = vcvt.f32.s32 %v1544_v60  ;;  %v1336_v32 = vsel %vm1328_vm3, %v5243_v5, 0.0  ;;  %v1345_v39 = vmul.f32 %v4666_v38, %v1335_v45  ;;  %v1347_v26 = vmul.f32 %v4666_v38, %v1337_v6 }
 0x344   :  { %v4712_v47 = vadd.f32 %v1460_v43, %v1349_v2  ;;  %v4714_v25 = vadd.f32 %v1462_v27, %v1351_v12  ;;  %vm1330_vm5 = vcmp.eq.s32.totalorder %v4340_v44, %v4662_v15  ;;  %v1346_v35 = vmul.f32 %v4666_v38, %v1336_v32  ;;  %v5248_v43 = vld [vmem:[#allocation25_spill] sm:$0xff] }
 0x345   :  { %v4710_v16 = vadd.s32 %v1547_v48, %v1545_v29  ;;  %v1464_v51 = vadd.f32 %v1456_v34, %v1345_v39  ;;  %v1466_v17 = vadd.f32 %v1458_v41, %v1347_v26  ;;  %v1340_v22 = vsel %vm1332_vm4, %v5245_v21, 0.0  ;;  %v5256_v29 = vld [vmem:[#allocation24_spill] sm:$0xff] }
 0x346   :  { %v1451_v48 = vsel %vm1443_vm13, %v5247_v11, 0.0  ;;  %v5249_v27 = vsub.f32 1.0, %v5248_v43  ;;  %v1658_v3 = vshll.u32 %v1657_v63, 16  ;;  %v4736_v45 = vstv %s4690_s18 }
 0x347   :  { %vm1549_vm6 = vcmp.eq.s32.totalorder %v2674_v19, %v4710_v16  ;;  %vm1551_vm7 = vcmp.eq.s32.totalorder %v4337_v49, %v4710_v16  ;;  %v1465_v58 = vadd.f32 %v1457_v13, %v1346_v35  ;;  %vm1550_vm9 = vcmp.eq.s32.totalorder %v4334_v56, %v4710_v16 }
 0x348   :  { %v1338_v28 = vsel %vm1330_vm5, %v5249_v27, 0.0  ;;  %v1350_v6 = vmul.f32 %v4666_v38, %v1340_v22  ;;  %v1461_v24 = vmul.f32 %v4651_v0, %v1451_v48  ;;  %v1557_v23 = vsel %vm1549_vm6, %v5251_v20, 0.0 }
 0x349   :  { %v5253_v63 = vsub.f32 1.0, %v5252_v31  ;;  %v1348_v59 = vmul.f32 %v4666_v38, %v1338_v28  ;;  %v5255_v60 = vsub.f32 1.0, %v5254_v53  ;;  %vm1554_vm10 = vcmp.eq.s32.totalorder %v4346_v10, %v4710_v16 }
 0x34a   :  { %vm1552_vm11 = vcmp.eq.s32.totalorder %v4340_v44, %v4710_v16  ;;  %vm1334_vm12 = vcmp.eq.s32.totalorder %v4352_v55, %v4662_v15  ;;  %vm1556_vm13 = vcmp.eq.s32.totalorder %v4352_v55, %v4710_v16  ;;  %v5257_v2 = vsub.f32 1.0, %v5256_v29 }
 0x34b   :  { %v1559_v33 = vsel %vm1551_vm7, %v5253_v63, 0.0  ;;  %v1655_v61 = vpop.xlane.xlu0 %1654  ;;  %v1453_v34 = vsel %vm1445_vm8, %v5255_v60, 0.0  ;;  %v1467_v30 = vadd.f32 %v1459_v36, %v1348_v59  ;;  %v1567_v32 = vmul.f32 %v4736_v45, %v1557_v23 }
 0x34c   :  { %v1656_v41 = vcvt.f32.s32 %v1655_v61  ;;  %v1558_v12 = vsel %vm1550_vm9, %v5257_v2, 0.0  ;;  %v1569_v39 = vmul.f32 %v4736_v45, %v1559_v33  ;;  %v1469_v26 = vadd.f32 %v1461_v24, %v1350_v6 }
 0x34d   :  { %v5258_v35 = vsub.f32 1.0, %v4152_v4  ;;  %v4771_v15 = vstv %s5044_s4  ;;  %v1560_v21 = vsel %vm1552_vm11, %v5259_v50, 0.0  ;;  %v1463_v22 = vmul.f32 %v4651_v0, %v1453_v34 }
 0x34e   :  { %v4762_v5 = vadd.s32 %v1658_v3, %v1656_v41  ;;  %v5261_v11 = vsub.f32 1.0, %v5260_v1  ;;  %v5262_v4 = vsub.f32 1.0, %v4126_v37  ;;  %v5264_v0 = vsub.f32 1.0, %v4062_v62  ;;  %v5266_v62 = vld [vmem:[#allocation37_spill] sm:$0xff] }
 0x34f   :  { %v1562_v13 = vsel %vm1554_vm10, %v5258_v35, 0.0  ;;  %v1568_v3 = vmul.f32 %v4736_v45, %v1558_v12  ;;  %v1570_v36 = vmul.f32 %v4736_v45, %v1560_v21  ;;  %v1577_v6 = vadd.f32 %v1569_v39, %v1466_v17 }
 0x350   :  { %v1342_v48 = vsel %vm1334_vm12, %v5261_v11, 0.0  ;;  %vm1660_vm14 = vcmp.eq.s32.totalorder %v2674_v19, %v4762_v5  ;;  %vm1662_vm15 = vcmp.eq.s32.totalorder %v4337_v49, %v4762_v5  ;;  %vm1665_vm0 = vcmp.eq.s32.totalorder %v4346_v10, %v4762_v5  ;;  %v5270_v11 = vld [vmem:[#allocation18_spill] sm:$0xff] }
 0x351   :  { %v1564_v43 = vsel %vm1556_vm13, %v5262_v4, 0.0  ;;  %v1668_v27 = vsel %vm1660_vm14, %v5263_v42, 0.0  ;;  %v1670_v28 = vsel %vm1662_vm15, %v5264_v0, 0.0  ;;  %v1575_v19 = vadd.f32 %v1567_v32, %v1464_v51 }
 0x352   :  { %v1572_v49 = vmul.f32 %v4736_v45, %v1562_v13  ;;  %vm1667_vm1 = vcmp.eq.s32.totalorder %v4352_v55, %v4762_v5  ;;  %v5265_v37 = vsub.f32 1.0, %v4163_v18  ;;  %vm1661_vm2 = vcmp.eq.s32.totalorder %v4334_v56, %v4762_v5 }
 0x353   :  { %v1352_v54 = vmul.f32 %v4666_v38, %v1342_v48  ;;  %v5267_v24 = vsub.f32 1.0, %v5266_v62  ;;  %vm1663_vm3 = vcmp.eq.s32.totalorder %v4340_v44, %v4762_v5  ;;  %v1678_v51 = vmul.f32 %v4747_v57, %v1668_v27 }
 0x354   :  { %v1673_v10 = vsel %vm1665_vm0, %v5265_v37, 0.0  ;;  %v1680_v17 = vmul.f32 %v4747_v57, %v1670_v28  ;;  %v1576_v20 = vadd.f32 %v1568_v3, %v1465_v58  ;;  %v5268_v18 = vsub.f32 1.0, %v4101_v52 }
 0x355   :  { %v1669_v14 = vsel %vm1661_vm2, %v5267_v24, 0.0  ;;  %v1574_v56 = vmul.f32 %v4736_v45, %v1564_v43  ;;  %v1578_v63 = vadd.f32 %v1570_v36, %v1467_v30  ;;  %v1686_v33 = vadd.f32 %v1678_v51, %v1575_v19  ;;  %v5272_v43 = vld [vmem:[#allocation29_spill] sm:$0xff] }
 0x356   :  { %v1679_v23 = vmul.f32 %v4747_v57, %v1669_v14  ;;  %v1671_v31 = vsel %vm1663_vm3, %v5268_v18, 0.0  ;;  %v1688_v61 = vadd.f32 %v1680_v17, %v1577_v6  ;;  %v5269_v59 = vsub.f32 1.0, %v4132_v40 }
 0x357   :  { %v1681_v38 = vmul.f32 %v4747_v57, %v1671_v31  ;;  %v1580_v58 = vadd.f32 %v1572_v49, %v1469_v26  ;;  %v1683_v60 = vmul.f32 %v4747_v57, %v1673_v10  ;;  %v1696_v52 = vadd.f32 %v4771_v15, %v1686_v33  ;;  %v1881_v33 = vld [vmem:[%s5045_s5 + $0x378] sm:$0xff] }
 0x358   :  { %v1675_v44 = vsel %vm1667_vm1, %v5269_v59, 0.0  ;;  %v1687_v53 = vadd.f32 %v1679_v23, %v1576_v20  ;;  %v1698_v41 = vadd.f32 %v4771_v15, %v1688_v61  ;;  %v1471_v29 = vadd.f32 %v1463_v22, %v1352_v54  ;;  %v1896_v59 = vld [vmem:[%s5045_s5 + $0x3f0] sm:$0xff] }
 0x359   :  { %v1689_v34 = vadd.f32 %v1681_v38, %v1578_v63  ;;  %v1691_v12 = vadd.f32 %v1683_v60, %v1580_v58  ;;  %v2236_v40 = vmul.f32 -1.442695, %v1696_v52  ;;  %v1685_v26 = vmul.f32 %v4747_v57, %v1675_v44  ;;  %v1848_v44 = vld [vmem:[%s5045_s5 + $0x270] sm:$0xff]  ;;  %v1863_v60 = vld [vmem:[%s5045_s5 + $0x2e8] sm:$0xff] }
 0x35a   :  { %v1697_v2 = vadd.f32 %v4771_v15, %v1687_v53  ;;  %v1582_v39 = vadd.f32 %v1574_v56, %v1471_v29  ;;  %v2238_v13 = vmul.f32 -1.442695, %v1698_v41  ;;  %vm1553_vm4 = vcmp.eq.s32.totalorder %v4343_v7, %v4710_v16  ;;  %v1880_v58 = vld [vmem:[%s5045_s5 + $0x370] sm:$0xff]  ;;  %v1895_v52 = vld [vmem:[%s5045_s5 + $0x3e8] sm:$0xff] }
 0x35b   :  { %v1699_v30 = vadd.f32 %v4771_v15, %v1689_v34  ;;  %v1701_v55 = vadd.f32 %v4771_v15, %v1691_v12  ;;  %vm1555_vm5 = vcmp.eq.s32.totalorder %v4349_v8, %v4710_v16  ;;  %vm1664_vm6 = vcmp.eq.s32.totalorder %v4343_v7, %v4762_v5  ;;  %v1847_v41 = vld [vmem:[%s5045_s5 + $0x268] sm:$0xff]  ;;  %v1894_v12 = vld [vmem:[%s5045_s5 + $0x3e0] sm:$0xff] }
 0x35c   :  { %v2237_v32 = vmul.f32 -1.442695, %v1697_v2  ;;  %v1693_v21 = vadd.f32 %v1685_v26, %v1582_v39  ;;  %v5271_v48 = vsub.f32 1.0, %v5270_v11  ;;  %vm1666_vm7 = vcmp.eq.s32.totalorder %v4349_v8, %v4762_v5  ;;  %v1879_v29 = vld [vmem:[%s5045_s5 + $0x368] sm:$0xff]  ;;  %v1862_v2 = vld [vmem:[%s5045_s5 + $0x2e0] sm:$0xff]  ;;  %v1845_v39 = vld [vmem:[%s5045_s5 + $0x258] sm:$0xff] }
 0x35d   :  { %v2239_v35 = vmul.f32 -1.442695, %v1699_v30  ;;  %v2241_v50 = vmul.f32 -1.442695, %v1701_v55  ;;  %v5273_v42 = vsub.f32 1.0, %v5272_v43  ;;  %v5274_v0 = vsub.f32 1.0, %v4103_v9 }
 0x35e   :  { %2396 = vpow2.f32 %v2237_v32  ;;  %v1703_v22 = vadd.f32 %v4771_v15, %v1693_v21  ;;  %v1561_v4 = vsel %vm1553_vm4, %v5271_v48, 0.0  ;;  %v5275_v36 = vsub.f32 1.0, %v4168_v46  ;;  %v1846_v30 = vld [vmem:[%s5045_s5 + $0x260] sm:$0xff]  ;;  %v1861_v32 = vld [vmem:[%s5045_s5 + $0x2d8] sm:$0xff]  ;;  %v1876_v21 = vld [vmem:[%s5045_s5 + $0x350] sm:$0xff] }
 0x35f   :  { %2398 = vpow2.f32 %v2239_v35  ;;  %v1563_v27 = vsel %vm1555_vm5, %v5273_v42, 0.0  ;;  %v1672_v28 = vsel %vm1664_vm6, %v5274_v0, 0.0  ;;  %v1571_v16 = vmul.f32 %v4736_v45, %v1561_v4  ;;  %v1893_v55 = vld [vmem:[%s5045_s5 + $0x3d8] sm:$0xff]  ;;  %v1860_v35 = vld [vmem:[%s5045_s5 + $0x2d0] sm:$0xff]  ;;  %v1843_v11 = vld [vmem:[%s5045_s5 + $0x248] sm:$0xff] }
 0x360   :  { %2400 = vpow2.f32 %v2236_v40  ;;  %v2243_v1 = vmul.f32 -1.442695, %v1703_v22  ;;  %v1674_v19 = vsel %vm1666_vm7, %v5275_v36, 0.0  ;;  %v1573_v7 = vmul.f32 %v4736_v45, %v1563_v27  ;;  %v1878_v40 = vld [vmem:[%s5045_s5 + $0x360] sm:$0xff]  ;;  %v1877_v26 = vld [vmem:[%s5045_s5 + $0x358] sm:$0xff]  ;;  %v1859_v22 = vld [vmem:[%s5045_s5 + $0x2c8] sm:$0xff] }
 0x361   :  { %2402 = vpow2.f32 %v2238_v13  ;;  %v1682_v10 = vmul.f32 %v4747_v57, %v1672_v28  ;;  %v1684_v54 = vmul.f32 %v4747_v57, %v1674_v19  ;;  %v1579_v24 = vadd.f32 %v1571_v16, %v4712_v47  ;;  %v1892_v13 = vld [vmem:[%s5045_s5 + $0x3d0] sm:$0xff]  ;;  %v1875_v4 = vld [vmem:[%s5045_s5 + $0x348] sm:$0xff]  ;;  %v1858_v43 = vld [vmem:[%s5045_s5 + $0x2c0] sm:$0xff] }
 0x362   :  { %2404 = vpow2.f32 %v2241_v50  ;;  %v1581_v14 = vadd.f32 %v1573_v7, %v4714_v25  ;;  %v1849_v25 = vld [vmem:[%s5045_s5 + $0x278] sm:$0xff]  ;;  %v1844_v50 = vld [vmem:[%s5045_s5 + $0x250] sm:$0xff]  ;;  %v1890_v27 = vld [vmem:[%s5045_s5 + $0x3c0] sm:$0xff] }
 0x363   :  { %2406 = vpow2.f32 %v2243_v1  ;;  %v1690_v17 = vadd.f32 %v1682_v10, %v1579_v24  ;;  %v1891_v1 = vld [vmem:[%s5045_s5 + $0x3c8] sm:$0xff]  ;;  %v1842_v0 = vld [vmem:[%s5045_s5 + $0x240] sm:$0xff]  ;;  %v1889_v19 = vld [vmem:[%s5045_s5 + $0x3b8] sm:$0xff] }
 0x364   :  { %v1692_v20 = vadd.f32 %v1684_v54, %v1581_v14  ;;  %v1874_v28 = vld [vmem:[%s5045_s5 + $0x340] sm:$0xff]  ;;  %v1841_v16 = vld [vmem:[%s5045_s5 + $0x238] sm:$0xff]  ;;  %v1840_v10 = vld [vmem:[%s5045_s5 + $0x230] sm:$0xff] }
 0x365   :  { %v1700_v57 = vadd.f32 %v4771_v15, %v1690_v17  ;;  %v1873_v7 = vld [vmem:[%s5045_s5 + $0x338] sm:$0xff]  ;;  %v1887_v54 = vld [vmem:[%s5045_s5 + $0x3a8] sm:$0xff]  ;;  %v1854_v24 = vld [vmem:[%s5045_s5 + $0x2a0] sm:$0xff] }
 0x366   :  { %v1702_v18 = vadd.f32 %v4771_v15, %v1692_v20  ;;  %v1864_v15 = vld [vmem:[%s5045_s5 + $0x2f0] sm:$0xff]  ;;  %v1838_v14 = vld [vmem:[%s5045_s5 + $0x220] sm:$0xff]  ;;  %v1885_v17 = vld [vmem:[%s5045_s5 + $0x398] sm:$0xff] }
 0x367   :  { %v2240_v31 = vmul.f32 -1.442695, %v1700_v57  ;;  %v1837_v20 = vld [vmem:[%s5045_s5 + $0x218] sm:$0xff]  ;;  %v1852_v57 = vld [vmem:[%s5045_s5 + $0x290] sm:$0xff] }
 0x368   :  { %v2242_v56 = vmul.f32 -1.442695, %v1702_v18  ;;  %v1884_v18 = vld [vmem:[%s5045_s5 + $0x390] sm:$0xff] }
 0x36b   :  { %v2397_v3 = vpop.eup %2396 }
 0x36c   :  { %v2399_v6 = vpop.eup %2398  ;;  %v1729_v49 = vadd.f32 1.0, %v2397_v3  ;;  %v1857_v3 = vld [vmem:[%s5045_s5 + $0x2b8] sm:$0xff] }
 0x36d   :  { %v2401_v37 = vpop.eup %2400  ;;  %v1731_v8 = vadd.f32 1.0, %v2399_v6 }
 0x36e   :  { %v2403_v5 = vpop.eup %2402  ;;  %2408 = vrcp.f32 %v1729_v49  ;;  %v1728_v9 = vadd.f32 1.0, %v2401_v37  ;;  %v1856_v49 = vld [vmem:[%s5045_s5 + $0x2b0] sm:$0xff] }
 0x36f   :  { %v2405_v62 = vpop.eup %2404  ;;  %2410 = vrcp.f32 %v1731_v8  ;;  %v1730_v46 = vadd.f32 1.0, %v2403_v5  ;;  %v1888_v37 = vld [vmem:[%s5045_s5 + $0x3b0] sm:$0xff]  ;;  %v1855_v5 = vld [vmem:[%s5045_s5 + $0x2a8] sm:$0xff] }
 0x370   :  { %2412 = vrcp.f32 %v1728_v9  ;;  %v1733_v51 = vadd.f32 1.0, %v2405_v62  ;;  %v2407_v45 = vpop.eup %2406  ;;  %v1872_v8 = vld [vmem:[%s5045_s5 + $0x330] sm:$0xff]  ;;  %v1839_v9 = vld [vmem:[%s5045_s5 + $0x228] sm:$0xff] }
 0x371   :  { %2414 = vrcp.f32 %v1730_v46  ;;  %v1735_v23 = vadd.f32 1.0, %v2407_v45  ;;  %v1871_v62 = vld [vmem:[%s5045_s5 + $0x328] sm:$0xff]  ;;  %v1886_v46 = vld [vmem:[%s5045_s5 + $0x3a0] sm:$0xff]  ;;  %v1853_v45 = vld [vmem:[%s5045_s5 + $0x298] sm:$0xff] }
 0x372   :  { %2416 = vrcp.f32 %v1733_v51  ;;  %v1870_v51 = vld [vmem:[%s5045_s5 + $0x320] sm:$0xff] }
 0x373   :  { %2418 = vrcp.f32 %v1735_v23  ;;  %v1869_v23 = vld [vmem:[%s5045_s5 + $0x318] sm:$0xff] }
 0x374   :  { %2420 = vpow2.f32 %v2240_v31  ;;  %v1836_v31 = vld [vmem:[%s5045_s5 + $0x210] sm:$0xff] }
 0x375   :  { %2422 = vpow2.f32 %v2242_v56  ;;  %v1868_v56 = vld [vmem:[%s5045_s5 + $0x310] sm:$0xff] }
 0x37b   :  { %v2409_v47 = vpop.eup %2408 }
 0x37c   :  { %v2411_v63 = vpop.eup %2410  ;;  %1969 = vmatprep.mubr.f32.mxu0 %v2409_v47  ;;  %v1851_v47 = vld [vmem:[%s5045_s5 + $0x288] sm:$0xff] }
 0x37d   :  { %v2413_v38 = vpop.eup %2412  ;;  %2039 = vmatprep.mubr.f32.mxu1 %v2411_v63  ;;  %v1883_v63 = vld [vmem:[%s5045_s5 + $0x388] sm:$0xff] }
 0x37e   :  { %v2415_v61 = vpop.eup %2414  ;;  %1970 = vmatmul.mubr.f32.vlgmr.msra.gmra.mxu0 %v2413_v38  ;;  %v1867_v38 = vld [vmem:[%s5045_s5 + $0x308] sm:$0xff] }
 0x37f   :  { %2040 = vmatmul.mubr.f32.vlgmr.msra.gmra.mxu1 %v2415_v61  ;;  %2317 = vmatpush3.msra.mxu0 %v1849_v25  ;;  %v2417_v53 = vpop.eup %2416  ;;  %v1835_v25 = vld [vmem:[%s5045_s5 + $0x208] sm:$0xff]  ;;  %v1834_v61 = vld [vmem:[%s5045_s5 + $0x200] sm:$0xff] }
 0x380   :  { %2352 = vmatpush3.msra.mxu1 %v1881_v33  ;;  %2318 = vmatprep.subr.mxu0 %v1864_v15  ;;  %v2419_v34 = vpop.eup %2418  ;;  %v1850_v33 = vld [vmem:[%s5045_s5 + $0x280] sm:$0xff] }
 0x381   :  { %2109 = vmatprep.mubr.f32.mxu0 %v2417_v53  ;;  %2353 = vmatprep.subr.mxu1 %v1896_v59  ;;  %v2421_v48 = vpop.eup %2420  ;;  %v1882_v15 = vld [vmem:[%s5045_s5 + $0x380] sm:$0xff] }
 0x382   :  { %2179 = vmatprep.mubr.f32.mxu1 %v2419_v34  ;;  %2319 = vmatpush3.msra.mxu0 %v1848_v44  ;;  %v2423_v42 = vpop.eup %2422  ;;  %v1732_v36 = vadd.f32 1.0, %v2421_v48  ;;  %v1866_v59 = vld [vmem:[%s5045_s5 + $0x300] sm:$0xff] }
 0x383   :  { %2354 = vmatpush3.msra.mxu1 %v1880_v58  ;;  %2320 = vmatprep.subr.mxu0 %v1863_v60  ;;  %v1734_v6 = vadd.f32 1.0, %v2423_v42 }
 0x384   :  { %2355 = vmatprep.subr.mxu1 %v1895_v52  ;;  %2321 = vmatpush3.msra.mxu0 %v1847_v41  ;;  %2424 = vrcp.f32 %v1732_v36  ;;  %v2244_v41 = vld [vmem:[%s5046_s6] ss:$0 sm:$0xff] }
 0x385   :  { %2356 = vmatpush3.msra.mxu1 %v1879_v29  ;;  %2322 = vmatprep.subr.mxu0 %v1862_v2  ;;  %2426 = vrcp.f32 %v1734_v6 }
 0x386   :  { %2357 = vmatprep.subr.mxu1 %v1894_v12  ;;  %2323 = vmatpush3.msra.mxu0 %v1846_v30 }
 0x387   :  { %2358 = vmatpush3.msra.mxu1 %v1878_v40  ;;  %2324 = vmatprep.subr.mxu0 %v1861_v32 }
 0x388   :  { %2359 = vmatprep.subr.mxu1 %v1893_v55  ;;  %2325 = vmatpush3.msra.mxu0 %v1845_v39 }
 0x389   :  { %2360 = vmatpush3.msra.mxu1 %v1877_v26  ;;  %2326 = vmatprep.subr.mxu0 %v1860_v35 }
 0x38a   :  { %2361 = vmatprep.subr.mxu1 %v1892_v13  ;;  %2327 = vmatpush3.msra.mxu0 %v1844_v50 }
 0x38b   :  { %2362 = vmatpush3.msra.mxu1 %v1876_v21  ;;  %2328 = vmatprep.subr.mxu0 %v1859_v22 }
 0x38c   :  { %2363 = vmatprep.subr.mxu1 %v1891_v1  ;;  %2329 = vmatpush3.msra.mxu0 %v1843_v11 }
 0x38d   :  { %2364 = vmatpush3.msra.mxu1 %v1875_v4  ;;  %2330 = vmatprep.subr.mxu0 %v1858_v43 }
 0x38e   :  { %2365 = vmatprep.subr.mxu1 %v1890_v27  ;;  %2331 = vmatpush3.msra.mxu0 %v1842_v0 }
 0x38f   :  { %2366 = vmatpush3.msra.mxu1 %v1874_v28  ;;  %2332 = vmatprep.subr.mxu0 %v1857_v3 }
 0x390   :  { %2367 = vmatprep.subr.mxu1 %v1889_v19  ;;  %2333 = vmatpush3.msra.mxu0 %v1841_v16 }
 0x391   :  { %2368 = vmatpush3.msra.mxu1 %v1873_v7  ;;  %2334 = vmatprep.subr.mxu0 %v1856_v49  ;;  %v2425_v44 = vpop.eup %2424 }
 0x392   :  { %2369 = vmatprep.subr.mxu1 %v1888_v37  ;;  %2335 = vmatpush3.msra.mxu0 %v1840_v10  ;;  %v2427_v53 = vpop.eup %2426 }
 0x393   :  { %2370 = vmatpush3.msra.mxu1 %v1872_v8  ;;  %2336 = vmatprep.subr.mxu0 %v1855_v5 }
 0x394   :  { %2371 = vmatprep.subr.mxu1 %v1887_v54  ;;  %2337 = vmatpush3.msra.mxu0 %v1839_v9 }
 0x395   :  { %2372 = vmatpush3.msra.mxu1 %v1871_v62  ;;  %2338 = vmatprep.subr.mxu0 %v1854_v24 }
 0x396   :  { %2373 = vmatprep.subr.mxu1 %v1886_v46  ;;  %2339 = vmatpush3.msra.mxu0 %v1838_v14 }
 0x397   :  { %2374 = vmatpush3.msra.mxu1 %v1870_v51  ;;  %2340 = vmatprep.subr.mxu0 %v1853_v45 }
 0x398   :  { %2375 = vmatprep.subr.mxu1 %v1885_v17  ;;  %2341 = vmatpush3.msra.mxu0 %v1837_v20 }
 0x399   :  { %2376 = vmatpush3.msra.mxu1 %v1869_v23  ;;  %2342 = vmatprep.subr.mxu0 %v1852_v57 }
 0x39a   :  { %2377 = vmatprep.subr.mxu1 %v1884_v18  ;;  %2343 = vmatpush3.msra.mxu0 %v1836_v31 }
 0x39b   :  { %2378 = vmatpush3.msra.mxu1 %v1868_v56  ;;  %2344 = vmatprep.subr.mxu0 %v1851_v47 }
 0x39c   :  { %2379 = vmatprep.subr.mxu1 %v1883_v63  ;;  %2345 = vmatpush3.msra.mxu0 %v1835_v25 }
 0x39d   :  { %2380 = vmatpush3.msra.mxu1 %v1867_v38  ;;  %2346 = vmatprep.subr.mxu0 %v1850_v33 }
 0x39e   :  { %2381 = vmatprep.subr.mxu1 %v1882_v15  ;;  %2347 = vmatpush3.msra.mxu0 %v1834_v61 }
 0x39f   :  { %2382 = vmatpush3.msra.mxu1 %v1866_v59  ;;  %2110 = vmatmul.mubr.f32.vlgmr.msra.gmra.mxu0 %v2425_v44 }
 0x3a0   :  { %2180 = vmatmul.mubr.f32.vlgmr.msra.gmra.mxu1 %v2427_v53 }
 0x43e   :  { %v2278_v58 = vpop.f32.mrf.mxu0 }
 0x43f   :  { %v2313_v34 = vpop.f32.mrf.mxu1 }
 0x440   :  { %v2279_v60 = vpop.f32.mrf.mxu0 }
 0x441   :  { %v2280_v52 = vadd.f32 %v2279_v60, %v2278_v58  ;;  %v2314_v29 = vpop.f32.mrf.mxu1 }
 0x442   :  { %v2315_v30 = vadd.f32 %v2314_v29, %v2313_v34 }
 0x443   :  { %v1972_v2 = vadd.f32 %v2280_v52, %v2244_v41 }
 0x445   :  { %v2042_v55 = vadd.f32 %v2315_v30, %v1972_v2 }
 0x45f   :  { %v2348_v12 = vpop.f32.mrf.mxu0 }
 0x460   :  { %v2383_v40 = vpop.f32.mrf.mxu1 }
 0x461   :  { %v2349_v32 = vpop.f32.mrf.mxu0 }
 0x462   :  { %v2350_v39 = vadd.f32 %v2349_v32, %v2348_v12  ;;  %v2384_v26 = vpop.f32.mrf.mxu1 }
 0x463   :  { %v2385_v13 = vadd.f32 %v2384_v26, %v2383_v40 }
 0x464   :  { %v2112_v35 = vadd.f32 %v2350_v39, %v2042_v55 }
 0x466   :  { %v2182_v50 = vadd.f32 %v2385_v13, %v2112_v35 }
 0x468   :  { %v2245_v21 = vmul.f32 -1.442695, %v2182_v50 }
 0x46a   :  { %2428 = vpow2.f32 %v2245_v21 }
 0x477   :  { %v2429_v22 = vpop.eup %2428 }
 0x478   :  { %v2188_v1 = vadd.f32 1.0, %v2429_v22 }
 0x47a   :  { %2430 = vrcp.f32 %v2188_v1 }
 0x487   :  { %v2431_v11 = vpop.eup %2430 }
 0x488   :  { %2191 = vst [vmem:[%s5047_s7] sm:$0xff] %v2431_v11 }
 0x489   :  { %2196 = vsyncpa [#allocation5], 1 }
 0x48a   :  { %2197 = vsyncpa [#allocation7], 1 }

</bundles_post_ra>
